<compile_context>
chip_gen: v7x
topology: tpu7x:2x2x1
jax: 0.10.0
libtpu: 0.0.40
codegen_flags: <defaults>
</compile_context>

<pallas_src>
import functools

import jax
import jax.numpy as jnp
from jax.experimental import pallas as pl
from jax.experimental.pallas import tpu as pltpu


_VMEM_LIMIT = 32 * 1024 * 1024   # explicit (v5e default scoped limit is only 16 MiB)
_MERGE_CIN_MAX = 32              # merge 9 taps into one K=9*Cin matmul only for small Cin
_ACC_BUDGET_BYTES = 64 * 1024    # per-chunk f32 accumulator budget (keep it register-sized)


# ---------------------------------------------------------------------------
# In-kernel helpers
# ---------------------------------------------------------------------------
def _pick_chunk_rows(H, Wp, cout, budget_bytes=_ACC_BUDGET_BYTES):
    """Largest divisor of H whose (cout, rows*Wp) f32 accumulator fits the budget."""
    best = 1
    for d in range(1, H + 1):
        if H % d == 0 and cout * d * Wp * 4 <= budget_bytes:
            best = d
    return best


def _fill_rows(xp_ref, src_ref, c0, *, H, W):
    """Write a dense (C, H*W) source into scratch channels [c0, c0+C).

    Scratch row layout per channel: padded image row rp in [0, H+2) occupies lanes
    [rp*(W+2), (rp+1)*(W+2)); lane 0 / lane W+1 of each row are the left/right zero pad.
    The pad lanes are written as part of the same store (no separate memset).
    """
    C = src_ref.shape[0]
    Wp = W + 2
    z = jnp.zeros((C, 1), xp_ref.dtype)
    for rr in range(H):
        row = src_ref[:, rr * W:(rr + 1) * W].astype(xp_ref.dtype)
        xp_ref[c0:c0 + C, (rr + 1) * Wp:(rr + 2) * Wp] = jnp.concatenate(
            [z, row, z], axis=1)


def _conv3x3_rows(xp_ref, w_ref, scale, bias, o_ref, *, H, W, cr, merge):
    """3x3 conv (pad=1) + folded BN + ReLU from the padded-row scratch.

    Taps are static lane-shifted slices of the flat scratch (no wrap, no masks).  Work is
    chunked over `cr` output rows so the f32 accumulator stays register-resident.  When
    `merge` is set the nine taps are concatenated into one K=9*Cin matmul.
    """
    C = xp_ref.shape[0]
    cout = o_ref.shape[0]
    Wp = W + 2
    lc = cr * Wp
    wv = w_ref[...]                                            # (cout, 9*C) bf16
    for r0 in range(0, H, cr):
        taps = [xp_ref[:, (r0 + dy) * Wp + dx:(r0 + dy) * Wp + dx + lc]
                for dy in range(3) for dx in range(3)]         # 9 x (C, lc)
        if merge:
            acc = jnp.dot(wv, jnp.concatenate(taps, axis=0),
                          preferred_element_type=jnp.float32)  # (cout, lc)
        else:
            acc = jnp.zeros((cout, lc), jnp.float32)
            for t in range(9):
                acc = acc + jnp.dot(wv[:, t * C:(t + 1) * C], taps[t],
                                    preferred_element_type=jnp.float32)
        y = jnp.maximum(acc * scale + bias, 0.0)
        for k in range(cr):
            o_ref[:, (r0 + k) * W:(r0 + k + 1) * W] = (
                y[:, k * Wp:k * Wp + W].astype(o_ref.dtype))


# ---------------------------------------------------------------------------
# Kernels
# ---------------------------------------------------------------------------
def _fused_up_squeeze_concat_conv_kernel(x2_ref, x1_ref, wsq_ref, bsq_ref, d_ref,
                                         w_ref, scale_ref, bias_ref, o_ref, xp_ref,
                                         *, H, W, H1, W1, r_off, c_off, cr, merge):
    """Fused: squeeze(1x1) + nearest x2 upsample + F.pad + torch.cat + conv3x3+BN+ReLU."""
    C2 = x2_ref.shape[0]
    Ctot = xp_ref.shape[0]
    Wp = W + 2
    LP = xp_ref.shape[1]
    dt = xp_ref.dtype
    w1u = 2 * W1

    # Zero only the pad border: top pad row and bottom pad row (+ trailing slack lanes).
    xp_ref[:, 0:Wp] = jnp.zeros((Ctot, Wp), dt)
    xp_ref[:, (H + 1) * Wp:LP] = jnp.zeros((Ctot, LP - (H + 1) * Wp), dt)

    # torch.cat([x2, x1u], 1): x2 -> scratch channels [0, C2).
    _fill_rows(xp_ref, x2_ref, 0, H=H, W=W)

    # 1x1 squeeze on the *low-res* x1 (commutes with nearest upsample): (C2,Cin)@(Cin,L1).
    xs = (jnp.dot(wsq_ref[...], x1_ref[...], preferred_element_type=jnp.float32)
          + bsq_ref[...]).astype(dt)                           # (C2, H1*W1)

    fast = (r_off == 0 and c_off == 0 and 2 * H1 == H and w1u == W)
    if not fast:
        # General F.pad path: zero the whole x1u channel group once, then place the window.
        xp_ref[C2:Ctot, :] = jnp.zeros((Ctot - C2, LP), dt)

    z = jnp.zeros((C2, 1), dt)
    for li in range(H1):
        # Nearest x2 upsample: column duplication via a tiny 0/1 matmul, row duplication
        # via storing the same row twice.
        dup = jnp.dot(xs[:, li * W1:(li + 1) * W1], d_ref[...],
                      preferred_element_type=jnp.float32).astype(dt)   # (C2, 2*W1)
        rp = 1 + r_off + 2 * li
        if fast:
            padded = jnp.concatenate([z, dup, z], axis=1)              # (C2, Wp)
            xp_ref[C2:Ctot, rp * Wp:(rp + 1) * Wp] = padded
            xp_ref[C2:Ctot, (rp + 1) * Wp:(rp + 2) * Wp] = padded
        else:
            c0 = rp * Wp + 1 + c_off
            xp_ref[C2:Ctot, c0:c0 + w1u] = dup
            xp_ref[C2:Ctot, c0 + Wp:c0 + Wp + w1u] = dup

    _conv3x3_rows(xp_ref, w_ref, scale_ref[...], bias_ref[...], o_ref,
                  H=H, W=W, cr=cr, merge=merge)


def _conv3x3_bn_relu_kernel(x_ref, w_ref, scale_ref, bias_ref, o_ref, xp_ref,
                            *, H, W, cr, merge):
    """Second DoubleConv stage: conv3x3(pad=1) + folded BN + ReLU."""
    C = x_ref.shape[0]
    Wp = W + 2
    LP = xp_ref.shape[1]
    dt = xp_ref.dtype
    xp_ref[:, 0:Wp] = jnp.zeros((C, Wp), dt)
    xp_ref[:, (H + 1) * Wp:LP] = jnp.zeros((C, LP - (H + 1) * Wp), dt)
    _fill_rows(xp_ref, x_ref, 0, H=H, W=W)
    _conv3x3_rows(xp_ref, w_ref, scale_ref[...], bias_ref[...], o_ref,
                  H=H, W=W, cr=cr, merge=merge)


# ---------------------------------------------------------------------------
# pallas_call wrappers
# ---------------------------------------------------------------------------
def fused_up_squeeze_concat_conv(x2, x1, w_sq, b_sq, dmat, w_m, scale, bias, *,
                                 H, W, H1, W1, r_off, c_off, out_dtype):
    N, C2, L = x2.shape
    Cin = x1.shape[1]
    L1 = x1.shape[2]
    Ctot = 2 * C2
    Cout = w_m.shape[0]
    Wp = W + 2
    LP = (H + 2) * Wp + 2
    cr = _pick_chunk_rows(H, Wp, Cout)
    merge = Ctot <= _MERGE_CIN_MAX
    kern = functools.partial(_fused_up_squeeze_concat_conv_kernel,
                             H=H, W=W, H1=H1, W1=W1, r_off=r_off, c_off=c_off,
                             cr=cr, merge=merge)
    flops = int(N * (2 * C2 * Cin * L1                      # squeeze
                     + 2 * C2 * W1 * 2 * W1 * H1            # column duplication
                     + 2 * 9 * Ctot * Cout * H * W))        # conv3x3
    bytes_accessed = int(x2.size * x2.dtype.itemsize + x1.size * x1.dtype.itemsize
                         + N * Cout * L * jnp.dtype(out_dtype).itemsize
                         + w_m.size * w_m.dtype.itemsize + w_sq.size * w_sq.dtype.itemsize)
    return pl.pallas_call(
        kern,
        out_shape=jax.ShapeDtypeStruct((N, Cout, L), out_dtype),
        grid_spec=pltpu.PrefetchScalarGridSpec(
            num_scalar_prefetch=0,
            grid=(N,),
            in_specs=[
                pl.BlockSpec((pl.Squeezed(), C2, L), lambda n: (n, 0, 0)),
                pl.BlockSpec((pl.Squeezed(), Cin, L1), lambda n: (n, 0, 0)),
                pl.BlockSpec((C2, Cin), lambda n: (0, 0)),
                pl.BlockSpec((C2, 1), lambda n: (0, 0)),
                pl.BlockSpec((W1, 2 * W1), lambda n: (0, 0)),
                pl.BlockSpec((Cout, 9 * Ctot), lambda n: (0, 0)),
                pl.BlockSpec((Cout, 1), lambda n: (0, 0)),
                pl.BlockSpec((Cout, 1), lambda n: (0, 0)),
            ],
            out_specs=pl.BlockSpec((pl.Squeezed(), Cout, L), lambda n: (n, 0, 0)),
            scratch_shapes=[pltpu.VMEM((Ctot, LP), jnp.bfloat16)],
        ),
        compiler_params=pltpu.CompilerParams(
            dimension_semantics=("parallel",), vmem_limit_bytes=_VMEM_LIMIT),
        cost_estimate=pl.CostEstimate(flops=flops, transcendentals=0,
                                      bytes_accessed=bytes_accessed),
    )(x2, x1, w_sq, b_sq, dmat, w_m, scale, bias)


def conv3x3_bn_relu(x, w_m, scale, bias, *, H, W, out_dtype):
    N, C, L = x.shape
    Cout = w_m.shape[0]
    Wp = W + 2
    LP = (H + 2) * Wp + 2
    cr = _pick_chunk_rows(H, Wp, Cout)
    merge = C <= _MERGE_CIN_MAX
    kern = functools.partial(_conv3x3_bn_relu_kernel, H=H, W=W, cr=cr, merge=merge)
    flops = int(N * 2 * 9 * C * Cout * H * W)
    bytes_accessed = int(x.size * x.dtype.itemsize
                         + N * Cout * L * jnp.dtype(out_dtype).itemsize
                         + w_m.size * w_m.dtype.itemsize)
    return pl.pallas_call(
        kern,
        out_shape=jax.ShapeDtypeStruct((N, Cout, L), out_dtype),
        grid_spec=pltpu.PrefetchScalarGridSpec(
            num_scalar_prefetch=0,
            grid=(N,),
            in_specs=[
                pl.BlockSpec((pl.Squeezed(), C, L), lambda n: (n, 0, 0)),
                pl.BlockSpec((Cout, 9 * C), lambda n: (0, 0)),
                pl.BlockSpec((Cout, 1), lambda n: (0, 0)),
                pl.BlockSpec((Cout, 1), lambda n: (0, 0)),
            ],
            out_specs=pl.BlockSpec((pl.Squeezed(), Cout, L), lambda n: (n, 0, 0)),
            scratch_shapes=[pltpu.VMEM((C, LP), jnp.bfloat16)],
        ),
        compiler_params=pltpu.CompilerParams(
            dimension_semantics=("parallel",), vmem_limit_bytes=_VMEM_LIMIT),
        cost_estimate=pl.CostEstimate(flops=flops, transcendentals=0,
                                      bytes_accessed=bytes_accessed),
    )(x, w_m, scale, bias)


# ---------------------------------------------------------------------------
# Parameters (raw, PyTorch-equivalent) + kernel-side preparation (BN fold, bf16, K-merge)
# ---------------------------------------------------------------------------
def init_up_params(key, in_channels, out_channels):
    c2 = in_channels // 2
    ks = jax.random.split(key, 14)
    nrm = jax.random.normal

    def conv_bn(k, cin, cout):
        kk = jax.random.split(k, 6)
        return dict(
            w=0.1 * nrm(kk[0], (3, 3, cout, cin), jnp.float32),   # (kh, kw, Cout, Cin)
            b=0.1 * nrm(kk[1], (cout,), jnp.float32),
            g=1.0 + 0.1 * nrm(kk[2], (cout,), jnp.float32),
            beta=0.1 * nrm(kk[3], (cout,), jnp.float32),
            m=0.1 * nrm(kk[4], (cout,), jnp.float32),              # non-trivial running mean
            v=jax.random.uniform(kk[5], (cout,), jnp.float32, 0.5, 1.5),  # running var
        )

    p = {"w_sq": 0.1 * nrm(ks[0], (c2, in_channels), jnp.float32),
         "b_sq": 0.1 * nrm(ks[1], (c2,), jnp.float32)}
    c1 = conv_bn(ks[2], in_channels, out_channels)
    c2p = conv_bn(ks[3], out_channels, out_channels)
    for name, d in (("1", c1), ("2", c2p)):
        for k, v in d.items():
            p[k + name] = v
    return p


def _prepare_params(p, *, eps, w_dtype):
    def fold(w, b, g, beta, m, v):
        cout = w.shape[2]
        scale = g / jnp.sqrt(v + eps)
        bias = beta + (b - m) * scale
        # (kh, kw, Cout, Cin) -> (Cout, 9*Cin), tap order t = kh*3 + kw (matches kernel).
        w_m = jnp.transpose(w, (2, 0, 1, 3)).reshape(cout, -1).astype(w_dtype)
        return (w_m, scale.reshape(cout, 1).astype(jnp.float32),
                bias.reshape(cout, 1).astype(jnp.float32))

    w1m, s1, b1 = fold(p["w1"], p["b1"], p["g1"], p["beta1"], p["m1"], p["v1"])
    w2m, s2, b2 = fold(p["w2"], p["b2"], p["g2"], p["beta2"], p["m2"], p["v2"])
    return dict(w_sq=p["w_sq"].astype(w_dtype),
                b_sq=p["b_sq"].reshape(-1, 1).astype(jnp.float32),
                w1m=w1m, scale1=s1, bias1=b1, w2m=w2m, scale2=s2, bias2=b2)


# ---------------------------------------------------------------------------
# Up.forward
# ---------------------------------------------------------------------------
def up_forward(x1_nchw, x2_nchw, params, *, act_dtype=jnp.bfloat16, eps=1e-5):
    """x1 = squeeze(up(x1)); x1 = pad(x1, diff); x = cat([x2, x1]); return DoubleConv(x)."""
    N, Cin, H1, W1 = x1_nchw.shape
    N2, C2, H, W = x2_nchw.shape
    assert N2 == N and C2 == Cin // 2
    h1u, w1u = 2 * H1, 2 * W1
    diffY, diffX = H - h1u, W - w1u
    assert diffY >= 0 and diffX >= 0, "upsampled x1 must not exceed x2 spatially"

    # NCHW -> (N, C, H*W): identical memory layout (free reshape, lane dim = spatial).
    x1 = x1_nchw.astype(act_dtype).reshape(N, Cin, H1 * W1)
    x2 = x2_nchw.astype(act_dtype).reshape(N, C2, H * W)

    kp = _prepare_params(params, eps=eps, w_dtype=act_dtype)
    # Nearest x2 column-duplication matrix (W1, 2*W1): D[k, 2k] = D[k, 2k+1] = 1.
    dmat = jnp.repeat(jnp.eye(W1, dtype=jnp.float32), 2, axis=1).astype(act_dtype)

    y = fused_up_squeeze_concat_conv(
        x2, x1, kp["w_sq"], kp["b_sq"], dmat, kp["w1m"], kp["scale1"], kp["bias1"],
        H=H, W=W, H1=H1, W1=W1, r_off=diffY // 2, c_off=diffX // 2,
        out_dtype=act_dtype)

    out = conv3x3_bn_relu(y, kp["w2m"], kp["scale2"], kp["bias2"],
                          H=H, W=W, out_dtype=jnp.float32)
    return out.reshape(N, -1, H, W)


# ---------------------------------------------------------------------------
# Pure-JAX reference (f32, raw BN) for validation
# ---------------------------------------------------------------------------
def reference_up_forward(x1, x2, p, eps=1e-5):
    xu = jnp.repeat(jnp.repeat(x1, 2, axis=2), 2, axis=3)
    xs = jnp.einsum("oc,nchw->nohw", p["w_sq"], xu) + p["b_sq"][None, :, None, None]
    H, W = x2.shape[2], x2.shape[3]
    dy, dx = H - xs.shape[2], W - xs.shape[3]
    xs = jnp.pad(xs, ((0, 0), (0, 0), (dy // 2, dy - dy // 2), (dx // 2, dx - dx // 2)))
    x = jnp.concatenate([x2, xs], axis=1)

    def conv_bn_relu(x, w, b, g, beta, m, v):
        wt = jnp.transpose(w, (2, 3, 0, 1))                    # (Cout, Cin, kh, kw)
        y = jax.lax.conv_general_dilated(
            x, wt, window_strides=(1, 1), padding=((1, 1), (1, 1)),
            dimension_numbers=("NCHW", "OIHW", "NCHW"))
        y = y + b[None, :, None, None]
        y = (y - m[None, :, None, None]) / jnp.sqrt(v[None, :, None, None] + eps)
        y = y * g[None, :, None, None] + beta[None, :, None, None]
        return jnp.maximum(y, 0.0)

    y = conv_bn_relu(x, p["w1"], p["b1"], p["g1"], p["beta1"], p["m1"], p["v1"])
    y = conv_bn_relu(y, p["w2"], p["b2"], p["g2"], p["beta2"], p["m2"], p["v2"])
    return y


# ---------------------------------------------------------------------------
if __name__ == "__main__":
    key = jax.random.PRNGKey(0)
    k1, k2, k3, k4, k5, k6 = jax.random.split(key, 6)
    fwd = jax.jit(up_forward)

    def run_case(kx1, kx2, kp, N, cin, cout, H1, W1, H2, W2):
        x1 = jax.random.normal(kx1, (N, cin, H1, W1), jnp.float32)
        x2 = jax.random.normal(kx2, (N, cin // 2, H2, W2), jnp.float32)
        params = init_up_params(kp, cin, cout)
        out = jax.block_until_ready(fwd(x1, x2, params))
        assert out.shape == (N, cout, H2, W2)
        assert out.dtype == jnp.float32
        assert bool(jnp.all(jnp.isfinite(out)))
        ref = reference_up_forward(x1, x2, params)
        err = float(jnp.max(jnp.abs(out - ref)))
        assert err < 6e-2, f"max abs err vs reference: {err}"

    # Case 1: exact 2x match between upsampled x1 and x2 (diff == 0 fast path).
    run_case(k1, k2, k3, N=2, cin=4, cout=4, H1=8, W1=8, H2=16, W2=16)
    # Case 2: odd low-res size -> non-zero F.pad offsets (general placement path).
    run_case(k4, k5, k6, N=1, cin=4, cout=4, H1=7, W1=7, H2=16, W2=16)

    print("KERNEL_OK")
</pallas_src>

<mosaic_0001>
module attributes {stable_mosaic.version = 11 : i64} {
  func.func @_fused_up_squeeze_concat_conv_kernel(%arg0: i32, %arg1: memref<1x2x256xbf16, #tpu.memory_space<vmem>>, %arg2: memref<1x4x64xbf16, #tpu.memory_space<vmem>>, %arg3: memref<2x4xbf16, #tpu.memory_space<vmem>>, %arg4: memref<2x1xf32, #tpu.memory_space<vmem>>, %arg5: memref<8x16xbf16, #tpu.memory_space<vmem>>, %arg6: memref<4x36xbf16, #tpu.memory_space<vmem>>, %arg7: memref<4x1xf32, #tpu.memory_space<vmem>>, %arg8: memref<4x1xf32, #tpu.memory_space<vmem>>, %arg9: memref<1x4x256xbf16, #tpu.memory_space<vmem>>, %arg10: memref<4x326xbf16, #tpu.memory_space<vmem>>) attributes {dimension_semantics = [#tpu.dimension_semantics<parallel>], iteration_bounds = array<i64: 2>, scalar_prefetch = 0 : i64, scratch_operands = 1 : i64, tpu.core_type = #tpu.core_type<tc>, window_params = [{transform_indices = @transform_0, window_bounds = array<i64: 1, 2, 256>}, {transform_indices = @transform_1, window_bounds = array<i64: 1, 4, 64>}, {pipeline_mode = #tpu.pipeline_mode<synchronous>, transform_indices = @transform_2, window_bounds = array<i64: 2, 4>}, {pipeline_mode = #tpu.pipeline_mode<synchronous>, transform_indices = @transform_3, window_bounds = array<i64: 2, 1>}, {pipeline_mode = #tpu.pipeline_mode<synchronous>, transform_indices = @transform_4, window_bounds = array<i64: 8, 16>}, {pipeline_mode = #tpu.pipeline_mode<synchronous>, transform_indices = @transform_5, window_bounds = array<i64: 4, 36>}, {pipeline_mode = #tpu.pipeline_mode<synchronous>, transform_indices = @transform_6, window_bounds = array<i64: 4, 1>}, {pipeline_mode = #tpu.pipeline_mode<synchronous>, transform_indices = @transform_7, window_bounds = array<i64: 4, 1>}, {transform_indices = @transform_8, window_bounds = array<i64: 1, 4, 256>}]} {
    %cst = arith.constant 0.000000e+00 : bf16
    %0 = vector.broadcast %cst : bf16 to vector<4x18xbf16>
    %c0 = arith.constant 0 : index
    %c0_0 = arith.constant 0 : index
    %1 = vector.load %arg10[%c0, %c0_0] : memref<4x326xbf16, #tpu.memory_space<vmem>>, vector<4x18xbf16>
    tpu.vector_store %arg10[%c0, %c0_0], %0 {strides = array<i32>} : memref<4x326xbf16, #tpu.memory_space<vmem>>, vector<4x18xbf16>,
    %cst_1 = arith.constant 0.000000e+00 : bf16
    %2 = vector.broadcast %cst_1 : bf16 to vector<4x20xbf16>
    %c0_2 = arith.constant 0 : index
    %c306 = arith.constant 306 : index
    %3 = vector.load %arg10[%c0_2, %c306] : memref<4x326xbf16, #tpu.memory_space<vmem>>, vector<4x20xbf16>
    tpu.vector_store %arg10[%c0_2, %c306], %2 {strides = array<i32>} : memref<4x326xbf16, #tpu.memory_space<vmem>>, vector<4x20xbf16>,
    %cst_3 = arith.constant 0.000000e+00 : bf16
    %4 = vector.broadcast %cst_3 : bf16 to vector<2x1xbf16>
    %c0_4 = arith.constant 0 : index
    %c0_5 = arith.constant 0 : index
    %c0_6 = arith.constant 0 : index
    %5 = vector.load %arg1[%c0_4, %c0_5, %c0_6] : memref<1x2x256xbf16, #tpu.memory_space<vmem>>, vector<1x2x16xbf16>
    %6 = vector.shape_cast %5 : vector<1x2x16xbf16> to vector<2x16xbf16>
    %7 = tpu.concatenate %4, %6, %4 in 1 : vector<2x1xbf16>, vector<2x16xbf16>, vector<2x1xbf16> -> vector<2x18xbf16>
    %c0_7 = arith.constant 0 : index
    %c18 = arith.constant 18 : index
    %8 = vector.load %arg10[%c0_7, %c18] : memref<4x326xbf16, #tpu.memory_space<vmem>>, vector<2x18xbf16>
    tpu.vector_store %arg10[%c0_7, %c18], %7 {strides = array<i32>} : memref<4x326xbf16, #tpu.memory_space<vmem>>, vector<2x18xbf16>,
    %c0_8 = arith.constant 0 : index
    %c0_9 = arith.constant 0 : index
    %c16 = arith.constant 16 : index
    %9 = vector.load %arg1[%c0_8, %c0_9, %c16] : memref<1x2x256xbf16, #tpu.memory_space<vmem>>, vector<1x2x16xbf16>
    %10 = vector.shape_cast %9 : vector<1x2x16xbf16> to vector<2x16xbf16>
    %11 = tpu.concatenate %4, %10, %4 in 1 : vector<2x1xbf16>, vector<2x16xbf16>, vector<2x1xbf16> -> vector<2x18xbf16>
    %c0_10 = arith.constant 0 : index
    %c36 = arith.constant 36 : index
    %12 = vector.load %arg10[%c0_10, %c36] : memref<4x326xbf16, #tpu.memory_space<vmem>>, vector<2x18xbf16>
    tpu.vector_store %arg10[%c0_10, %c36], %11 {strides = array<i32>} : memref<4x326xbf16, #tpu.memory_space<vmem>>, vector<2x18xbf16>,
    %c0_11 = arith.constant 0 : index
    %c0_12 = arith.constant 0 : index
    %c32 = arith.constant 32 : index
    %13 = vector.load %arg1[%c0_11, %c0_12, %c32] : memref<1x2x256xbf16, #tpu.memory_space<vmem>>, vector<1x2x16xbf16>
    %14 = vector.shape_cast %13 : vector<1x2x16xbf16> to vector<2x16xbf16>
    %15 = tpu.concatenate %4, %14, %4 in 1 : vector<2x1xbf16>, vector<2x16xbf16>, vector<2x1xbf16> -> vector<2x18xbf16>
    %c0_13 = arith.constant 0 : index
    %c54 = arith.constant 54 : index
    %16 = vector.load %arg10[%c0_13, %c54] : memref<4x326xbf16, #tpu.memory_space<vmem>>, vector<2x18xbf16>
    tpu.vector_store %arg10[%c0_13, %c54], %15 {strides = array<i32>} : memref<4x326xbf16, #tpu.memory_space<vmem>>, vector<2x18xbf16>,
    %c0_14 = arith.constant 0 : index
    %c0_15 = arith.constant 0 : index
    %c48 = arith.constant 48 : index
    %17 = vector.load %arg1[%c0_14, %c0_15, %c48] : memref<1x2x256xbf16, #tpu.memory_space<vmem>>, vector<1x2x16xbf16>
    %18 = vector.shape_cast %17 : vector<1x2x16xbf16> to vector<2x16xbf16>
    %19 = tpu.concatenate %4, %18, %4 in 1 : vector<2x1xbf16>, vector<2x16xbf16>, vector<2x1xbf16> -> vector<2x18xbf16>
    %c0_16 = arith.constant 0 : index
    %c72 = arith.constant 72 : index
    %20 = vector.load %arg10[%c0_16, %c72] : memref<4x326xbf16, #tpu.memory_space<vmem>>, vector<2x18xbf16>
    tpu.vector_store %arg10[%c0_16, %c72], %19 {strides = array<i32>} : memref<4x326xbf16, #tpu.memory_space<vmem>>, vector<2x18xbf16>,
    %c0_17 = arith.constant 0 : index
    %c0_18 = arith.constant 0 : index
    %c64 = arith.constant 64 : index
    %21 = vector.load %arg1[%c0_17, %c0_18, %c64] : memref<1x2x256xbf16, #tpu.memory_space<vmem>>, vector<1x2x16xbf16>
    %22 = vector.shape_cast %21 : vector<1x2x16xbf16> to vector<2x16xbf16>
    %23 = tpu.concatenate %4, %22, %4 in 1 : vector<2x1xbf16>, vector<2x16xbf16>, vector<2x1xbf16> -> vector<2x18xbf16>
    %c0_19 = arith.constant 0 : index
    %c90 = arith.constant 90 : index
    %24 = vector.load %arg10[%c0_19, %c90] : memref<4x326xbf16, #tpu.memory_space<vmem>>, vector<2x18xbf16>
    tpu.vector_store %arg10[%c0_19, %c90], %23 {strides = array<i32>} : memref<4x326xbf16, #tpu.memory_space<vmem>>, vector<2x18xbf16>,
    %c0_20 = arith.constant 0 : index
    %c0_21 = arith.constant 0 : index
    %c80 = arith.constant 80 : index
    %25 = vector.load %arg1[%c0_20, %c0_21, %c80] : memref<1x2x256xbf16, #tpu.memory_space<vmem>>, vector<1x2x16xbf16>
    %26 = vector.shape_cast %25 : vector<1x2x16xbf16> to vector<2x16xbf16>
    %27 = tpu.concatenate %4, %26, %4 in 1 : vector<2x1xbf16>, vector<2x16xbf16>, vector<2x1xbf16> -> vector<2x18xbf16>
    %c0_22 = arith.constant 0 : index
    %c108 = arith.constant 108 : index
    %28 = vector.load %arg10[%c0_22, %c108] : memref<4x326xbf16, #tpu.memory_space<vmem>>, vector<2x18xbf16>
    tpu.vector_store %arg10[%c0_22, %c108], %27 {strides = array<i32>} : memref<4x326xbf16, #tpu.memory_space<vmem>>, vector<2x18xbf16>,
    %c0_23 = arith.constant 0 : index
    %c0_24 = arith.constant 0 : index
    %c96 = arith.constant 96 : index
    %29 = vector.load %arg1[%c0_23, %c0_24, %c96] : memref<1x2x256xbf16, #tpu.memory_space<vmem>>, vector<1x2x16xbf16>
    %30 = vector.shape_cast %29 : vector<1x2x16xbf16> to vector<2x16xbf16>
    %31 = tpu.concatenate %4, %30, %4 in 1 : vector<2x1xbf16>, vector<2x16xbf16>, vector<2x1xbf16> -> vector<2x18xbf16>
    %c0_25 = arith.constant 0 : index
    %c126 = arith.constant 126 : index
    %32 = vector.load %arg10[%c0_25, %c126] : memref<4x326xbf16, #tpu.memory_space<vmem>>, vector<2x18xbf16>
    tpu.vector_store %arg10[%c0_25, %c126], %31 {strides = array<i32>} : memref<4x326xbf16, #tpu.memory_space<vmem>>, vector<2x18xbf16>,
    %c0_26 = arith.constant 0 : index
    %c0_27 = arith.constant 0 : index
    %c112 = arith.constant 112 : index
    %33 = vector.load %arg1[%c0_26, %c0_27, %c112] : memref<1x2x256xbf16, #tpu.memory_space<vmem>>, vector<1x2x16xbf16>
    %34 = vector.shape_cast %33 : vector<1x2x16xbf16> to vector<2x16xbf16>
    %35 = tpu.concatenate %4, %34, %4 in 1 : vector<2x1xbf16>, vector<2x16xbf16>, vector<2x1xbf16> -> vector<2x18xbf16>
    %c0_28 = arith.constant 0 : index
    %c144 = arith.constant 144 : index
    %36 = vector.load %arg10[%c0_28, %c144] : memref<4x326xbf16, #tpu.memory_space<vmem>>, vector<2x18xbf16>
    tpu.vector_store %arg10[%c0_28, %c144], %35 {strides = array<i32>} : memref<4x326xbf16, #tpu.memory_space<vmem>>, vector<2x18xbf16>,
    %c0_29 = arith.constant 0 : index
    %c0_30 = arith.constant 0 : index
    %c128 = arith.constant 128 : index
    %37 = vector.load %arg1[%c0_29, %c0_30, %c128] : memref<1x2x256xbf16, #tpu.memory_space<vmem>>, vector<1x2x16xbf16>
    %38 = vector.shape_cast %37 : vector<1x2x16xbf16> to vector<2x16xbf16>
    %39 = tpu.concatenate %4, %38, %4 in 1 : vector<2x1xbf16>, vector<2x16xbf16>, vector<2x1xbf16> -> vector<2x18xbf16>
    %c0_31 = arith.constant 0 : index
    %c162 = arith.constant 162 : index
    %40 = vector.load %arg10[%c0_31, %c162] : memref<4x326xbf16, #tpu.memory_space<vmem>>, vector<2x18xbf16>
    tpu.vector_store %arg10[%c0_31, %c162], %39 {strides = array<i32>} : memref<4x326xbf16, #tpu.memory_space<vmem>>, vector<2x18xbf16>,
    %c0_32 = arith.constant 0 : index
    %c0_33 = arith.constant 0 : index
    %c144_34 = arith.constant 144 : index
    %41 = vector.load %arg1[%c0_32, %c0_33, %c144_34] : memref<1x2x256xbf16, #tpu.memory_space<vmem>>, vector<1x2x16xbf16>
    %42 = vector.shape_cast %41 : vector<1x2x16xbf16> to vector<2x16xbf16>
    %43 = tpu.concatenate %4, %42, %4 in 1 : vector<2x1xbf16>, vector<2x16xbf16>, vector<2x1xbf16> -> vector<2x18xbf16>
    %c0_35 = arith.constant 0 : index
    %c180 = arith.constant 180 : index
    %44 = vector.load %arg10[%c0_35, %c180] : memref<4x326xbf16, #tpu.memory_space<vmem>>, vector<2x18xbf16>
    tpu.vector_store %arg10[%c0_35, %c180], %43 {strides = array<i32>} : memref<4x326xbf16, #tpu.memory_space<vmem>>, vector<2x18xbf16>,
    %c0_36 = arith.constant 0 : index
    %c0_37 = arith.constant 0 : index
    %c160 = arith.constant 160 : index
    %45 = vector.load %arg1[%c0_36, %c0_37, %c160] : memref<1x2x256xbf16, #tpu.memory_space<vmem>>, vector<1x2x16xbf16>
    %46 = vector.shape_cast %45 : vector<1x2x16xbf16> to vector<2x16xbf16>
    %47 = tpu.concatenate %4, %46, %4 in 1 : vector<2x1xbf16>, vector<2x16xbf16>, vector<2x1xbf16> -> vector<2x18xbf16>
    %c0_38 = arith.constant 0 : index
    %c198 = arith.constant 198 : index
    %48 = vector.load %arg10[%c0_38, %c198] : memref<4x326xbf16, #tpu.memory_space<vmem>>, vector<2x18xbf16>
    tpu.vector_store %arg10[%c0_38, %c198], %47 {strides = array<i32>} : memref<4x326xbf16, #tpu.memory_space<vmem>>, vector<2x18xbf16>,
    %c0_39 = arith.constant 0 : index
    %c0_40 = arith.constant 0 : index
    %c176 = arith.constant 176 : index
    %49 = vector.load %arg1[%c0_39, %c0_40, %c176] : memref<1x2x256xbf16, #tpu.memory_space<vmem>>, vector<1x2x16xbf16>
    %50 = vector.shape_cast %49 : vector<1x2x16xbf16> to vector<2x16xbf16>
    %51 = tpu.concatenate %4, %50, %4 in 1 : vector<2x1xbf16>, vector<2x16xbf16>, vector<2x1xbf16> -> vector<2x18xbf16>
    %c0_41 = arith.constant 0 : index
    %c216 = arith.constant 216 : index
    %52 = vector.load %arg10[%c0_41, %c216] : memref<4x326xbf16, #tpu.memory_space<vmem>>, vector<2x18xbf16>
    tpu.vector_store %arg10[%c0_41, %c216], %51 {strides = array<i32>} : memref<4x326xbf16, #tpu.memory_space<vmem>>, vector<2x18xbf16>,
    %c0_42 = arith.constant 0 : index
    %c0_43 = arith.constant 0 : index
    %c192 = arith.constant 192 : index
    %53 = vector.load %arg1[%c0_42, %c0_43, %c192] : memref<1x2x256xbf16, #tpu.memory_space<vmem>>, vector<1x2x16xbf16>
    %54 = vector.shape_cast %53 : vector<1x2x16xbf16> to vector<2x16xbf16>
    %55 = tpu.concatenate %4, %54, %4 in 1 : vector<2x1xbf16>, vector<2x16xbf16>, vector<2x1xbf16> -> vector<2x18xbf16>
    %c0_44 = arith.constant 0 : index
    %c234 = arith.constant 234 : index
    %56 = vector.load %arg10[%c0_44, %c234] : memref<4x326xbf16, #tpu.memory_space<vmem>>, vector<2x18xbf16>
    tpu.vector_store %arg10[%c0_44, %c234], %55 {strides = array<i32>} : memref<4x326xbf16, #tpu.memory_space<vmem>>, vector<2x18xbf16>,
    %c0_45 = arith.constant 0 : index
    %c0_46 = arith.constant 0 : index
    %c208 = arith.constant 208 : index
    %57 = vector.load %arg1[%c0_45, %c0_46, %c208] : memref<1x2x256xbf16, #tpu.memory_space<vmem>>, vector<1x2x16xbf16>
    %58 = vector.shape_cast %57 : vector<1x2x16xbf16> to vector<2x16xbf16>
    %59 = tpu.concatenate %4, %58, %4 in 1 : vector<2x1xbf16>, vector<2x16xbf16>, vector<2x1xbf16> -> vector<2x18xbf16>
    %c0_47 = arith.constant 0 : index
    %c252 = arith.constant 252 : index
    %60 = vector.load %arg10[%c0_47, %c252] : memref<4x326xbf16, #tpu.memory_space<vmem>>, vector<2x18xbf16>
    tpu.vector_store %arg10[%c0_47, %c252], %59 {strides = array<i32>} : memref<4x326xbf16, #tpu.memory_space<vmem>>, vector<2x18xbf16>,
    %c0_48 = arith.constant 0 : index
    %c0_49 = arith.constant 0 : index
    %c224 = arith.constant 224 : index
    %61 = vector.load %arg1[%c0_48, %c0_49, %c224] : memref<1x2x256xbf16, #tpu.memory_space<vmem>>, vector<1x2x16xbf16>
    %62 = vector.shape_cast %61 : vector<1x2x16xbf16> to vector<2x16xbf16>
    %63 = tpu.concatenate %4, %62, %4 in 1 : vector<2x1xbf16>, vector<2x16xbf16>, vector<2x1xbf16> -> vector<2x18xbf16>
    %c0_50 = arith.constant 0 : index
    %c270 = arith.constant 270 : index
    %64 = vector.load %arg10[%c0_50, %c270] : memref<4x326xbf16, #tpu.memory_space<vmem>>, vector<2x18xbf16>
    tpu.vector_store %arg10[%c0_50, %c270], %63 {strides = array<i32>} : memref<4x326xbf16, #tpu.memory_space<vmem>>, vector<2x18xbf16>,
    %c0_51 = arith.constant 0 : index
    %c0_52 = arith.constant 0 : index
    %c240 = arith.constant 240 : index
    %65 = vector.load %arg1[%c0_51, %c0_52, %c240] : memref<1x2x256xbf16, #tpu.memory_space<vmem>>, vector<1x2x16xbf16>
    %66 = vector.shape_cast %65 : vector<1x2x16xbf16> to vector<2x16xbf16>
    %67 = tpu.concatenate %4, %66, %4 in 1 : vector<2x1xbf16>, vector<2x16xbf16>, vector<2x1xbf16> -> vector<2x18xbf16>
    %c0_53 = arith.constant 0 : index
    %c288 = arith.constant 288 : index
    %68 = vector.load %arg10[%c0_53, %c288] : memref<4x326xbf16, #tpu.memory_space<vmem>>, vector<2x18xbf16>
    tpu.vector_store %arg10[%c0_53, %c288], %67 {strides = array<i32>} : memref<4x326xbf16, #tpu.memory_space<vmem>>, vector<2x18xbf16>,
    %c0_54 = arith.constant 0 : index
    %c0_55 = arith.constant 0 : index
    %69 = vector.load %arg3[%c0_54, %c0_55] : memref<2x4xbf16, #tpu.memory_space<vmem>>, vector<2x4xbf16>
    %c0_56 = arith.constant 0 : index
    %c0_57 = arith.constant 0 : index
    %c0_58 = arith.constant 0 : index
    %70 = vector.load %arg2[%c0_56, %c0_57, %c0_58] : memref<1x4x64xbf16, #tpu.memory_space<vmem>>, vector<1x4x64xbf16>
    %71 = vector.shape_cast %70 : vector<1x4x64xbf16> to vector<4x64xbf16>
    %cst_59 = arith.constant dense<0.000000e+00> : vector<2x64xf32>
    %72 = tpu.matmul %69, %71, %cst_59 {dimension_numbers = #tpu.dot_dimension_numbers<[1], [0], [0], [1], [0, 0, 1, 1], [], []>} : vector<2x4xbf16>, vector<4x64xbf16>, vector<2x64xf32> -> vector<2x64xf32>
    %c0_60 = arith.constant 0 : index
    %c0_61 = arith.constant 0 : index
    %73 = vector.load %arg4[%c0_60, %c0_61] : memref<2x1xf32, #tpu.memory_space<vmem>>, vector<2x1xf32>
    %74 = vector.broadcast %73 : vector<2x1xf32> to vector<2x64xf32>
    %75 = arith.addf %72, %74 : vector<2x64xf32>
    %76 = arith.truncf %75 : vector<2x64xf32> to vector<2x64xbf16>
    %cst_62 = arith.constant 0.000000e+00 : bf16
    %77 = vector.broadcast %cst_62 : bf16 to vector<2x1xbf16>
    %78 = vector.extract_strided_slice %76 {offsets = [0, 0], sizes = [2, 8], strides = [1, 1]} : vector<2x64xbf16> to vector<2x8xbf16>
    %c0_63 = arith.constant 0 : index
    %c0_64 = arith.constant 0 : index
    %79 = vector.load %arg5[%c0_63, %c0_64] : memref<8x16xbf16, #tpu.memory_space<vmem>>, vector<8x16xbf16>
    %cst_65 = arith.constant dense<0.000000e+00> : vector<2x16xf32>
    %80 = tpu.matmul %78, %79, %cst_65 {dimension_numbers = #tpu.dot_dimension_numbers<[1], [0], [0], [1], [0, 0, 1, 1], [], []>} : vector<2x8xbf16>, vector<8x16xbf16>, vector<2x16xf32> -> vector<2x16xf32>
    %81 = arith.truncf %80 : vector<2x16xf32> to vector<2x16xbf16>
    %82 = tpu.concatenate %77, %81, %77 in 1 : vector<2x1xbf16>, vector<2x16xbf16>, vector<2x1xbf16> -> vector<2x18xbf16>
    %c2 = arith.constant 2 : index
    %c18_66 = arith.constant 18 : index
    %83 = vector.load %arg10[%c2, %c18_66] : memref<4x326xbf16, #tpu.memory_space<vmem>>, vector<2x18xbf16>
    tpu.vector_store %arg10[%c2, %c18_66], %82 {strides = array<i32>} : memref<4x326xbf16, #tpu.memory_space<vmem>>, vector<2x18xbf16>,
    %c2_67 = arith.constant 2 : index
    %c36_68 = arith.constant 36 : index
    %84 = vector.load %arg10[%c2_67, %c36_68] : memref<4x326xbf16, #tpu.memory_space<vmem>>, vector<2x18xbf16>
    tpu.vector_store %arg10[%c2_67, %c36_68], %82 {strides = array<i32>} : memref<4x326xbf16, #tpu.memory_space<vmem>>, vector<2x18xbf16>,
    %85 = vector.extract_strided_slice %76 {offsets = [0, 8], sizes = [2, 8], strides = [1, 1]} : vector<2x64xbf16> to vector<2x8xbf16>
    %c0_69 = arith.constant 0 : index
    %c0_70 = arith.constant 0 : index
    %86 = vector.load %arg5[%c0_69, %c0_70] : memref<8x16xbf16, #tpu.memory_space<vmem>>, vector<8x16xbf16>
    %cst_71 = arith.constant dense<0.000000e+00> : vector<2x16xf32>
    %87 = tpu.matmul %85, %86, %cst_71 {dimension_numbers = #tpu.dot_dimension_numbers<[1], [0], [0], [1], [0, 0, 1, 1], [], []>} : vector<2x8xbf16>, vector<8x16xbf16>, vector<2x16xf32> -> vector<2x16xf32>
    %88 = arith.truncf %87 : vector<2x16xf32> to vector<2x16xbf16>
    %89 = tpu.concatenate %77, %88, %77 in 1 : vector<2x1xbf16>, vector<2x16xbf16>, vector<2x1xbf16> -> vector<2x18xbf16>
    %c2_72 = arith.constant 2 : index
    %c54_73 = arith.constant 54 : index
    %90 = vector.load %arg10[%c2_72, %c54_73] : memref<4x326xbf16, #tpu.memory_space<vmem>>, vector<2x18xbf16>
    tpu.vector_store %arg10[%c2_72, %c54_73], %89 {strides = array<i32>} : memref<4x326xbf16, #tpu.memory_space<vmem>>, vector<2x18xbf16>,
    %c2_74 = arith.constant 2 : index
    %c72_75 = arith.constant 72 : index
    %91 = vector.load %arg10[%c2_74, %c72_75] : memref<4x326xbf16, #tpu.memory_space<vmem>>, vector<2x18xbf16>
    tpu.vector_store %arg10[%c2_74, %c72_75], %89 {strides = array<i32>} : memref<4x326xbf16, #tpu.memory_space<vmem>>, vector<2x18xbf16>,
    %92 = vector.extract_strided_slice %76 {offsets = [0, 16], sizes = [2, 8], strides = [1, 1]} : vector<2x64xbf16> to vector<2x8xbf16>
    %c0_76 = arith.constant 0 : index
    %c0_77 = arith.constant 0 : index
    %93 = vector.load %arg5[%c0_76, %c0_77] : memref<8x16xbf16, #tpu.memory_space<vmem>>, vector<8x16xbf16>
    %cst_78 = arith.constant dense<0.000000e+00> : vector<2x16xf32>
    %94 = tpu.matmul %92, %93, %cst_78 {dimension_numbers = #tpu.dot_dimension_numbers<[1], [0], [0], [1], [0, 0, 1, 1], [], []>} : vector<2x8xbf16>, vector<8x16xbf16>, vector<2x16xf32> -> vector<2x16xf32>
    %95 = arith.truncf %94 : vector<2x16xf32> to vector<2x16xbf16>
    %96 = tpu.concatenate %77, %95, %77 in 1 : vector<2x1xbf16>, vector<2x16xbf16>, vector<2x1xbf16> -> vector<2x18xbf16>
    %c2_79 = arith.constant 2 : index
    %c90_80 = arith.constant 90 : index
    %97 = vector.load %arg10[%c2_79, %c90_80] : memref<4x326xbf16, #tpu.memory_space<vmem>>, vector<2x18xbf16>
    tpu.vector_store %arg10[%c2_79, %c90_80], %96 {strides = array<i32>} : memref<4x326xbf16, #tpu.memory_space<vmem>>, vector<2x18xbf16>,
    %c2_81 = arith.constant 2 : index
    %c108_82 = arith.constant 108 : index
    %98 = vector.load %arg10[%c2_81, %c108_82] : memref<4x326xbf16, #tpu.memory_space<vmem>>, vector<2x18xbf16>
    tpu.vector_store %arg10[%c2_81, %c108_82], %96 {strides = array<i32>} : memref<4x326xbf16, #tpu.memory_space<vmem>>, vector<2x18xbf16>,
    %99 = vector.extract_strided_slice %76 {offsets = [0, 24], sizes = [2, 8], strides = [1, 1]} : vector<2x64xbf16> to vector<2x8xbf16>
    %c0_83 = arith.constant 0 : index
    %c0_84 = arith.constant 0 : index
    %100 = vector.load %arg5[%c0_83, %c0_84] : memref<8x16xbf16, #tpu.memory_space<vmem>>, vector<8x16xbf16>
    %cst_85 = arith.constant dense<0.000000e+00> : vector<2x16xf32>
    %101 = tpu.matmul %99, %100, %cst_85 {dimension_numbers = #tpu.dot_dimension_numbers<[1], [0], [0], [1], [0, 0, 1, 1], [], []>} : vector<2x8xbf16>, vector<8x16xbf16>, vector<2x16xf32> -> vector<2x16xf32>
    %102 = arith.truncf %101 : vector<2x16xf32> to vector<2x16xbf16>
    %103 = tpu.concatenate %77, %102, %77 in 1 : vector<2x1xbf16>, vector<2x16xbf16>, vector<2x1xbf16> -> vector<2x18xbf16>
    %c2_86 = arith.constant 2 : index
    %c126_87 = arith.constant 126 : index
    %104 = vector.load %arg10[%c2_86, %c126_87] : memref<4x326xbf16, #tpu.memory_space<vmem>>, vector<2x18xbf16>
    tpu.vector_store %arg10[%c2_86, %c126_87], %103 {strides = array<i32>} : memref<4x326xbf16, #tpu.memory_space<vmem>>, vector<2x18xbf16>,
    %c2_88 = arith.constant 2 : index
    %c144_89 = arith.constant 144 : index
    %105 = vector.load %arg10[%c2_88, %c144_89] : memref<4x326xbf16, #tpu.memory_space<vmem>>, vector<2x18xbf16>
    tpu.vector_store %arg10[%c2_88, %c144_89], %103 {strides = array<i32>} : memref<4x326xbf16, #tpu.memory_space<vmem>>, vector<2x18xbf16>,
    %106 = vector.extract_strided_slice %76 {offsets = [0, 32], sizes = [2, 8], strides = [1, 1]} : vector<2x64xbf16> to vector<2x8xbf16>
    %c0_90 = arith.constant 0 : index
    %c0_91 = arith.constant 0 : index
    %107 = vector.load %arg5[%c0_90, %c0_91] : memref<8x16xbf16, #tpu.memory_space<vmem>>, vector<8x16xbf16>
    %cst_92 = arith.constant dense<0.000000e+00> : vector<2x16xf32>
    %108 = tpu.matmul %106, %107, %cst_92 {dimension_numbers = #tpu.dot_dimension_numbers<[1], [0], [0], [1], [0, 0, 1, 1], [], []>} : vector<2x8xbf16>, vector<8x16xbf16>, vector<2x16xf32> -> vector<2x16xf32>
    %109 = arith.truncf %108 : vector<2x16xf32> to vector<2x16xbf16>
    %110 = tpu.concatenate %77, %109, %77 in 1 : vector<2x1xbf16>, vector<2x16xbf16>, vector<2x1xbf16> -> vector<2x18xbf16>
    %c2_93 = arith.constant 2 : index
    %c162_94 = arith.constant 162 : index
    %111 = vector.load %arg10[%c2_93, %c162_94] : memref<4x326xbf16, #tpu.memory_space<vmem>>, vector<2x18xbf16>
    tpu.vector_store %arg10[%c2_93, %c162_94], %110 {strides = array<i32>} : memref<4x326xbf16, #tpu.memory_space<vmem>>, vector<2x18xbf16>,
    %c2_95 = arith.constant 2 : index
    %c180_96 = arith.constant 180 : index
    %112 = vector.load %arg10[%c2_95, %c180_96] : memref<4x326xbf16, #tpu.memory_space<vmem>>, vector<2x18xbf16>
    tpu.vector_store %arg10[%c2_95, %c180_96], %110 {strides = array<i32>} : memref<4x326xbf16, #tpu.memory_space<vmem>>, vector<2x18xbf16>,
    %113 = vector.extract_strided_slice %76 {offsets = [0, 40], sizes = [2, 8], strides = [1, 1]} : vector<2x64xbf16> to vector<2x8xbf16>
    %c0_97 = arith.constant 0 : index
    %c0_98 = arith.constant 0 : index
    %114 = vector.load %arg5[%c0_97, %c0_98] : memref<8x16xbf16, #tpu.memory_space<vmem>>, vector<8x16xbf16>
    %cst_99 = arith.constant dense<0.000000e+00> : vector<2x16xf32>
    %115 = tpu.matmul %113, %114, %cst_99 {dimension_numbers = #tpu.dot_dimension_numbers<[1], [0], [0], [1], [0, 0, 1, 1], [], []>} : vector<2x8xbf16>, vector<8x16xbf16>, vector<2x16xf32> -> vector<2x16xf32>
    %116 = arith.truncf %115 : vector<2x16xf32> to vector<2x16xbf16>
    %117 = tpu.concatenate %77, %116, %77 in 1 : vector<2x1xbf16>, vector<2x16xbf16>, vector<2x1xbf16> -> vector<2x18xbf16>
    %c2_100 = arith.constant 2 : index
    %c198_101 = arith.constant 198 : index
    %118 = vector.load %arg10[%c2_100, %c198_101] : memref<4x326xbf16, #tpu.memory_space<vmem>>, vector<2x18xbf16>
    tpu.vector_store %arg10[%c2_100, %c198_101], %117 {strides = array<i32>} : memref<4x326xbf16, #tpu.memory_space<vmem>>, vector<2x18xbf16>,
    %c2_102 = arith.constant 2 : index
    %c216_103 = arith.constant 216 : index
    %119 = vector.load %arg10[%c2_102, %c216_103] : memref<4x326xbf16, #tpu.memory_space<vmem>>, vector<2x18xbf16>
    tpu.vector_store %arg10[%c2_102, %c216_103], %117 {strides = array<i32>} : memref<4x326xbf16, #tpu.memory_space<vmem>>, vector<2x18xbf16>,
    %120 = vector.extract_strided_slice %76 {offsets = [0, 48], sizes = [2, 8], strides = [1, 1]} : vector<2x64xbf16> to vector<2x8xbf16>
    %c0_104 = arith.constant 0 : index
    %c0_105 = arith.constant 0 : index
    %121 = vector.load %arg5[%c0_104, %c0_105] : memref<8x16xbf16, #tpu.memory_space<vmem>>, vector<8x16xbf16>
    %cst_106 = arith.constant dense<0.000000e+00> : vector<2x16xf32>
    %122 = tpu.matmul %120, %121, %cst_106 {dimension_numbers = #tpu.dot_dimension_numbers<[1], [0], [0], [1], [0, 0, 1, 1], [], []>} : vector<2x8xbf16>, vector<8x16xbf16>, vector<2x16xf32> -> vector<2x16xf32>
    %123 = arith.truncf %122 : vector<2x16xf32> to vector<2x16xbf16>
    %124 = tpu.concatenate %77, %123, %77 in 1 : vector<2x1xbf16>, vector<2x16xbf16>, vector<2x1xbf16> -> vector<2x18xbf16>
    %c2_107 = arith.constant 2 : index
    %c234_108 = arith.constant 234 : index
    %125 = vector.load %arg10[%c2_107, %c234_108] : memref<4x326xbf16, #tpu.memory_space<vmem>>, vector<2x18xbf16>
    tpu.vector_store %arg10[%c2_107, %c234_108], %124 {strides = array<i32>} : memref<4x326xbf16, #tpu.memory_space<vmem>>, vector<2x18xbf16>,
    %c2_109 = arith.constant 2 : index
    %c252_110 = arith.constant 252 : index
    %126 = vector.load %arg10[%c2_109, %c252_110] : memref<4x326xbf16, #tpu.memory_space<vmem>>, vector<2x18xbf16>
    tpu.vector_store %arg10[%c2_109, %c252_110], %124 {strides = array<i32>} : memref<4x326xbf16, #tpu.memory_space<vmem>>, vector<2x18xbf16>,
    %127 = vector.extract_strided_slice %76 {offsets = [0, 56], sizes = [2, 8], strides = [1, 1]} : vector<2x64xbf16> to vector<2x8xbf16>
    %c0_111 = arith.constant 0 : index
    %c0_112 = arith.constant 0 : index
    %128 = vector.load %arg5[%c0_111, %c0_112] : memref<8x16xbf16, #tpu.memory_space<vmem>>, vector<8x16xbf16>
    %cst_113 = arith.constant dense<0.000000e+00> : vector<2x16xf32>
    %129 = tpu.matmul %127, %128, %cst_113 {dimension_numbers = #tpu.dot_dimension_numbers<[1], [0], [0], [1], [0, 0, 1, 1], [], []>} : vector<2x8xbf16>, vector<8x16xbf16>, vector<2x16xf32> -> vector<2x16xf32>
    %130 = arith.truncf %129 : vector<2x16xf32> to vector<2x16xbf16>
    %131 = tpu.concatenate %77, %130, %77 in 1 : vector<2x1xbf16>, vector<2x16xbf16>, vector<2x1xbf16> -> vector<2x18xbf16>
    %c2_114 = arith.constant 2 : index
    %c270_115 = arith.constant 270 : index
    %132 = vector.load %arg10[%c2_114, %c270_115] : memref<4x326xbf16, #tpu.memory_space<vmem>>, vector<2x18xbf16>
    tpu.vector_store %arg10[%c2_114, %c270_115], %131 {strides = array<i32>} : memref<4x326xbf16, #tpu.memory_space<vmem>>, vector<2x18xbf16>,
    %c2_116 = arith.constant 2 : index
    %c288_117 = arith.constant 288 : index
    %133 = vector.load %arg10[%c2_116, %c288_117] : memref<4x326xbf16, #tpu.memory_space<vmem>>, vector<2x18xbf16>
    tpu.vector_store %arg10[%c2_116, %c288_117], %131 {strides = array<i32>} : memref<4x326xbf16, #tpu.memory_space<vmem>>, vector<2x18xbf16>,
    %c0_118 = arith.constant 0 : index
    %c0_119 = arith.constant 0 : index
    %134 = vector.load %arg7[%c0_118, %c0_119] : memref<4x1xf32, #tpu.memory_space<vmem>>, vector<4x1xf32>
    %c0_120 = arith.constant 0 : index
    %c0_121 = arith.constant 0 : index
    %135 = vector.load %arg8[%c0_120, %c0_121] : memref<4x1xf32, #tpu.memory_space<vmem>>, vector<4x1xf32>
    %c0_122 = arith.constant 0 : index
    %c0_123 = arith.constant 0 : index
    %136 = vector.load %arg6[%c0_122, %c0_123] : memref<4x36xbf16, #tpu.memory_space<vmem>>, vector<4x36xbf16>
    %c0_124 = arith.constant 0 : index
    %c0_125 = arith.constant 0 : index
    %137 = vector.load %arg10[%c0_124, %c0_125] : memref<4x326xbf16, #tpu.memory_space<vmem>>, vector<4x288xbf16>
    %c0_126 = arith.constant 0 : index
    %c1 = arith.constant 1 : index
    %138 = vector.load %arg10[%c0_126, %c1] : memref<4x326xbf16, #tpu.memory_space<vmem>>, vector<4x288xbf16>
    %c0_127 = arith.constant 0 : index
    %c2_128 = arith.constant 2 : index
    %139 = vector.load %arg10[%c0_127, %c2_128] : memref<4x326xbf16, #tpu.memory_space<vmem>>, vector<4x288xbf16>
    %c0_129 = arith.constant 0 : index
    %c18_130 = arith.constant 18 : index
    %140 = vector.load %arg10[%c0_129, %c18_130] : memref<4x326xbf16, #tpu.memory_space<vmem>>, vector<4x288xbf16>
    %c0_131 = arith.constant 0 : index
    %c19 = arith.constant 19 : index
    %141 = vector.load %arg10[%c0_131, %c19] : memref<4x326xbf16, #tpu.memory_space<vmem>>, vector<4x288xbf16>
    %c0_132 = arith.constant 0 : index
    %c20 = arith.constant 20 : index
    %142 = vector.load %arg10[%c0_132, %c20] : memref<4x326xbf16, #tpu.memory_space<vmem>>, vector<4x288xbf16>
    %c0_133 = arith.constant 0 : index
    %c36_134 = arith.constant 36 : index
    %143 = vector.load %arg10[%c0_133, %c36_134] : memref<4x326xbf16, #tpu.memory_space<vmem>>, vector<4x288xbf16>
    %c0_135 = arith.constant 0 : index
    %c37 = arith.constant 37 : index
    %144 = vector.load %arg10[%c0_135, %c37] : memref<4x326xbf16, #tpu.memory_space<vmem>>, vector<4x288xbf16>
    %c0_136 = arith.constant 0 : index
    %c38 = arith.constant 38 : index
    %145 = vector.load %arg10[%c0_136, %c38] : memref<4x326xbf16, #tpu.memory_space<vmem>>, vector<4x288xbf16>
    %146 = tpu.concatenate %137, %138, %139, %140, %141, %142, %143, %144, %145 in 0 : vector<4x288xbf16>, vector<4x288xbf16>, vector<4x288xbf16>, vector<4x288xbf16>, vector<4x288xbf16>, vector<4x288xbf16>, vector<4x288xbf16>, vector<4x288xbf16>, vector<4x288xbf16> -> vector<36x288xbf16>
    %cst_137 = arith.constant dense<0.000000e+00> : vector<4x288xf32>
    %147 = tpu.matmul %136, %146, %cst_137 {dimension_numbers = #tpu.dot_dimension_numbers<[1], [0], [0], [1], [0, 0, 1, 1], [], []>} : vector<4x36xbf16>, vector<36x288xbf16>, vector<4x288xf32> -> vector<4x288xf32>
    %148 = vector.broadcast %134 : vector<4x1xf32> to vector<4x288xf32>
    %149 = arith.mulf %147, %148 : vector<4x288xf32>
    %150 = vector.broadcast %135 : vector<4x1xf32> to vector<4x288xf32>
    %151 = arith.addf %149, %150 : vector<4x288xf32>
    %cst_138 = arith.constant 0.000000e+00 : f32
    %152 = vector.broadcast %cst_138 : f32 to vector<4x288xf32>
    %153 = arith.maximumf %151, %152 : vector<4x288xf32>
    %154 = vector.extract_strided_slice %153 {offsets = [0, 0], sizes = [4, 16], strides = [1, 1]} : vector<4x288xf32> to vector<4x16xf32>
    %155 = arith.truncf %154 : vector<4x16xf32> to vector<4x16xbf16>
    %c0_139 = arith.constant 0 : index
    %c0_140 = arith.constant 0 : index
    %c0_141 = arith.constant 0 : index
    %156 = vector.load %arg9[%c0_139, %c0_140, %c0_141] : memref<1x4x256xbf16, #tpu.memory_space<vmem>>, vector<1x4x16xbf16>
    %157 = vector.shape_cast %156 : vector<1x4x16xbf16> to vector<4x16xbf16>
    %158 = vector.shape_cast %155 : vector<4x16xbf16> to vector<1x4x16xbf16>
    tpu.vector_store %arg9[%c0_139, %c0_140, %c0_141], %158 {strides = array<i32>} : memref<1x4x256xbf16, #tpu.memory_space<vmem>>, vector<1x4x16xbf16>,
    %159 = vector.extract_strided_slice %153 {offsets = [0, 18], sizes = [4, 16], strides = [1, 1]} : vector<4x288xf32> to vector<4x16xf32>
    %160 = arith.truncf %159 : vector<4x16xf32> to vector<4x16xbf16>
    %c0_142 = arith.constant 0 : index
    %c0_143 = arith.constant 0 : index
    %c16_144 = arith.constant 16 : index
    %161 = vector.load %arg9[%c0_142, %c0_143, %c16_144] : memref<1x4x256xbf16, #tpu.memory_space<vmem>>, vector<1x4x16xbf16>
    %162 = vector.shape_cast %161 : vector<1x4x16xbf16> to vector<4x16xbf16>
    %163 = vector.shape_cast %160 : vector<4x16xbf16> to vector<1x4x16xbf16>
    tpu.vector_store %arg9[%c0_142, %c0_143, %c16_144], %163 {strides = array<i32>} : memref<1x4x256xbf16, #tpu.memory_space<vmem>>, vector<1x4x16xbf16>,
    %164 = vector.extract_strided_slice %153 {offsets = [0, 36], sizes = [4, 16], strides = [1, 1]} : vector<4x288xf32> to vector<4x16xf32>
    %165 = arith.truncf %164 : vector<4x16xf32> to vector<4x16xbf16>
    %c0_145 = arith.constant 0 : index
    %c0_146 = arith.constant 0 : index
    %c32_147 = arith.constant 32 : index
    %166 = vector.load %arg9[%c0_145, %c0_146, %c32_147] : memref<1x4x256xbf16, #tpu.memory_space<vmem>>, vector<1x4x16xbf16>
    %167 = vector.shape_cast %166 : vector<1x4x16xbf16> to vector<4x16xbf16>
    %168 = vector.shape_cast %165 : vector<4x16xbf16> to vector<1x4x16xbf16>
    tpu.vector_store %arg9[%c0_145, %c0_146, %c32_147], %168 {strides = array<i32>} : memref<1x4x256xbf16, #tpu.memory_space<vmem>>, vector<1x4x16xbf16>,
    %169 = vector.extract_strided_slice %153 {offsets = [0, 54], sizes = [4, 16], strides = [1, 1]} : vector<4x288xf32> to vector<4x16xf32>
    %170 = arith.truncf %169 : vector<4x16xf32> to vector<4x16xbf16>
    %c0_148 = arith.constant 0 : index
    %c0_149 = arith.constant 0 : index
    %c48_150 = arith.constant 48 : index
    %171 = vector.load %arg9[%c0_148, %c0_149, %c48_150] : memref<1x4x256xbf16, #tpu.memory_space<vmem>>, vector<1x4x16xbf16>
    %172 = vector.shape_cast %171 : vector<1x4x16xbf16> to vector<4x16xbf16>
    %173 = vector.shape_cast %170 : vector<4x16xbf16> to vector<1x4x16xbf16>
    tpu.vector_store %arg9[%c0_148, %c0_149, %c48_150], %173 {strides = array<i32>} : memref<1x4x256xbf16, #tpu.memory_space<vmem>>, vector<1x4x16xbf16>,
    %174 = vector.extract_strided_slice %153 {offsets = [0, 72], sizes = [4, 16], strides = [1, 1]} : vector<4x288xf32> to vector<4x16xf32>
    %175 = arith.truncf %174 : vector<4x16xf32> to vector<4x16xbf16>
    %c0_151 = arith.constant 0 : index
    %c0_152 = arith.constant 0 : index
    %c64_153 = arith.constant 64 : index
    %176 = vector.load %arg9[%c0_151, %c0_152, %c64_153] : memref<1x4x256xbf16, #tpu.memory_space<vmem>>, vector<1x4x16xbf16>
    %177 = vector.shape_cast %176 : vector<1x4x16xbf16> to vector<4x16xbf16>
    %178 = vector.shape_cast %175 : vector<4x16xbf16> to vector<1x4x16xbf16>
    tpu.vector_store %arg9[%c0_151, %c0_152, %c64_153], %178 {strides = array<i32>} : memref<1x4x256xbf16, #tpu.memory_space<vmem>>, vector<1x4x16xbf16>,
    %179 = vector.extract_strided_slice %153 {offsets = [0, 90], sizes = [4, 16], strides = [1, 1]} : vector<4x288xf32> to vector<4x16xf32>
    %180 = arith.truncf %179 : vector<4x16xf32> to vector<4x16xbf16>
    %c0_154 = arith.constant 0 : index
    %c0_155 = arith.constant 0 : index
    %c80_156 = arith.constant 80 : index
    %181 = vector.load %arg9[%c0_154, %c0_155, %c80_156] : memref<1x4x256xbf16, #tpu.memory_space<vmem>>, vector<1x4x16xbf16>
    %182 = vector.shape_cast %181 : vector<1x4x16xbf16> to vector<4x16xbf16>
    %183 = vector.shape_cast %180 : vector<4x16xbf16> to vector<1x4x16xbf16>
    tpu.vector_store %arg9[%c0_154, %c0_155, %c80_156], %183 {strides = array<i32>} : memref<1x4x256xbf16, #tpu.memory_space<vmem>>, vector<1x4x16xbf16>,
    %184 = vector.extract_strided_slice %153 {offsets = [0, 108], sizes = [4, 16], strides = [1, 1]} : vector<4x288xf32> to vector<4x16xf32>
    %185 = arith.truncf %184 : vector<4x16xf32> to vector<4x16xbf16>
    %c0_157 = arith.constant 0 : index
    %c0_158 = arith.constant 0 : index
    %c96_159 = arith.constant 96 : index
    %186 = vector.load %arg9[%c0_157, %c0_158, %c96_159] : memref<1x4x256xbf16, #tpu.memory_space<vmem>>, vector<1x4x16xbf16>
    %187 = vector.shape_cast %186 : vector<1x4x16xbf16> to vector<4x16xbf16>
    %188 = vector.shape_cast %185 : vector<4x16xbf16> to vector<1x4x16xbf16>
    tpu.vector_store %arg9[%c0_157, %c0_158, %c96_159], %188 {strides = array<i32>} : memref<1x4x256xbf16, #tpu.memory_space<vmem>>, vector<1x4x16xbf16>,
    %189 = vector.extract_strided_slice %153 {offsets = [0, 126], sizes = [4, 16], strides = [1, 1]} : vector<4x288xf32> to vector<4x16xf32>
    %190 = arith.truncf %189 : vector<4x16xf32> to vector<4x16xbf16>
    %c0_160 = arith.constant 0 : index
    %c0_161 = arith.constant 0 : index
    %c112_162 = arith.constant 112 : index
    %191 = vector.load %arg9[%c0_160, %c0_161, %c112_162] : memref<1x4x256xbf16, #tpu.memory_space<vmem>>, vector<1x4x16xbf16>
    %192 = vector.shape_cast %191 : vector<1x4x16xbf16> to vector<4x16xbf16>
    %193 = vector.shape_cast %190 : vector<4x16xbf16> to vector<1x4x16xbf16>
    tpu.vector_store %arg9[%c0_160, %c0_161, %c112_162], %193 {strides = array<i32>} : memref<1x4x256xbf16, #tpu.memory_space<vmem>>, vector<1x4x16xbf16>,
    %194 = vector.extract_strided_slice %153 {offsets = [0, 144], sizes = [4, 16], strides = [1, 1]} : vector<4x288xf32> to vector<4x16xf32>
    %195 = arith.truncf %194 : vector<4x16xf32> to vector<4x16xbf16>
    %c0_163 = arith.constant 0 : index
    %c0_164 = arith.constant 0 : index
    %c128_165 = arith.constant 128 : index
    %196 = vector.load %arg9[%c0_163, %c0_164, %c128_165] : memref<1x4x256xbf16, #tpu.memory_space<vmem>>, vector<1x4x16xbf16>
    %197 = vector.shape_cast %196 : vector<1x4x16xbf16> to vector<4x16xbf16>
    %198 = vector.shape_cast %195 : vector<4x16xbf16> to vector<1x4x16xbf16>
    tpu.vector_store %arg9[%c0_163, %c0_164, %c128_165], %198 {strides = array<i32>} : memref<1x4x256xbf16, #tpu.memory_space<vmem>>, vector<1x4x16xbf16>,
    %199 = vector.extract_strided_slice %153 {offsets = [0, 162], sizes = [4, 16], strides = [1, 1]} : vector<4x288xf32> to vector<4x16xf32>
    %200 = arith.truncf %199 : vector<4x16xf32> to vector<4x16xbf16>
    %c0_166 = arith.constant 0 : index
    %c0_167 = arith.constant 0 : index
    %c144_168 = arith.constant 144 : index
    %201 = vector.load %arg9[%c0_166, %c0_167, %c144_168] : memref<1x4x256xbf16, #tpu.memory_space<vmem>>, vector<1x4x16xbf16>
    %202 = vector.shape_cast %201 : vector<1x4x16xbf16> to vector<4x16xbf16>
    %203 = vector.shape_cast %200 : vector<4x16xbf16> to vector<1x4x16xbf16>
    tpu.vector_store %arg9[%c0_166, %c0_167, %c144_168], %203 {strides = array<i32>} : memref<1x4x256xbf16, #tpu.memory_space<vmem>>, vector<1x4x16xbf16>,
    %204 = vector.extract_strided_slice %153 {offsets = [0, 180], sizes = [4, 16], strides = [1, 1]} : vector<4x288xf32> to vector<4x16xf32>
    %205 = arith.truncf %204 : vector<4x16xf32> to vector<4x16xbf16>
    %c0_169 = arith.constant 0 : index
    %c0_170 = arith.constant 0 : index
    %c160_171 = arith.constant 160 : index
    %206 = vector.load %arg9[%c0_169, %c0_170, %c160_171] : memref<1x4x256xbf16, #tpu.memory_space<vmem>>, vector<1x4x16xbf16>
    %207 = vector.shape_cast %206 : vector<1x4x16xbf16> to vector<4x16xbf16>
    %208 = vector.shape_cast %205 : vector<4x16xbf16> to vector<1x4x16xbf16>
    tpu.vector_store %arg9[%c0_169, %c0_170, %c160_171], %208 {strides = array<i32>} : memref<1x4x256xbf16, #tpu.memory_space<vmem>>, vector<1x4x16xbf16>,
    %209 = vector.extract_strided_slice %153 {offsets = [0, 198], sizes = [4, 16], strides = [1, 1]} : vector<4x288xf32> to vector<4x16xf32>
    %210 = arith.truncf %209 : vector<4x16xf32> to vector<4x16xbf16>
    %c0_172 = arith.constant 0 : index
    %c0_173 = arith.constant 0 : index
    %c176_174 = arith.constant 176 : index
    %211 = vector.load %arg9[%c0_172, %c0_173, %c176_174] : memref<1x4x256xbf16, #tpu.memory_space<vmem>>, vector<1x4x16xbf16>
    %212 = vector.shape_cast %211 : vector<1x4x16xbf16> to vector<4x16xbf16>
    %213 = vector.shape_cast %210 : vector<4x16xbf16> to vector<1x4x16xbf16>
    tpu.vector_store %arg9[%c0_172, %c0_173, %c176_174], %213 {strides = array<i32>} : memref<1x4x256xbf16, #tpu.memory_space<vmem>>, vector<1x4x16xbf16>,
    %214 = vector.extract_strided_slice %153 {offsets = [0, 216], sizes = [4, 16], strides = [1, 1]} : vector<4x288xf32> to vector<4x16xf32>
    %215 = arith.truncf %214 : vector<4x16xf32> to vector<4x16xbf16>
    %c0_175 = arith.constant 0 : index
    %c0_176 = arith.constant 0 : index
    %c192_177 = arith.constant 192 : index
    %216 = vector.load %arg9[%c0_175, %c0_176, %c192_177] : memref<1x4x256xbf16, #tpu.memory_space<vmem>>, vector<1x4x16xbf16>
    %217 = vector.shape_cast %216 : vector<1x4x16xbf16> to vector<4x16xbf16>
    %218 = vector.shape_cast %215 : vector<4x16xbf16> to vector<1x4x16xbf16>
    tpu.vector_store %arg9[%c0_175, %c0_176, %c192_177], %218 {strides = array<i32>} : memref<1x4x256xbf16, #tpu.memory_space<vmem>>, vector<1x4x16xbf16>,
    %219 = vector.extract_strided_slice %153 {offsets = [0, 234], sizes = [4, 16], strides = [1, 1]} : vector<4x288xf32> to vector<4x16xf32>
    %220 = arith.truncf %219 : vector<4x16xf32> to vector<4x16xbf16>
    %c0_178 = arith.constant 0 : index
    %c0_179 = arith.constant 0 : index
    %c208_180 = arith.constant 208 : index
    %221 = vector.load %arg9[%c0_178, %c0_179, %c208_180] : memref<1x4x256xbf16, #tpu.memory_space<vmem>>, vector<1x4x16xbf16>
    %222 = vector.shape_cast %221 : vector<1x4x16xbf16> to vector<4x16xbf16>
    %223 = vector.shape_cast %220 : vector<4x16xbf16> to vector<1x4x16xbf16>
    tpu.vector_store %arg9[%c0_178, %c0_179, %c208_180], %223 {strides = array<i32>} : memref<1x4x256xbf16, #tpu.memory_space<vmem>>, vector<1x4x16xbf16>,
    %224 = vector.extract_strided_slice %153 {offsets = [0, 252], sizes = [4, 16], strides = [1, 1]} : vector<4x288xf32> to vector<4x16xf32>
    %225 = arith.truncf %224 : vector<4x16xf32> to vector<4x16xbf16>
    %c0_181 = arith.constant 0 : index
    %c0_182 = arith.constant 0 : index
    %c224_183 = arith.constant 224 : index
    %226 = vector.load %arg9[%c0_181, %c0_182, %c224_183] : memref<1x4x256xbf16, #tpu.memory_space<vmem>>, vector<1x4x16xbf16>
    %227 = vector.shape_cast %226 : vector<1x4x16xbf16> to vector<4x16xbf16>
    %228 = vector.shape_cast %225 : vector<4x16xbf16> to vector<1x4x16xbf16>
    tpu.vector_store %arg9[%c0_181, %c0_182, %c224_183], %228 {strides = array<i32>} : memref<1x4x256xbf16, #tpu.memory_space<vmem>>, vector<1x4x16xbf16>,
    %229 = vector.extract_strided_slice %153 {offsets = [0, 270], sizes = [4, 16], strides = [1, 1]} : vector<4x288xf32> to vector<4x16xf32>
    %230 = arith.truncf %229 : vector<4x16xf32> to vector<4x16xbf16>
    %c0_184 = arith.constant 0 : index
    %c0_185 = arith.constant 0 : index
    %c240_186 = arith.constant 240 : index
    %231 = vector.load %arg9[%c0_184, %c0_185, %c240_186] : memref<1x4x256xbf16, #tpu.memory_space<vmem>>, vector<1x4x16xbf16>
    %232 = vector.shape_cast %231 : vector<1x4x16xbf16> to vector<4x16xbf16>
    %233 = vector.shape_cast %230 : vector<4x16xbf16> to vector<1x4x16xbf16>
    tpu.vector_store %arg9[%c0_184, %c0_185, %c240_186], %233 {strides = array<i32>} : memref<1x4x256xbf16, #tpu.memory_space<vmem>>, vector<1x4x16xbf16>,
    return
  }
  func.func @transform_0(%arg0: i32) -> (i32, i32, i32) {
    %c0_i32 = arith.constant 0 : i32
    %c0_i32_0 = arith.constant 0 : i32
    %c0_i32_1 = arith.constant 0 : i32
    return %arg0, %c0_i32, %c0_i32_0 : i32, i32, i32
  }
  func.func @transform_1(%arg0: i32) -> (i32, i32, i32) {
    %c0_i32 = arith.constant 0 : i32
    %c0_i32_0 = arith.constant 0 : i32
    %c0_i32_1 = arith.constant 0 : i32
    return %arg0, %c0_i32, %c0_i32_0 : i32, i32, i32
  }
  func.func @transform_2(%arg0: i32) -> (i32, i32) {
    %c0_i32 = arith.constant 0 : i32
    %c0_i32_0 = arith.constant 0 : i32
    %c0_i32_1 = arith.constant 0 : i32
    return %c0_i32, %c0_i32_0 : i32, i32
  }
  func.func @transform_3(%arg0: i32) -> (i32, i32) {
    %c0_i32 = arith.constant 0 : i32
    %c0_i32_0 = arith.constant 0 : i32
    %c0_i32_1 = arith.constant 0 : i32
    return %c0_i32, %c0_i32_0 : i32, i32
  }
  func.func @transform_4(%arg0: i32) -> (i32, i32) {
    %c0_i32 = arith.constant 0 : i32
    %c0_i32_0 = arith.constant 0 : i32
    %c0_i32_1 = arith.constant 0 : i32
    return %c0_i32, %c0_i32_0 : i32, i32
  }
  func.func @transform_5(%arg0: i32) -> (i32, i32) {
    %c0_i32 = arith.constant 0 : i32
    %c0_i32_0 = arith.constant 0 : i32
    %c0_i32_1 = arith.constant 0 : i32
    return %c0_i32, %c0_i32_0 : i32, i32
  }
  func.func @transform_6(%arg0: i32) -> (i32, i32) {
    %c0_i32 = arith.constant 0 : i32
    %c0_i32_0 = arith.constant 0 : i32
    %c0_i32_1 = arith.constant 0 : i32
    return %c0_i32, %c0_i32_0 : i32, i32
  }
  func.func @transform_7(%arg0: i32) -> (i32, i32) {
    %c0_i32 = arith.constant 0 : i32
    %c0_i32_0 = arith.constant 0 : i32
    %c0_i32_1 = arith.constant 0 : i32
    return %c0_i32, %c0_i32_0 : i32, i32
  }
  func.func @transform_8(%arg0: i32) -> (i32, i32, i32) {
    %c0_i32 = arith.constant 0 : i32
    %c0_i32_0 = arith.constant 0 : i32
    %c0_i32_1 = arith.constant 0 : i32
    return %arg0, %c0_i32, %c0_i32_0 : i32, i32, i32
  }
}

module attributes {stable_mosaic.version = 11 : i64} {
  func.func @_conv3x3_bn_relu_kernel(%arg0: i32, %arg1: memref<1x4x256xbf16, #tpu.memory_space<vmem>>, %arg2: memref<4x36xbf16, #tpu.memory_space<vmem>>, %arg3: memref<4x1xf32, #tpu.memory_space<vmem>>, %arg4: memref<4x1xf32, #tpu.memory_space<vmem>>, %arg5: memref<1x4x256xf32, #tpu.memory_space<vmem>>, %arg6: memref<4x326xbf16, #tpu.memory_space<vmem>>) attributes {dimension_semantics = [#tpu.dimension_semantics<parallel>], iteration_bounds = array<i64: 2>, scalar_prefetch = 0 : i64, scratch_operands = 1 : i64, tpu.core_type = #tpu.core_type<tc>, window_params = [{transform_indices = @transform_0, window_bounds = array<i64: 1, 4, 256>}, {pipeline_mode = #tpu.pipeline_mode<synchronous>, transform_indices = @transform_1, window_bounds = array<i64: 4, 36>}, {pipeline_mode = #tpu.pipeline_mode<synchronous>, transform_indices = @transform_2, window_bounds = array<i64: 4, 1>}, {pipeline_mode = #tpu.pipeline_mode<synchronous>, transform_indices = @transform_3, window_bounds = array<i64: 4, 1>}, {transform_indices = @transform_4, window_bounds = array<i64: 1, 4, 256>}]} {
    %cst = arith.constant 0.000000e+00 : bf16
    %0 = vector.broadcast %cst : bf16 to vector<4x18xbf16>
    %c0 = arith.constant 0 : index
    %c0_0 = arith.constant 0 : index
    %1 = vector.load %arg6[%c0, %c0_0] : memref<4x326xbf16, #tpu.memory_space<vmem>>, vector<4x18xbf16>
    tpu.vector_store %arg6[%c0, %c0_0], %0 {strides = array<i32>} : memref<4x326xbf16, #tpu.memory_space<vmem>>, vector<4x18xbf16>,
    %cst_1 = arith.constant 0.000000e+00 : bf16
    %2 = vector.broadcast %cst_1 : bf16 to vector<4x20xbf16>
    %c0_2 = arith.constant 0 : index
    %c306 = arith.constant 306 : index
    %3 = vector.load %arg6[%c0_2, %c306] : memref<4x326xbf16, #tpu.memory_space<vmem>>, vector<4x20xbf16>
    tpu.vector_store %arg6[%c0_2, %c306], %2 {strides = array<i32>} : memref<4x326xbf16, #tpu.memory_space<vmem>>, vector<4x20xbf16>,
    %cst_3 = arith.constant 0.000000e+00 : bf16
    %4 = vector.broadcast %cst_3 : bf16 to vector<4x1xbf16>
    %c0_4 = arith.constant 0 : index
    %c0_5 = arith.constant 0 : index
    %c0_6 = arith.constant 0 : index
    %5 = vector.load %arg1[%c0_4, %c0_5, %c0_6] : memref<1x4x256xbf16, #tpu.memory_space<vmem>>, vector<1x4x16xbf16>
    %6 = vector.shape_cast %5 : vector<1x4x16xbf16> to vector<4x16xbf16>
    %7 = tpu.concatenate %4, %6, %4 in 1 : vector<4x1xbf16>, vector<4x16xbf16>, vector<4x1xbf16> -> vector<4x18xbf16>
    %c0_7 = arith.constant 0 : index
    %c18 = arith.constant 18 : index
    %8 = vector.load %arg6[%c0_7, %c18] : memref<4x326xbf16, #tpu.memory_space<vmem>>, vector<4x18xbf16>
    tpu.vector_store %arg6[%c0_7, %c18], %7 {strides = array<i32>} : memref<4x326xbf16, #tpu.memory_space<vmem>>, vector<4x18xbf16>,
    %c0_8 = arith.constant 0 : index
    %c0_9 = arith.constant 0 : index
    %c16 = arith.constant 16 : index
    %9 = vector.load %arg1[%c0_8, %c0_9, %c16] : memref<1x4x256xbf16, #tpu.memory_space<vmem>>, vector<1x4x16xbf16>
    %10 = vector.shape_cast %9 : vector<1x4x16xbf16> to vector<4x16xbf16>
    %11 = tpu.concatenate %4, %10, %4 in 1 : vector<4x1xbf16>, vector<4x16xbf16>, vector<4x1xbf16> -> vector<4x18xbf16>
    %c0_10 = arith.constant 0 : index
    %c36 = arith.constant 36 : index
    %12 = vector.load %arg6[%c0_10, %c36] : memref<4x326xbf16, #tpu.memory_space<vmem>>, vector<4x18xbf16>
    tpu.vector_store %arg6[%c0_10, %c36], %11 {strides = array<i32>} : memref<4x326xbf16, #tpu.memory_space<vmem>>, vector<4x18xbf16>,
    %c0_11 = arith.constant 0 : index
    %c0_12 = arith.constant 0 : index
    %c32 = arith.constant 32 : index
    %13 = vector.load %arg1[%c0_11, %c0_12, %c32] : memref<1x4x256xbf16, #tpu.memory_space<vmem>>, vector<1x4x16xbf16>
    %14 = vector.shape_cast %13 : vector<1x4x16xbf16> to vector<4x16xbf16>
    %15 = tpu.concatenate %4, %14, %4 in 1 : vector<4x1xbf16>, vector<4x16xbf16>, vector<4x1xbf16> -> vector<4x18xbf16>
    %c0_13 = arith.constant 0 : index
    %c54 = arith.constant 54 : index
    %16 = vector.load %arg6[%c0_13, %c54] : memref<4x326xbf16, #tpu.memory_space<vmem>>, vector<4x18xbf16>
    tpu.vector_store %arg6[%c0_13, %c54], %15 {strides = array<i32>} : memref<4x326xbf16, #tpu.memory_space<vmem>>, vector<4x18xbf16>,
    %c0_14 = arith.constant 0 : index
    %c0_15 = arith.constant 0 : index
    %c48 = arith.constant 48 : index
    %17 = vector.load %arg1[%c0_14, %c0_15, %c48] : memref<1x4x256xbf16, #tpu.memory_space<vmem>>, vector<1x4x16xbf16>
    %18 = vector.shape_cast %17 : vector<1x4x16xbf16> to vector<4x16xbf16>
    %19 = tpu.concatenate %4, %18, %4 in 1 : vector<4x1xbf16>, vector<4x16xbf16>, vector<4x1xbf16> -> vector<4x18xbf16>
    %c0_16 = arith.constant 0 : index
    %c72 = arith.constant 72 : index
    %20 = vector.load %arg6[%c0_16, %c72] : memref<4x326xbf16, #tpu.memory_space<vmem>>, vector<4x18xbf16>
    tpu.vector_store %arg6[%c0_16, %c72], %19 {strides = array<i32>} : memref<4x326xbf16, #tpu.memory_space<vmem>>, vector<4x18xbf16>,
    %c0_17 = arith.constant 0 : index
    %c0_18 = arith.constant 0 : index
    %c64 = arith.constant 64 : index
    %21 = vector.load %arg1[%c0_17, %c0_18, %c64] : memref<1x4x256xbf16, #tpu.memory_space<vmem>>, vector<1x4x16xbf16>
    %22 = vector.shape_cast %21 : vector<1x4x16xbf16> to vector<4x16xbf16>
    %23 = tpu.concatenate %4, %22, %4 in 1 : vector<4x1xbf16>, vector<4x16xbf16>, vector<4x1xbf16> -> vector<4x18xbf16>
    %c0_19 = arith.constant 0 : index
    %c90 = arith.constant 90 : index
    %24 = vector.load %arg6[%c0_19, %c90] : memref<4x326xbf16, #tpu.memory_space<vmem>>, vector<4x18xbf16>
    tpu.vector_store %arg6[%c0_19, %c90], %23 {strides = array<i32>} : memref<4x326xbf16, #tpu.memory_space<vmem>>, vector<4x18xbf16>,
    %c0_20 = arith.constant 0 : index
    %c0_21 = arith.constant 0 : index
    %c80 = arith.constant 80 : index
    %25 = vector.load %arg1[%c0_20, %c0_21, %c80] : memref<1x4x256xbf16, #tpu.memory_space<vmem>>, vector<1x4x16xbf16>
    %26 = vector.shape_cast %25 : vector<1x4x16xbf16> to vector<4x16xbf16>
    %27 = tpu.concatenate %4, %26, %4 in 1 : vector<4x1xbf16>, vector<4x16xbf16>, vector<4x1xbf16> -> vector<4x18xbf16>
    %c0_22 = arith.constant 0 : index
    %c108 = arith.constant 108 : index
    %28 = vector.load %arg6[%c0_22, %c108] : memref<4x326xbf16, #tpu.memory_space<vmem>>, vector<4x18xbf16>
    tpu.vector_store %arg6[%c0_22, %c108], %27 {strides = array<i32>} : memref<4x326xbf16, #tpu.memory_space<vmem>>, vector<4x18xbf16>,
    %c0_23 = arith.constant 0 : index
    %c0_24 = arith.constant 0 : index
    %c96 = arith.constant 96 : index
    %29 = vector.load %arg1[%c0_23, %c0_24, %c96] : memref<1x4x256xbf16, #tpu.memory_space<vmem>>, vector<1x4x16xbf16>
    %30 = vector.shape_cast %29 : vector<1x4x16xbf16> to vector<4x16xbf16>
    %31 = tpu.concatenate %4, %30, %4 in 1 : vector<4x1xbf16>, vector<4x16xbf16>, vector<4x1xbf16> -> vector<4x18xbf16>
    %c0_25 = arith.constant 0 : index
    %c126 = arith.constant 126 : index
    %32 = vector.load %arg6[%c0_25, %c126] : memref<4x326xbf16, #tpu.memory_space<vmem>>, vector<4x18xbf16>
    tpu.vector_store %arg6[%c0_25, %c126], %31 {strides = array<i32>} : memref<4x326xbf16, #tpu.memory_space<vmem>>, vector<4x18xbf16>,
    %c0_26 = arith.constant 0 : index
    %c0_27 = arith.constant 0 : index
    %c112 = arith.constant 112 : index
    %33 = vector.load %arg1[%c0_26, %c0_27, %c112] : memref<1x4x256xbf16, #tpu.memory_space<vmem>>, vector<1x4x16xbf16>
    %34 = vector.shape_cast %33 : vector<1x4x16xbf16> to vector<4x16xbf16>
    %35 = tpu.concatenate %4, %34, %4 in 1 : vector<4x1xbf16>, vector<4x16xbf16>, vector<4x1xbf16> -> vector<4x18xbf16>
    %c0_28 = arith.constant 0 : index
    %c144 = arith.constant 144 : index
    %36 = vector.load %arg6[%c0_28, %c144] : memref<4x326xbf16, #tpu.memory_space<vmem>>, vector<4x18xbf16>
    tpu.vector_store %arg6[%c0_28, %c144], %35 {strides = array<i32>} : memref<4x326xbf16, #tpu.memory_space<vmem>>, vector<4x18xbf16>,
    %c0_29 = arith.constant 0 : index
    %c0_30 = arith.constant 0 : index
    %c128 = arith.constant 128 : index
    %37 = vector.load %arg1[%c0_29, %c0_30, %c128] : memref<1x4x256xbf16, #tpu.memory_space<vmem>>, vector<1x4x16xbf16>
    %38 = vector.shape_cast %37 : vector<1x4x16xbf16> to vector<4x16xbf16>
    %39 = tpu.concatenate %4, %38, %4 in 1 : vector<4x1xbf16>, vector<4x16xbf16>, vector<4x1xbf16> -> vector<4x18xbf16>
    %c0_31 = arith.constant 0 : index
    %c162 = arith.constant 162 : index
    %40 = vector.load %arg6[%c0_31, %c162] : memref<4x326xbf16, #tpu.memory_space<vmem>>, vector<4x18xbf16>
    tpu.vector_store %arg6[%c0_31, %c162], %39 {strides = array<i32>} : memref<4x326xbf16, #tpu.memory_space<vmem>>, vector<4x18xbf16>,
    %c0_32 = arith.constant 0 : index
    %c0_33 = arith.constant 0 : index
    %c144_34 = arith.constant 144 : index
    %41 = vector.load %arg1[%c0_32, %c0_33, %c144_34] : memref<1x4x256xbf16, #tpu.memory_space<vmem>>, vector<1x4x16xbf16>
    %42 = vector.shape_cast %41 : vector<1x4x16xbf16> to vector<4x16xbf16>
    %43 = tpu.concatenate %4, %42, %4 in 1 : vector<4x1xbf16>, vector<4x16xbf16>, vector<4x1xbf16> -> vector<4x18xbf16>
    %c0_35 = arith.constant 0 : index
    %c180 = arith.constant 180 : index
    %44 = vector.load %arg6[%c0_35, %c180] : memref<4x326xbf16, #tpu.memory_space<vmem>>, vector<4x18xbf16>
    tpu.vector_store %arg6[%c0_35, %c180], %43 {strides = array<i32>} : memref<4x326xbf16, #tpu.memory_space<vmem>>, vector<4x18xbf16>,
    %c0_36 = arith.constant 0 : index
    %c0_37 = arith.constant 0 : index
    %c160 = arith.constant 160 : index
    %45 = vector.load %arg1[%c0_36, %c0_37, %c160] : memref<1x4x256xbf16, #tpu.memory_space<vmem>>, vector<1x4x16xbf16>
    %46 = vector.shape_cast %45 : vector<1x4x16xbf16> to vector<4x16xbf16>
    %47 = tpu.concatenate %4, %46, %4 in 1 : vector<4x1xbf16>, vector<4x16xbf16>, vector<4x1xbf16> -> vector<4x18xbf16>
    %c0_38 = arith.constant 0 : index
    %c198 = arith.constant 198 : index
    %48 = vector.load %arg6[%c0_38, %c198] : memref<4x326xbf16, #tpu.memory_space<vmem>>, vector<4x18xbf16>
    tpu.vector_store %arg6[%c0_38, %c198], %47 {strides = array<i32>} : memref<4x326xbf16, #tpu.memory_space<vmem>>, vector<4x18xbf16>,
    %c0_39 = arith.constant 0 : index
    %c0_40 = arith.constant 0 : index
    %c176 = arith.constant 176 : index
    %49 = vector.load %arg1[%c0_39, %c0_40, %c176] : memref<1x4x256xbf16, #tpu.memory_space<vmem>>, vector<1x4x16xbf16>
    %50 = vector.shape_cast %49 : vector<1x4x16xbf16> to vector<4x16xbf16>
    %51 = tpu.concatenate %4, %50, %4 in 1 : vector<4x1xbf16>, vector<4x16xbf16>, vector<4x1xbf16> -> vector<4x18xbf16>
    %c0_41 = arith.constant 0 : index
    %c216 = arith.constant 216 : index
    %52 = vector.load %arg6[%c0_41, %c216] : memref<4x326xbf16, #tpu.memory_space<vmem>>, vector<4x18xbf16>
    tpu.vector_store %arg6[%c0_41, %c216], %51 {strides = array<i32>} : memref<4x326xbf16, #tpu.memory_space<vmem>>, vector<4x18xbf16>,
    %c0_42 = arith.constant 0 : index
    %c0_43 = arith.constant 0 : index
    %c192 = arith.constant 192 : index
    %53 = vector.load %arg1[%c0_42, %c0_43, %c192] : memref<1x4x256xbf16, #tpu.memory_space<vmem>>, vector<1x4x16xbf16>
    %54 = vector.shape_cast %53 : vector<1x4x16xbf16> to vector<4x16xbf16>
    %55 = tpu.concatenate %4, %54, %4 in 1 : vector<4x1xbf16>, vector<4x16xbf16>, vector<4x1xbf16> -> vector<4x18xbf16>
    %c0_44 = arith.constant 0 : index
    %c234 = arith.constant 234 : index
    %56 = vector.load %arg6[%c0_44, %c234] : memref<4x326xbf16, #tpu.memory_space<vmem>>, vector<4x18xbf16>
    tpu.vector_store %arg6[%c0_44, %c234], %55 {strides = array<i32>} : memref<4x326xbf16, #tpu.memory_space<vmem>>, vector<4x18xbf16>,
    %c0_45 = arith.constant 0 : index
    %c0_46 = arith.constant 0 : index
    %c208 = arith.constant 208 : index
    %57 = vector.load %arg1[%c0_45, %c0_46, %c208] : memref<1x4x256xbf16, #tpu.memory_space<vmem>>, vector<1x4x16xbf16>
    %58 = vector.shape_cast %57 : vector<1x4x16xbf16> to vector<4x16xbf16>
    %59 = tpu.concatenate %4, %58, %4 in 1 : vector<4x1xbf16>, vector<4x16xbf16>, vector<4x1xbf16> -> vector<4x18xbf16>
    %c0_47 = arith.constant 0 : index
    %c252 = arith.constant 252 : index
    %60 = vector.load %arg6[%c0_47, %c252] : memref<4x326xbf16, #tpu.memory_space<vmem>>, vector<4x18xbf16>
    tpu.vector_store %arg6[%c0_47, %c252], %59 {strides = array<i32>} : memref<4x326xbf16, #tpu.memory_space<vmem>>, vector<4x18xbf16>,
    %c0_48 = arith.constant 0 : index
    %c0_49 = arith.constant 0 : index
    %c224 = arith.constant 224 : index
    %61 = vector.load %arg1[%c0_48, %c0_49, %c224] : memref<1x4x256xbf16, #tpu.memory_space<vmem>>, vector<1x4x16xbf16>
    %62 = vector.shape_cast %61 : vector<1x4x16xbf16> to vector<4x16xbf16>
    %63 = tpu.concatenate %4, %62, %4 in 1 : vector<4x1xbf16>, vector<4x16xbf16>, vector<4x1xbf16> -> vector<4x18xbf16>
    %c0_50 = arith.constant 0 : index
    %c270 = arith.constant 270 : index
    %64 = vector.load %arg6[%c0_50, %c270] : memref<4x326xbf16, #tpu.memory_space<vmem>>, vector<4x18xbf16>
    tpu.vector_store %arg6[%c0_50, %c270], %63 {strides = array<i32>} : memref<4x326xbf16, #tpu.memory_space<vmem>>, vector<4x18xbf16>,
    %c0_51 = arith.constant 0 : index
    %c0_52 = arith.constant 0 : index
    %c240 = arith.constant 240 : index
    %65 = vector.load %arg1[%c0_51, %c0_52, %c240] : memref<1x4x256xbf16, #tpu.memory_space<vmem>>, vector<1x4x16xbf16>
    %66 = vector.shape_cast %65 : vector<1x4x16xbf16> to vector<4x16xbf16>
    %67 = tpu.concatenate %4, %66, %4 in 1 : vector<4x1xbf16>, vector<4x16xbf16>, vector<4x1xbf16> -> vector<4x18xbf16>
    %c0_53 = arith.constant 0 : index
    %c288 = arith.constant 288 : index
    %68 = vector.load %arg6[%c0_53, %c288] : memref<4x326xbf16, #tpu.memory_space<vmem>>, vector<4x18xbf16>
    tpu.vector_store %arg6[%c0_53, %c288], %67 {strides = array<i32>} : memref<4x326xbf16, #tpu.memory_space<vmem>>, vector<4x18xbf16>,
    %c0_54 = arith.constant 0 : index
    %c0_55 = arith.constant 0 : index
    %69 = vector.load %arg3[%c0_54, %c0_55] : memref<4x1xf32, #tpu.memory_space<vmem>>, vector<4x1xf32>
    %c0_56 = arith.constant 0 : index
    %c0_57 = arith.constant 0 : index
    %70 = vector.load %arg4[%c0_56, %c0_57] : memref<4x1xf32, #tpu.memory_space<vmem>>, vector<4x1xf32>
    %c0_58 = arith.constant 0 : index
    %c0_59 = arith.constant 0 : index
    %71 = vector.load %arg2[%c0_58, %c0_59] : memref<4x36xbf16, #tpu.memory_space<vmem>>, vector<4x36xbf16>
    %c0_60 = arith.constant 0 : index
    %c0_61 = arith.constant 0 : index
    %72 = vector.load %arg6[%c0_60, %c0_61] : memref<4x326xbf16, #tpu.memory_space<vmem>>, vector<4x288xbf16>
    %c0_62 = arith.constant 0 : index
    %c1 = arith.constant 1 : index
    %73 = vector.load %arg6[%c0_62, %c1] : memref<4x326xbf16, #tpu.memory_space<vmem>>, vector<4x288xbf16>
    %c0_63 = arith.constant 0 : index
    %c2 = arith.constant 2 : index
    %74 = vector.load %arg6[%c0_63, %c2] : memref<4x326xbf16, #tpu.memory_space<vmem>>, vector<4x288xbf16>
    %c0_64 = arith.constant 0 : index
    %c18_65 = arith.constant 18 : index
    %75 = vector.load %arg6[%c0_64, %c18_65] : memref<4x326xbf16, #tpu.memory_space<vmem>>, vector<4x288xbf16>
    %c0_66 = arith.constant 0 : index
    %c19 = arith.constant 19 : index
    %76 = vector.load %arg6[%c0_66, %c19] : memref<4x326xbf16, #tpu.memory_space<vmem>>, vector<4x288xbf16>
    %c0_67 = arith.constant 0 : index
    %c20 = arith.constant 20 : index
    %77 = vector.load %arg6[%c0_67, %c20] : memref<4x326xbf16, #tpu.memory_space<vmem>>, vector<4x288xbf16>
    %c0_68 = arith.constant 0 : index
    %c36_69 = arith.constant 36 : index
    %78 = vector.load %arg6[%c0_68, %c36_69] : memref<4x326xbf16, #tpu.memory_space<vmem>>, vector<4x288xbf16>
    %c0_70 = arith.constant 0 : index
    %c37 = arith.constant 37 : index
    %79 = vector.load %arg6[%c0_70, %c37] : memref<4x326xbf16, #tpu.memory_space<vmem>>, vector<4x288xbf16>
    %c0_71 = arith.constant 0 : index
    %c38 = arith.constant 38 : index
    %80 = vector.load %arg6[%c0_71, %c38] : memref<4x326xbf16, #tpu.memory_space<vmem>>, vector<4x288xbf16>
    %81 = tpu.concatenate %72, %73, %74, %75, %76, %77, %78, %79, %80 in 0 : vector<4x288xbf16>, vector<4x288xbf16>, vector<4x288xbf16>, vector<4x288xbf16>, vector<4x288xbf16>, vector<4x288xbf16>, vector<4x288xbf16>, vector<4x288xbf16>, vector<4x288xbf16> -> vector<36x288xbf16>
    %cst_72 = arith.constant dense<0.000000e+00> : vector<4x288xf32>
    %82 = tpu.matmul %71, %81, %cst_72 {dimension_numbers = #tpu.dot_dimension_numbers<[1], [0], [0], [1], [0, 0, 1, 1], [], []>} : vector<4x36xbf16>, vector<36x288xbf16>, vector<4x288xf32> -> vector<4x288xf32>
    %83 = vector.broadcast %69 : vector<4x1xf32> to vector<4x288xf32>
    %84 = arith.mulf %82, %83 : vector<4x288xf32>
    %85 = vector.broadcast %70 : vector<4x1xf32> to vector<4x288xf32>
    %86 = arith.addf %84, %85 : vector<4x288xf32>
    %cst_73 = arith.constant 0.000000e+00 : f32
    %87 = vector.broadcast %cst_73 : f32 to vector<4x288xf32>
    %88 = arith.maximumf %86, %87 : vector<4x288xf32>
    %89 = vector.extract_strided_slice %88 {offsets = [0, 0], sizes = [4, 16], strides = [1, 1]} : vector<4x288xf32> to vector<4x16xf32>
    %c0_74 = arith.constant 0 : index
    %c0_75 = arith.constant 0 : index
    %c0_76 = arith.constant 0 : index
    %90 = vector.load %arg5[%c0_74, %c0_75, %c0_76] : memref<1x4x256xf32, #tpu.memory_space<vmem>>, vector<1x4x16xf32>
    %91 = vector.shape_cast %90 : vector<1x4x16xf32> to vector<4x16xf32>
    %92 = vector.shape_cast %89 : vector<4x16xf32> to vector<1x4x16xf32>
    tpu.vector_store %arg5[%c0_74, %c0_75, %c0_76], %92 {strides = array<i32>} : memref<1x4x256xf32, #tpu.memory_space<vmem>>, vector<1x4x16xf32>,
    %93 = vector.extract_strided_slice %88 {offsets = [0, 18], sizes = [4, 16], strides = [1, 1]} : vector<4x288xf32> to vector<4x16xf32>
    %c0_77 = arith.constant 0 : index
    %c0_78 = arith.constant 0 : index
    %c16_79 = arith.constant 16 : index
    %94 = vector.load %arg5[%c0_77, %c0_78, %c16_79] : memref<1x4x256xf32, #tpu.memory_space<vmem>>, vector<1x4x16xf32>
    %95 = vector.shape_cast %94 : vector<1x4x16xf32> to vector<4x16xf32>
    %96 = vector.shape_cast %93 : vector<4x16xf32> to vector<1x4x16xf32>
    tpu.vector_store %arg5[%c0_77, %c0_78, %c16_79], %96 {strides = array<i32>} : memref<1x4x256xf32, #tpu.memory_space<vmem>>, vector<1x4x16xf32>,
    %97 = vector.extract_strided_slice %88 {offsets = [0, 36], sizes = [4, 16], strides = [1, 1]} : vector<4x288xf32> to vector<4x16xf32>
    %c0_80 = arith.constant 0 : index
    %c0_81 = arith.constant 0 : index
    %c32_82 = arith.constant 32 : index
    %98 = vector.load %arg5[%c0_80, %c0_81, %c32_82] : memref<1x4x256xf32, #tpu.memory_space<vmem>>, vector<1x4x16xf32>
    %99 = vector.shape_cast %98 : vector<1x4x16xf32> to vector<4x16xf32>
    %100 = vector.shape_cast %97 : vector<4x16xf32> to vector<1x4x16xf32>
    tpu.vector_store %arg5[%c0_80, %c0_81, %c32_82], %100 {strides = array<i32>} : memref<1x4x256xf32, #tpu.memory_space<vmem>>, vector<1x4x16xf32>,
    %101 = vector.extract_strided_slice %88 {offsets = [0, 54], sizes = [4, 16], strides = [1, 1]} : vector<4x288xf32> to vector<4x16xf32>
    %c0_83 = arith.constant 0 : index
    %c0_84 = arith.constant 0 : index
    %c48_85 = arith.constant 48 : index
    %102 = vector.load %arg5[%c0_83, %c0_84, %c48_85] : memref<1x4x256xf32, #tpu.memory_space<vmem>>, vector<1x4x16xf32>
    %103 = vector.shape_cast %102 : vector<1x4x16xf32> to vector<4x16xf32>
    %104 = vector.shape_cast %101 : vector<4x16xf32> to vector<1x4x16xf32>
    tpu.vector_store %arg5[%c0_83, %c0_84, %c48_85], %104 {strides = array<i32>} : memref<1x4x256xf32, #tpu.memory_space<vmem>>, vector<1x4x16xf32>,
    %105 = vector.extract_strided_slice %88 {offsets = [0, 72], sizes = [4, 16], strides = [1, 1]} : vector<4x288xf32> to vector<4x16xf32>
    %c0_86 = arith.constant 0 : index
    %c0_87 = arith.constant 0 : index
    %c64_88 = arith.constant 64 : index
    %106 = vector.load %arg5[%c0_86, %c0_87, %c64_88] : memref<1x4x256xf32, #tpu.memory_space<vmem>>, vector<1x4x16xf32>
    %107 = vector.shape_cast %106 : vector<1x4x16xf32> to vector<4x16xf32>
    %108 = vector.shape_cast %105 : vector<4x16xf32> to vector<1x4x16xf32>
    tpu.vector_store %arg5[%c0_86, %c0_87, %c64_88], %108 {strides = array<i32>} : memref<1x4x256xf32, #tpu.memory_space<vmem>>, vector<1x4x16xf32>,
    %109 = vector.extract_strided_slice %88 {offsets = [0, 90], sizes = [4, 16], strides = [1, 1]} : vector<4x288xf32> to vector<4x16xf32>
    %c0_89 = arith.constant 0 : index
    %c0_90 = arith.constant 0 : index
    %c80_91 = arith.constant 80 : index
    %110 = vector.load %arg5[%c0_89, %c0_90, %c80_91] : memref<1x4x256xf32, #tpu.memory_space<vmem>>, vector<1x4x16xf32>
    %111 = vector.shape_cast %110 : vector<1x4x16xf32> to vector<4x16xf32>
    %112 = vector.shape_cast %109 : vector<4x16xf32> to vector<1x4x16xf32>
    tpu.vector_store %arg5[%c0_89, %c0_90, %c80_91], %112 {strides = array<i32>} : memref<1x4x256xf32, #tpu.memory_space<vmem>>, vector<1x4x16xf32>,
    %113 = vector.extract_strided_slice %88 {offsets = [0, 108], sizes = [4, 16], strides = [1, 1]} : vector<4x288xf32> to vector<4x16xf32>
    %c0_92 = arith.constant 0 : index
    %c0_93 = arith.constant 0 : index
    %c96_94 = arith.constant 96 : index
    %114 = vector.load %arg5[%c0_92, %c0_93, %c96_94] : memref<1x4x256xf32, #tpu.memory_space<vmem>>, vector<1x4x16xf32>
    %115 = vector.shape_cast %114 : vector<1x4x16xf32> to vector<4x16xf32>
    %116 = vector.shape_cast %113 : vector<4x16xf32> to vector<1x4x16xf32>
    tpu.vector_store %arg5[%c0_92, %c0_93, %c96_94], %116 {strides = array<i32>} : memref<1x4x256xf32, #tpu.memory_space<vmem>>, vector<1x4x16xf32>,
    %117 = vector.extract_strided_slice %88 {offsets = [0, 126], sizes = [4, 16], strides = [1, 1]} : vector<4x288xf32> to vector<4x16xf32>
    %c0_95 = arith.constant 0 : index
    %c0_96 = arith.constant 0 : index
    %c112_97 = arith.constant 112 : index
    %118 = vector.load %arg5[%c0_95, %c0_96, %c112_97] : memref<1x4x256xf32, #tpu.memory_space<vmem>>, vector<1x4x16xf32>
    %119 = vector.shape_cast %118 : vector<1x4x16xf32> to vector<4x16xf32>
    %120 = vector.shape_cast %117 : vector<4x16xf32> to vector<1x4x16xf32>
    tpu.vector_store %arg5[%c0_95, %c0_96, %c112_97], %120 {strides = array<i32>} : memref<1x4x256xf32, #tpu.memory_space<vmem>>, vector<1x4x16xf32>,
    %121 = vector.extract_strided_slice %88 {offsets = [0, 144], sizes = [4, 16], strides = [1, 1]} : vector<4x288xf32> to vector<4x16xf32>
    %c0_98 = arith.constant 0 : index
    %c0_99 = arith.constant 0 : index
    %c128_100 = arith.constant 128 : index
    %122 = vector.load %arg5[%c0_98, %c0_99, %c128_100] : memref<1x4x256xf32, #tpu.memory_space<vmem>>, vector<1x4x16xf32>
    %123 = vector.shape_cast %122 : vector<1x4x16xf32> to vector<4x16xf32>
    %124 = vector.shape_cast %121 : vector<4x16xf32> to vector<1x4x16xf32>
    tpu.vector_store %arg5[%c0_98, %c0_99, %c128_100], %124 {strides = array<i32>} : memref<1x4x256xf32, #tpu.memory_space<vmem>>, vector<1x4x16xf32>,
    %125 = vector.extract_strided_slice %88 {offsets = [0, 162], sizes = [4, 16], strides = [1, 1]} : vector<4x288xf32> to vector<4x16xf32>
    %c0_101 = arith.constant 0 : index
    %c0_102 = arith.constant 0 : index
    %c144_103 = arith.constant 144 : index
    %126 = vector.load %arg5[%c0_101, %c0_102, %c144_103] : memref<1x4x256xf32, #tpu.memory_space<vmem>>, vector<1x4x16xf32>
    %127 = vector.shape_cast %126 : vector<1x4x16xf32> to vector<4x16xf32>
    %128 = vector.shape_cast %125 : vector<4x16xf32> to vector<1x4x16xf32>
    tpu.vector_store %arg5[%c0_101, %c0_102, %c144_103], %128 {strides = array<i32>} : memref<1x4x256xf32, #tpu.memory_space<vmem>>, vector<1x4x16xf32>,
    %129 = vector.extract_strided_slice %88 {offsets = [0, 180], sizes = [4, 16], strides = [1, 1]} : vector<4x288xf32> to vector<4x16xf32>
    %c0_104 = arith.constant 0 : index
    %c0_105 = arith.constant 0 : index
    %c160_106 = arith.constant 160 : index
    %130 = vector.load %arg5[%c0_104, %c0_105, %c160_106] : memref<1x4x256xf32, #tpu.memory_space<vmem>>, vector<1x4x16xf32>
    %131 = vector.shape_cast %130 : vector<1x4x16xf32> to vector<4x16xf32>
    %132 = vector.shape_cast %129 : vector<4x16xf32> to vector<1x4x16xf32>
    tpu.vector_store %arg5[%c0_104, %c0_105, %c160_106], %132 {strides = array<i32>} : memref<1x4x256xf32, #tpu.memory_space<vmem>>, vector<1x4x16xf32>,
    %133 = vector.extract_strided_slice %88 {offsets = [0, 198], sizes = [4, 16], strides = [1, 1]} : vector<4x288xf32> to vector<4x16xf32>
    %c0_107 = arith.constant 0 : index
    %c0_108 = arith.constant 0 : index
    %c176_109 = arith.constant 176 : index
    %134 = vector.load %arg5[%c0_107, %c0_108, %c176_109] : memref<1x4x256xf32, #tpu.memory_space<vmem>>, vector<1x4x16xf32>
    %135 = vector.shape_cast %134 : vector<1x4x16xf32> to vector<4x16xf32>
    %136 = vector.shape_cast %133 : vector<4x16xf32> to vector<1x4x16xf32>
    tpu.vector_store %arg5[%c0_107, %c0_108, %c176_109], %136 {strides = array<i32>} : memref<1x4x256xf32, #tpu.memory_space<vmem>>, vector<1x4x16xf32>,
    %137 = vector.extract_strided_slice %88 {offsets = [0, 216], sizes = [4, 16], strides = [1, 1]} : vector<4x288xf32> to vector<4x16xf32>
    %c0_110 = arith.constant 0 : index
    %c0_111 = arith.constant 0 : index
    %c192_112 = arith.constant 192 : index
    %138 = vector.load %arg5[%c0_110, %c0_111, %c192_112] : memref<1x4x256xf32, #tpu.memory_space<vmem>>, vector<1x4x16xf32>
    %139 = vector.shape_cast %138 : vector<1x4x16xf32> to vector<4x16xf32>
    %140 = vector.shape_cast %137 : vector<4x16xf32> to vector<1x4x16xf32>
    tpu.vector_store %arg5[%c0_110, %c0_111, %c192_112], %140 {strides = array<i32>} : memref<1x4x256xf32, #tpu.memory_space<vmem>>, vector<1x4x16xf32>,
    %141 = vector.extract_strided_slice %88 {offsets = [0, 234], sizes = [4, 16], strides = [1, 1]} : vector<4x288xf32> to vector<4x16xf32>
    %c0_113 = arith.constant 0 : index
    %c0_114 = arith.constant 0 : index
    %c208_115 = arith.constant 208 : index
    %142 = vector.load %arg5[%c0_113, %c0_114, %c208_115] : memref<1x4x256xf32, #tpu.memory_space<vmem>>, vector<1x4x16xf32>
    %143 = vector.shape_cast %142 : vector<1x4x16xf32> to vector<4x16xf32>
    %144 = vector.shape_cast %141 : vector<4x16xf32> to vector<1x4x16xf32>
    tpu.vector_store %arg5[%c0_113, %c0_114, %c208_115], %144 {strides = array<i32>} : memref<1x4x256xf32, #tpu.memory_space<vmem>>, vector<1x4x16xf32>,
    %145 = vector.extract_strided_slice %88 {offsets = [0, 252], sizes = [4, 16], strides = [1, 1]} : vector<4x288xf32> to vector<4x16xf32>
    %c0_116 = arith.constant 0 : index
    %c0_117 = arith.constant 0 : index
    %c224_118 = arith.constant 224 : index
    %146 = vector.load %arg5[%c0_116, %c0_117, %c224_118] : memref<1x4x256xf32, #tpu.memory_space<vmem>>, vector<1x4x16xf32>
    %147 = vector.shape_cast %146 : vector<1x4x16xf32> to vector<4x16xf32>
    %148 = vector.shape_cast %145 : vector<4x16xf32> to vector<1x4x16xf32>
    tpu.vector_store %arg5[%c0_116, %c0_117, %c224_118], %148 {strides = array<i32>} : memref<1x4x256xf32, #tpu.memory_space<vmem>>, vector<1x4x16xf32>,
    %149 = vector.extract_strided_slice %88 {offsets = [0, 270], sizes = [4, 16], strides = [1, 1]} : vector<4x288xf32> to vector<4x16xf32>
    %c0_119 = arith.constant 0 : index
    %c0_120 = arith.constant 0 : index
    %c240_121 = arith.constant 240 : index
    %150 = vector.load %arg5[%c0_119, %c0_120, %c240_121] : memref<1x4x256xf32, #tpu.memory_space<vmem>>, vector<1x4x16xf32>
    %151 = vector.shape_cast %150 : vector<1x4x16xf32> to vector<4x16xf32>
    %152 = vector.shape_cast %149 : vector<4x16xf32> to vector<1x4x16xf32>
    tpu.vector_store %arg5[%c0_119, %c0_120, %c240_121], %152 {strides = array<i32>} : memref<1x4x256xf32, #tpu.memory_space<vmem>>, vector<1x4x16xf32>,
    return
  }
  func.func @transform_0(%arg0: i32) -> (i32, i32, i32) {
    %c0_i32 = arith.constant 0 : i32
    %c0_i32_0 = arith.constant 0 : i32
    %c0_i32_1 = arith.constant 0 : i32
    return %arg0, %c0_i32, %c0_i32_0 : i32, i32, i32
  }
  func.func @transform_1(%arg0: i32) -> (i32, i32) {
    %c0_i32 = arith.constant 0 : i32
    %c0_i32_0 = arith.constant 0 : i32
    %c0_i32_1 = arith.constant 0 : i32
    return %c0_i32, %c0_i32_0 : i32, i32
  }
  func.func @transform_2(%arg0: i32) -> (i32, i32) {
    %c0_i32 = arith.constant 0 : i32
    %c0_i32_0 = arith.constant 0 : i32
    %c0_i32_1 = arith.constant 0 : i32
    return %c0_i32, %c0_i32_0 : i32, i32
  }
  func.func @transform_3(%arg0: i32) -> (i32, i32) {
    %c0_i32 = arith.constant 0 : i32
    %c0_i32_0 = arith.constant 0 : i32
    %c0_i32_1 = arith.constant 0 : i32
    return %c0_i32, %c0_i32_0 : i32, i32
  }
  func.func @transform_4(%arg0: i32) -> (i32, i32, i32) {
    %c0_i32 = arith.constant 0 : i32
    %c0_i32_0 = arith.constant 0 : i32
    %c0_i32_1 = arith.constant 0 : i32
    return %arg0, %c0_i32, %c0_i32_0 : i32, i32, i32
  }
}

</mosaic_0001>

<bundles_post_ra>
// kernel: up_forward.3
= control target key start
LH: loop header
LB: loop body
LE: loop exit
PB: predicated region body
PF: predicated region fallthrough
CT: control target
= control target key end

     0   :  { %s1228_s15 = smov 0   ;;  %s1409_s0 = inlined_call_operand.vmem [shape: bf16[2,4,256], index: 0, kind: input, shape index: {}]   ;;  %s1410_s1 = inlined_call_operand.vmem [shape: bf16[4,36], index: 1, kind: input, shape index: {}]   ;;  %s1411_s2 = inlined_call_operand.vmem [shape: f32[4,1], index: 2, kind: input, shape index: {}]   ;;  %s1412_s3 = inlined_call_operand.vmem [shape: f32[4,1], index: 3, kind: input, shape index: {}]   ;;  %s1413_s4 = inlined_call_operand.vmem [shape: f32[2,4,256], index: 4, kind: output, shape index: {}]  }
   0x1 LB: > { %s1051_s16 = sadd.s32 4294967295, %s1158_s15   ;;  %p1055_p0 = scmp.ge.s32.totalorder %s1158_s15, 1  ;;  %s1158_s15 = sphi %s1228_s15, %s14_s15  }
   0x2   : > { %p162_p1 = scmp.lt.s32.totalorder %s1158_s15, 3 }
   0x4   : > { %p163_p2 = pnand %p1055_p0, %p162_p1 }
   0x5   : > { %p188_p3 = scmp.lt.s32.totalorder (!%p163_p2), %s1051_s16, 1  ;;  %s1160_s21 = smov (!%p163_p2), 1   ;;  %vm199_vm0 = vcmask (!%p163_p2), 140288   ;;  %v1168_v2 = vmov (!%p163_p2), 0   ;;  %v1169_v3 = vmov (!%p163_p2), 1983009808   ;;  %v224_v5 = vlaneseq (!%p163_p2) }
   0x6   : > { %166 = sbr.rel (%p163_p2) target bundleno = 819 (0x333), region = 36  ;;  %s1161_s22 = smov (!%p163_p2), 97   ;;  %200 = vst.msk [vmem:[#allocation2] sm:$0x3] (!%p163_p2), %vm199_vm0, %v1168_v2  ;;  %848 = vmatprep.mubr.bf16.mxu0 (!%p163_p2), %v1168_v2  ;;  %1148 = vset.pattern.permute.xlu0 (!%p163_p2), %v1168_v2  ;;  %v222_v4 = vunpack.c.l.s4 (!%p163_p2), %v1169_v3  ;;  %vm214_vm1 = vcmask (!%p163_p2), 7168   ;;  %vm218_vm2 = vcmask (!%p163_p2), 138240  }
   0x7   : > { %s1162_s23 = smov (!%p163_p2), 113   ;;  %s1163_s24 = smov (!%p163_p2), 81   ;;  %1149 = vset.pattern.permute.xlu1 (!%p163_p2), %v1168_v2  ;;  %v225_v7 = vshrl.u32 (!%p163_p2), %v224_v5, 7  ;;  %vm201_vm3 = vcmask (!%p163_p2), 566672   ;;  %vm231_vm4 = vcmask (!%p163_p2), 287888   ;;  %vm258_vm5 = vcmask (!%p163_p2), 435488  }
   0x8   : > { %s1164_s25 = smov (!%p163_p2), 33   ;;  %s1165_s26 = smov (!%p163_p2), 65   ;;  %v223_v6 = vunpack.c.0.s8 (!%p163_p2), %v222_v4  ;;  %202 = vst.msk [vmem:[#allocation2 + $0x4] sm:$0x3] (!%p163_p2), %vm201_vm3, %v1168_v2  ;;  %vm285_vm6 = vcmask (!%p163_p2), 583088   ;;  %vm312_vm7 = vcmask (!%p163_p2), 730688  }
   0x9   : > { %s1166_s27 = smov (!%p163_p2), 49   ;;  %s1167_s28 = smov (!%p163_p2), 17   ;;  %vm396_vm8 = vcmask (!%p163_p2), 1042416   ;;  %vm397_vm9 = vcmask (!%p163_p2), 125954   ;;  %vm339_vm10 = vcmask (!%p163_p2), 878288   ;;  %vm393_vm11 = vcmask (!%p163_p2), 1031168  }
   0xa   : > { %v1246_v8 = vsub.s32 (!%p163_p2), %v223_v6, %v225_v7  ;;  %s1170_s29 = smov (!%p163_p2), 18   ;;  %s1171_s30 = smov (!%p163_p2), 54   ;;  %vm366_vm12 = vcmask (!%p163_p2), 1025888   ;;  %vm398_vm13 = vmor (!%p163_p2), %vm397_vm9, %vm396_vm8  ;;  %vm425_vm14 = vcmask (!%p163_p2), 271488   ;;  %vm452_vm15 = vcmask (!%p163_p2), 419088  }
   0xb   : > { %s1172_s5 = smov (!%p163_p2), 36   ;;  %s1173_s6 = smov (!%p163_p2), 72   ;;  %vm479_vm0 = vcmask (!%p163_p2), 566688   ;;  %vm590_vm3 = vcmask (!%p163_p2), 1042400   ;;  %vm619_vm8 = vcmask (!%p163_p2), 255088   ;;  %vm646_vm9 = vcmask (!%p163_p2), 402688  }
   0xc   : > { %s1174_s7 = smov (!%p163_p2), 126   ;;  %s1175_s8 = smov (!%p163_p2), 90  }
   0xd   : > { %s1415_s16 = smov (!%p188_p3, %s1051_s16), 1  ;;  %s1176_s9 = smov 108  }
   0xe   : > { %s1081_s17 = sshll.u32 %s1415_s16, 2  ;;  %s1177_s10 = smov 16  }
   0xf   : > { %s192_s20 = scalar_lea.vmem %s1409_s0, %s1081_s17  ;;  %s1178_s11 = smov 34  }
  0x10   : > { %v1060_v0 = vld.sshfl [vmem:[%s192_s20] sm:$0x3 pattern:$0x76325410]  ;;  %s1179_s12 = smov 52   ;;  %s1180_s13 = smov 70  }
  0x11   : > { %212 = vrot.lane.b32.xlu0 %v1060_v0, %s1160_s21  ;;  %269 = vrot.lane.b32.xlu1 %v1060_v0, %s1161_s22  ;;  %v1068_v1 = vld.sshfl [vmem:[%s192_s20 + $0x2] sm:$0x3 pattern:$0x76325410]  ;;  %s1181_s14 = smov 124   ;;  %s1182_s17 = smov 88  }
  0x12   : > { %s1183_s18 = smov 106   ;;  %s1184_s19 = smov 14  }
  0x13   : > { %s1185_s20 = smov 32  }
  0x15   : > { %242 = vrot.lane.b32.xlu0 %v1060_v0, %s1162_s23  ;;  %296 = vrot.lane.b32.xlu1 %v1060_v0, %s1163_s24 }
  0x19   : > { %377 = vrot.lane.b32.xlu0 %v1060_v0, %s1164_s25  ;;  %323 = vrot.lane.b32.xlu1 %v1060_v0, %s1165_s26 }
  0x1d   : > { %350 = vrot.lane.b32.xlu0 %v1060_v0, %s1166_s27  ;;  %409 = vrot.lane.b32.xlu1 %v1060_v0, %s1167_s28 }
  0x21   : > { %436 = vrot.lane.b32.xlu0 %v1068_v1, %s1160_s21  ;;  %463 = vrot.lane.b32.xlu1 %v1068_v1, %s1162_s23  ;;  %s1186_s21 = smov 127   ;;  %s1188_s23 = smov 109  }
  0x25   : > { %490 = vrot.lane.b32.xlu0 %v1068_v1, %s1161_s22  ;;  %571 = vrot.lane.b32.xlu1 %v1068_v1, %s1166_s27  ;;  %s1187_s22 = smov 110  }
  0x29   : > { %517 = vrot.lane.b32.xlu0 %v1068_v1, %s1163_s24  ;;  %544 = vrot.lane.b32.xlu1 %v1068_v1, %s1165_s26  ;;  %s1189_s24 = smov 92  }
  0x2d   : > { %603 = vrot.lane.b32.xlu0 %v1068_v1, %s1164_s25  ;;  %630 = vrot.lane.b32.xlu1 %v1068_v1, %s1167_s28  ;;  %s1191_s25 = smov 91  }
  0x83   : > { %v213_v9 = vpop.permute.xlu0 %212  ;;  %v270_v10 = vpop.permute.xlu1 %269 }
  0x84   : > { %v217_v11 = vsel %vm214_vm1, 0, %v213_v9  ;;  %v272_v12 = vsel %vm214_vm1, 0, %v270_v10 }
  0x85   : > { %v219_v13 = vsel %vm218_vm2, %v217_v11, 0  ;;  %v273_v14 = vsel %vm218_vm2, %v272_v12, 0 }
  0x86   : > { %v227_v15 = vrot.slane %v219_v13, %v1246_v8  ;;  %v281_v18 = vrot.slane %v273_v14, %v1246_v8 }
  0x87   : > { %v243_v16 = vpop.permute.xlu0 %242  ;;  %v297_v17 = vpop.permute.xlu1 %296 }
  0x88   : > { %v245_v19 = vsel %vm214_vm1, 0, %v243_v16  ;;  %228 = vrot.lane.b32.xlu0 %v227_v15, %s1170_s29  ;;  %v299_v20 = vsel %vm214_vm1, 0, %v297_v17 }
  0x89   : > { %v246_v21 = vsel %vm218_vm2, %v245_v19, 0  ;;  %v300_v22 = vsel %vm218_vm2, %v299_v20, 0 }
  0x8a   : > { %v254_v23 = vrot.slane %v246_v21, %v1246_v8  ;;  %v308_v26 = vrot.slane %v300_v22, %v1246_v8 }
  0x8b   : > { %v378_v24 = vpop.permute.xlu0 %377  ;;  %v324_v25 = vpop.permute.xlu1 %323 }
  0x8c   : > { %282 = vrot.lane.b32.xlu0 %v281_v18, %s1171_s30  ;;  %255 = vrot.lane.b32.xlu1 %v254_v23, %s1172_s5  ;;  %v380_v27 = vsel %vm214_vm1, 0, %v378_v24  ;;  %v326_v28 = vsel %vm214_vm1, 0, %v324_v25 }
  0x8d   : > { %v381_v29 = vsel %vm218_vm2, %v380_v27, 0  ;;  %v327_v30 = vsel %vm218_vm2, %v326_v28, 0 }
  0x8e   : > { %v389_v31 = vrot.slane %v381_v29, %v1246_v8  ;;  %v335_v34 = vrot.slane %v327_v30, %v1246_v8 }
  0x8f   : > { %v351_v32 = vpop.permute.xlu0 %350  ;;  %v410_v33 = vpop.permute.xlu1 %409 }
  0x90   : > { %309 = vrot.lane.b32.xlu1 %v308_v26, %s1173_s6  ;;  %v353_v35 = vsel %vm214_vm1, 0, %v351_v32  ;;  %390 = vrot.lane.b32.xlu0 %v389_v31, %s1174_s7  ;;  %v412_v36 = vsel %vm214_vm1, 0, %v410_v33  ;;  %s1082_s6 = sshll.u32 %s1415_s16, 3  ;;  %s1194_s16 = smov 112  }
  0x91   : > { %v354_v37 = vsel %vm218_vm2, %v353_v35, 0  ;;  %v413_v38 = vsel %vm218_vm2, %v412_v36, 0 }
  0x92   : > { %v362_v39 = vrot.slane %v354_v37, %v1246_v8  ;;  %v421_v42 = vrot.slane %v413_v38, %v1246_v8  ;;  %v1190_v37 = vmov 0.0  }
  0x93   : > { %v437_v40 = vpop.permute.xlu0 %436  ;;  %v464_v41 = vpop.permute.xlu1 %463  ;;  %1087 = vmatprep.subr.bf16.mxu1 %v1190_v37 }
  0x94   : > { %336 = vrot.lane.b32.xlu1 %v335_v34, %s1175_s8  ;;  %363 = vrot.lane.b32.xlu0 %v362_v39, %s1176_s9  ;;  %v439_v43 = vsel %vm214_vm1, 0, %v437_v40  ;;  %v466_v44 = vsel %vm214_vm1, 0, %v464_v41  ;;  %v648_v41 = vld [vmem:[%s1411_s2] sm:$0xf] }
  0x95   : > { %v440_v45 = vsel %vm218_vm2, %v439_v43, 0  ;;  %v467_v46 = vsel %vm218_vm2, %v466_v44, 0 }
  0x96   : > { %v448_v47 = vrot.slane %v440_v45, %v1246_v8  ;;  %v475_v50 = vrot.slane %v467_v46, %v1246_v8 }
  0x97   : > { %v491_v48 = vpop.permute.xlu0 %490  ;;  %v572_v49 = vpop.permute.xlu1 %571 }
  0x98   : > { %422 = vrot.lane.b32.xlu1 %v421_v42, %s1177_s10  ;;  %v493_v51 = vsel %vm214_vm1, 0, %v491_v48  ;;  %v574_v52 = vsel %vm214_vm1, 0, %v572_v49  ;;  %449 = vrot.lane.b32.xlu0 %v448_v47, %s1178_s11  ;;  %v649_v42 = vld [vmem:[%s1412_s3] sm:$0xf]  ;;  %s1377_s11 = scalar_lea.vmem %s1413_s4, %s1082_s6 }
  0x99   : > { %v494_v53 = vsel %vm218_vm2, %v493_v51, 0  ;;  %v575_v54 = vsel %vm218_vm2, %v574_v52, 0 }
  0x9a   : > { %v502_v55 = vrot.slane %v494_v53, %v1246_v8  ;;  %v583_v58 = vrot.slane %v575_v54, %v1246_v8 }
  0x9b   : > { %v518_v56 = vpop.permute.xlu0 %517  ;;  %v545_v57 = vpop.permute.xlu1 %544 }
  0x9c   : > { %476 = vrot.lane.b32.xlu1 %v475_v50, %s1179_s12  ;;  %v520_v59 = vsel %vm214_vm1, 0, %v518_v56  ;;  %v547_v60 = vsel %vm214_vm1, 0, %v545_v57  ;;  %503 = vrot.lane.b32.xlu0 %v502_v55, %s1180_s13  ;;  %s1193_s12 = smov 120   ;;  %s1195_s13 = smov 122  }
  0x9d   : > { %v521_v61 = vsel %vm218_vm2, %v520_v59, 0  ;;  %v548_v62 = vsel %vm218_vm2, %v547_v60, 0 }
  0x9e   : > { %v529_v63 = vrot.slane %v521_v61, %v1246_v8  ;;  %v556_v2 = vrot.slane %v548_v62, %v1246_v8 }
  0x9f   : > { %v604_v0 = vpop.permute.xlu0 %603  ;;  %v631_v1 = vpop.permute.xlu1 %630 }
  0xa0   : > { %584 = vrot.lane.b32.xlu1 %v583_v58, %s1181_s14  ;;  %v606_v3 = vsel %vm214_vm1, 0, %v604_v0  ;;  %v633_v4 = vsel %vm214_vm1, 0, %v631_v1  ;;  %530 = vrot.lane.b32.xlu0 %v529_v63, %s1182_s17  ;;  %vm506_vm1 = vcmask 714288   ;;  %s1196_s17 = smov 118  }
  0xa1   : > { %v607_v5 = vsel %vm218_vm2, %v606_v3, 0  ;;  %v634_v6 = vsel %vm218_vm2, %v633_v4, 0  ;;  %vm533_vm2 = vcmask 861888  }
  0xa2   : > { %v615_v7 = vrot.slane %v607_v5, %v1246_v8  ;;  %v642_v9 = vrot.slane %v634_v6, %v1246_v8 }
  0xa4   : > { %557 = vrot.lane.b32.xlu1 %v556_v2, %s1183_s18  ;;  %616 = vrot.lane.b32.xlu0 %v615_v7, %s1184_s19  ;;  %s1198_s19 = smov 104  }
  0xa8   : > { %643 = vrot.lane.b32.xlu1 %v642_v9, %s1185_s20  ;;  %s1199_s20 = smov 114  }
  0xfa   : > { %v229_v10 = vpop.permute.xlu0 %228 }
  0xfb   : > { %232 = vst.msk [vmem:[#allocation2] sm:$0x3] %vm231_vm4, %v229_v10  ;;  %vm591_vm4 = vcmask 109570  }
  0xfe   : > { %v256_v11 = vpop.permute.xlu1 %255  ;;  %v283_v12 = vpop.permute.xlu0 %282 }
  0xff   : > { %259 = vst.msk [vmem:[#allocation2] sm:$0x3] %vm258_vm5, %v256_v11  ;;  %vm587_vm5 = vcmask 1014784  }
 0x100   : > { %286 = vst.msk [vmem:[#allocation2] sm:$0x3] %vm285_vm6, %v283_v12  ;;  %vm560_vm6 = vcmask 1009488  }
 0x102   : > { %v310_v13 = vpop.permute.xlu1 %309  ;;  %v391_v14 = vpop.permute.xlu0 %390 }
 0x103   : > { %313 = vst.msk [vmem:[#allocation2] sm:$0x3] %vm312_vm7, %v310_v13  ;;  %v392_v15 = vrot.slane %v391_v14, 6  ;;  %vm592_vm7 = vmor %vm591_vm4, %vm590_vm3  ;;  %vm731_vm3 = vcmask 752640   ;;  %vm749_vm4 = vcmask 736256  }
 0x105   : > { %v394_v18 = vsel %vm393_vm11, %v392_v15, %v391_v14 }
 0x106   : > { %v337_v16 = vpop.permute.xlu1 %336  ;;  %v364_v17 = vpop.permute.xlu0 %363 }
 0x107   : > { %340 = vst.msk [vmem:[#allocation2] sm:$0x3] %vm339_vm10, %v337_v16  ;;  %vm1192_vm10 = vmmov 0  }
 0x108   : > { %367 = vst.msk [vmem:[#allocation2] sm:$0x3] %vm366_vm12, %v364_v17  ;;  %1093 = vmatprep.mubr.msk.bf16.mxu1 %vm1192_vm10, %v1190_v37  ;;  %vm684_vm12 = vcmask 1039360   ;;  %vm937_vm10 = vcmask 650752  }
 0x109   : > { %399 = vst.msk [vmem:[#allocation2] sm:$0xf] %vm398_vm13, %v394_v18  ;;  %vm752_vm13 = vcmask 1041408  }
 0x10a   : > { %v423_v19 = vpop.permute.xlu1 %422  ;;  %v450_v20 = vpop.permute.xlu0 %449 }
 0x10b   : > { %426 = vst.msk [vmem:[#allocation2 + $0x2] sm:$0x3] %vm425_vm14, %v423_v19  ;;  %vm704_vm14 = vcmask 900096  }
 0x10c   : > { %453 = vst.msk [vmem:[#allocation2 + $0x2] sm:$0x3] %vm452_vm15, %v450_v20  ;;  %vm769_vm15 = vcmask 1045504  }
 0x10e   : > { %v477_v21 = vpop.permute.xlu1 %476  ;;  %v504_v22 = vpop.permute.xlu0 %503 }
 0x10f   : > { %480 = vst.msk [vmem:[#allocation2 + $0x2] sm:$0x3] %vm479_vm0, %v477_v21  ;;  %vm762_vm0 = vcmask 1043456  }
 0x110   : > { %507 = vst.msk [vmem:[#allocation2 + $0x2] sm:$0x3] %vm506_vm1, %v504_v22  ;;  %vm713_vm1 = vcmask 891904  }
 0x112   : > { %v585_v23 = vpop.permute.xlu1 %584  ;;  %v531_v24 = vpop.permute.xlu0 %530 }
 0x113   : > { %v586_v25 = vrot.slane %v585_v23, 6  ;;  %534 = vst.msk [vmem:[#allocation2 + $0x2] sm:$0x3] %vm533_vm2, %v531_v24  ;;  %vm722_vm2 = vcmask 883712  }
 0x115   : > { %v588_v28 = vsel %vm587_vm5, %v586_v25, %v585_v23  ;;  %vm803_vm5 = vcmask 293888  }
 0x116   : > { %v558_v26 = vpop.permute.xlu1 %557  ;;  %v617_v27 = vpop.permute.xlu0 %616 }
 0x117   : > { %561 = vst.msk [vmem:[#allocation2 + $0x2] sm:$0x3] %vm560_vm6, %v558_v26  ;;  %vm916_vm6 = vcmask 125952  }
 0x118   : > { %593 = vst.msk [vmem:[#allocation2 + $0x2] sm:$0xf] %vm592_vm7, %v588_v28  ;;  %vm922_vm7 = vcmask 257152  }
 0x119   : > { %620 = vst.msk [vmem:[#allocation2 + $0x4] sm:$0x3] %vm619_vm8, %v617_v27  ;;  %vm927_vm8 = vcmask 388352  }
 0x11a   : > { %v644_v29 = vpop.permute.xlu1 %643 }
 0x11b   : > { %647 = vst.msk [vmem:[#allocation2 + $0x4] sm:$0x3] %vm646_vm9, %v644_v29  ;;  %vm932_vm9 = vcmask 519552  }
 0x122   : > { %v651_v30 = vld [vmem:[#allocation2] sm:$0x3f] }
 0x123   : > { %v1304_v31 = vrot.slane %v651_v30, %v1246_v8  ;;  %v669_v32 = vcombine.low %v651_v30, %v651_v30  ;;  %v653_v34 = vcombine.high %v651_v30, %v651_v30 }
 0x125   : > { %720 = vrot.lane.b32.xlu0 %v1304_v31, %s1176_s9  ;;  %682 = vrot.lane.b32.xlu1 %v1304_v31, %s1186_s21  ;;  %v676_v33 = vrot.slane %v669_v32, %v1246_v8  ;;  %v667_v35 = vrot.slane %v653_v34, %v1246_v8  ;;  %v687_v36 = vcombine.low %v1304_v31, %v1304_v31 }
 0x126   : > { %v668_v8 = vcombine.high %v1304_v31, %v1304_v31 }
 0x127   : > { %v677_v38 = vcombine.high %v676_v33, %v676_v33  ;;  %v688_v39 = vcombine.low %v667_v35, %v667_v35  ;;  %v697_v40 = vcombine.low %v676_v33, %v676_v33 }
 0x129   : > { %678 = vrot.lane.b32.xlu0 %v676_v33, %s1186_s21  ;;  %691 = vrot.lane.b32.xlu1 %v1304_v31, %s1174_s7 }
 0x12d   : > { %700 = vrot.lane.b32.xlu0 %v676_v33, %s1187_s22  ;;  %707 = vrot.lane.b32.xlu1 %v1304_v31, %s1188_s23 }
 0x131   : > { %727 = vrot.lane.b32.xlu1 %v1304_v31, %s1189_s24  ;;  %711 = vrot.lane.b32.xlu0 %v667_v35, %s1188_s23 }
 0x135   : > { %689 = vrot.lane.b32.xlu1 %v687_v36, %s1174_s7  ;;  %716 = vrot.lane.b32.xlu0 %v676_v33, %s1176_s9 }
 0x139   : > { %702 = vrot.lane.b32.xlu1 %v687_v36, %s1187_s22  ;;  %736 = vrot.lane.b32.xlu0 %v676_v33, %s1191_s25 }
 0x13d   : > { %709 = vrot.lane.b32.xlu1 %v668_v8, %s1188_s23  ;;  %680 = vrot.lane.b32.xlu0 %v677_v38, %s1186_s21  ;;  %s1201_s21 = smov 116  }
 0x141   : > { %725 = vrot.lane.b32.xlu1 %v687_v36, %s1189_s24  ;;  %693 = vrot.lane.b32.xlu0 %v688_v39, %s1174_s7 }
 0x145   : > { %738 = vrot.lane.b32.xlu1 %v687_v36, %s1191_s25  ;;  %698 = vrot.lane.b32.xlu0 %v697_v40, %s1187_s22 }
 0x149   : > { %718 = vrot.lane.b32.xlu1 %v677_v38, %s1176_s9  ;;  %729 = vrot.lane.b32.xlu0 %v688_v39, %s1189_s24  ;;  %v650_v39 = vld [vmem:[%s1410_s1] sm:$0x3] }
 0x14d   : > { %743 = vrot.lane.b32.xlu1 %v1304_v31, %s1175_s8  ;;  %734 = vrot.lane.b32.xlu0 %v697_v40, %s1191_s25 }
 0x151   : > { %747 = vrot.lane.b32.xlu1 %v667_v35, %s1175_s8  ;;  %745 = vrot.lane.b32.xlu0 %v668_v8, %s1175_s8 }
 0x155   : > { %899 = vperm.xlu0 %1148, %v648_v41   ;;  %907 = vperm.xlu1 %1149, %v649_v42  }
 0x197   : > { %v721_v43 = vpop.permute.xlu0 %720  ;;  %v683_v44 = vpop.permute.xlu1 %682 }
 0x198   : > { %v761_v59 = vsel %vm752_vm13, %v667_v35, %v683_v44 }
 0x19b   : > { %v679_v45 = vpop.permute.xlu0 %678  ;;  %v692_v46 = vpop.permute.xlu1 %691 }
 0x19f   : > { %v701_v47 = vpop.permute.xlu0 %700  ;;  %v708_v48 = vpop.permute.xlu1 %707 }
 0x1a3   : > { %v728_v49 = vpop.permute.xlu1 %727  ;;  %v712_v50 = vpop.permute.xlu0 %711 }
 0x1a4   : > { %v787_v13 = vsel %vm752_vm13, %v712_v50, %v721_v43 }
 0x1a7   : > { %v690_v51 = vpop.permute.xlu1 %689  ;;  %v717_v52 = vpop.permute.xlu0 %716 }
 0x1a8   : > { %v695_v6 = vsel %vm393_vm11, %v690_v51, %v692_v46 }
 0x1ab   : > { %v703_v53 = vpop.permute.xlu1 %702  ;;  %v737_v54 = vpop.permute.xlu0 %736 }
 0x1ac   : > { %v706_v1 = vsel %vm704_vm14, %v701_v47, %v703_v53 }
 0x1af   : > { %v710_v55 = vpop.permute.xlu1 %709  ;;  %v681_v56 = vpop.permute.xlu0 %680 }
 0x1b0   : > { %v686_v57 = vsel %vm684_vm12, %v681_v56, %v683_v44  ;;  %v685_v58 = vsel %vm684_vm12, %v679_v45, %v681_v56  ;;  %v714_v14 = vsel %vm713_vm1, %v708_v48, %v710_v55  ;;  %v715_v15 = vsel %vm713_vm1, %v710_v55, %v712_v50 }
 0x1b1   : > { %v758_v62 = vsel %vm752_vm13, %v668_v8, %v686_v57  ;;  %v755_v2 = vsel %vm752_vm13, %v1304_v31, %v685_v58  ;;  %vm942_vm12 = vcmask 781952  }
 0x1b2   : > { %v764_v11 = vsel %vm762_vm0, %v755_v2, %v695_v6 }
 0x1b3   : > { %v726_v60 = vpop.permute.xlu1 %725  ;;  %v694_v61 = vpop.permute.xlu0 %693 }
 0x1b4   : > { %v696_v63 = vsel %vm393_vm11, %v692_v46, %v694_v61  ;;  %v768_v0 = vsel %vm762_vm0, %v761_v59, %v694_v61  ;;  %vm740_vm11 = vcmask 744448   ;;  %v732_v27 = vsel %vm731_vm3, %v726_v60, %v728_v49 }
 0x1b5   : > { %v777_v3 = vsel %vm769_vm15, %v768_v0, %v703_v53  ;;  %v766_v4 = vsel %vm762_vm0, %v758_v62, %v696_v63 }
 0x1b6   : > { %1088 = vmatpush3.bf16.msra.mxu1 %v777_v3  ;;  %v774_v5 = vsel %vm769_vm15, %v766_v4, %v706_v1 }
 0x1b7   : > { %v739_v7 = vpop.permute.xlu1 %738  ;;  %816 = vmatprep.subr.bf16.mxu0 %v774_v5  ;;  %v699_v9 = vpop.permute.xlu0 %698  ;;  %1089 = vmatprep.subr.bf16.mxu1 %v1190_v37 }
 0x1b8   : > { %v705_v10 = vsel %vm704_vm14, %v699_v9, %v701_v47  ;;  %v742_v25 = vsel %vm740_vm11, %v737_v54, %v739_v7  ;;  %vm954_vm14 = vcmask 932864  }
 0x1b9   : > { %v771_v12 = vsel %vm769_vm15, %v764_v11, %v705_v10 }
 0x1ba   : > { %817 = vmatpush1.bf16.msra.mxu0 %v771_v12 }
 0x1bb   : > { %v719_v16 = vpop.permute.xlu1 %718  ;;  %v730_v17 = vpop.permute.xlu0 %729 }
 0x1bc   : > { %v723_v18 = vsel %vm722_vm2, %v717_v52, %v719_v16  ;;  %v724_v19 = vsel %vm722_vm2, %v719_v16, %v721_v43  ;;  %v733_v20 = vsel %vm731_vm3, %v728_v49, %v730_v17  ;;  %v793_v21 = vsel %vm762_vm0, %v787_v13, %v730_v17 }
 0x1bd   : > { %v781_v22 = vsel %vm752_vm13, %v714_v14, %v723_v18  ;;  %v784_v23 = vsel %vm752_vm13, %v715_v15, %v724_v19  ;;  %v801_v24 = vsel %vm769_vm15, %v793_v21, %v739_v7 }
 0x1be   : > { %1090 = vmatpush3.bf16.msra.mxu1 %v801_v24  ;;  %v791_v26 = vsel %vm762_vm0, %v784_v23, %v733_v20  ;;  %v789_v32 = vsel %vm762_vm0, %v781_v22, %v732_v27  ;;  %vm957_vm0 = vcmask 1044352  }
 0x1bf   : > { %v744_v28 = vpop.permute.xlu1 %743  ;;  %v735_v29 = vpop.permute.xlu0 %734  ;;  %v798_v30 = vsel %vm769_vm15, %v791_v26, %v742_v25  ;;  %1091 = vmatprep.subr.bf16.mxu1 %v1190_v37 }
 0x1c0   : > { %v741_v31 = vsel %vm740_vm11, %v735_v29, %v737_v54  ;;  %818 = vmatprep.subr.bf16.mxu0 %v798_v30 }
 0x1c1   : > { %v795_v33 = vsel %vm769_vm15, %v789_v32, %v741_v31  ;;  %vm947_vm15 = vcmask 913152  }
 0x1c2   : > { %819 = vmatpush1.bf16.msra.mxu0 %v795_v33 }
 0x1c3   : > { %v748_v34 = vpop.permute.xlu1 %747  ;;  %v746_v35 = vpop.permute.xlu0 %745 }
 0x1c4   : > { %v750_v36 = vsel %vm749_vm4, %v744_v28, %v746_v35  ;;  %v751_v8 = vsel %vm749_vm4, %v746_v35, %v748_v34  ;;  %v814_v38 = vsel %vm752_vm13, %v748_v34, 0 }
 0x1c5   : > { %1076 = vmatprep.subr.msk.bf16.mxu0 %vm752_vm13, %v751_v8  ;;  %1092 = vmatpush3.bf16.msra.mxu1 %v814_v38  ;;  %v808_v37 = vsel %vm752_vm13, %v750_v36, 0  ;;  %vm988_vm13 = vcmask 818176  }
 0x1c6   : > { %821 = vmatpush1.bf16.msra.mxu0 %v808_v37 }
 0x1c8   : > { %1094 = vmatmul.mubr.msk.bf16.vlgmr.msra.gmra.mrb[0].mxu1 %vm803_vm5, %v650_v39 }
 0x1c9   : > { %1077 = vmatmul.mubr.msk.bf16.vlgmr.msra.gmra.mrb[0].mxu0 %vm803_vm5, %v650_v39 }
 0x1d4   : > { %v900_v40 = vpop.permute.xlu0 %899  ;;  %v908_v42 = vpop.permute.xlu1 %907 }
 0x29b   : > { %v891_v41 = vpop.f32.mrb[0].mxu1 }
 0x29c   : > { %v850_v43 = vpop.f32.mrb[0].mxu0  ;;  %v904_v44 = vmul.f32 %v900_v40, %v891_v41  ;;  %v1095_v45 = vpop.f32.mrb[1].mxu1 }
 0x29d   : > { %v902_v46 = vmul.f32 %v900_v40, %v850_v43  ;;  %v852_v47 = vpop.f32.mrb[1].mxu0  ;;  %v894_v48 = vpop.f32.mrb[2].mxu1 }
 0x29e   : > { %v903_v49 = vmul.f32 %v900_v40, %v852_v47  ;;  %v912_v50 = vadd.f32 %v908_v42, %v904_v44  ;;  %v854_v51 = vpop.f32.mrb[2].mxu0  ;;  %v1096_v52 = vpop.f32.mrb[3].mxu1 }
 0x29f   : > { %v910_v53 = vadd.f32 %v908_v42, %v902_v46  ;;  %v855_v54 = vpop.f32.mrb[3].mxu0 }
 0x2a0   : > { %v911_v55 = vadd.f32 %v908_v42, %v903_v49  ;;  %v915_v56 = vmax.f32 %v912_v50, 0.0 }
 0x2a1   : > { %v913_v57 = vmax.f32 %v910_v53, 0.0 }
 0x2a2   : > { %v914_v58 = vmax.f32 %v911_v55, 0.0 }
 0x2a3   : > { %934 = vrot.lane.b32.xlu1 %v913_v57, %s1193_s12  ;;  %919 = vrot.lane.b32.xlu0 %v913_v57, %s1174_s7  ;;  %917 = vst.msk [vmem:[%s1377_s11] sm:$0xf] %vm916_vm6, %v913_v57  ;;  %s1197_s7 = smov 100  }
 0x2a4   : > { %v984_v59 = vcombine.low %v914_v58, %v915_v56  ;;  %v950_v60 = vcombine.low %v913_v57, %v914_v58 }
 0x2a7   : > { %959 = vrot.lane.b32.xlu1 %v914_v58, %s1194_s16  ;;  %924 = vrot.lane.b32.xlu0 %v913_v57, %s1181_s14  ;;  %s1200_s14 = smov 102  }
 0x2ab   : > { %963 = vrot.lane.b32.xlu1 %v914_v58, %s1187_s22  ;;  %929 = vrot.lane.b32.xlu0 %v913_v57, %s1195_s13  ;;  %s1202_s22 = smov 98  }
 0x2af   : > { %967 = vrot.lane.b32.xlu1 %v914_v58, %s1176_s9  ;;  %939 = vrot.lane.b32.xlu0 %v913_v57, %s1196_s17 }
 0x2b3   : > { %971 = vrot.lane.b32.xlu1 %v914_v58, %s1183_s18  ;;  %985 = vrot.lane.b32.xlu0 %v984_v59, %s1197_s7 }
 0x2b7   : > { %975 = vrot.lane.b32.xlu1 %v914_v58, %s1198_s19  ;;  %951 = vrot.lane.b32.xlu0 %v950_v60, %s1199_s20 }
 0x2bb   : > { %979 = vrot.lane.b32.xlu1 %v914_v58, %s1200_s14  ;;  %944 = vrot.lane.b32.xlu0 %v913_v57, %s1201_s21 }
 0x2bf   : > { %992 = vrot.lane.b32.xlu1 %v915_v56, %s1202_s22 }
 0x315   : > { %v935_v61 = vpop.permute.xlu1 %934  ;;  %v920_v62 = vpop.permute.xlu0 %919 }
 0x316   : > { %923 = vst.msk [vmem:[%s1377_s11] sm:$0xf] %vm922_vm7, %v920_v62 }
 0x319   : > { %v960_v63 = vpop.permute.xlu1 %959  ;;  %v925_v0 = vpop.permute.xlu0 %924 }
 0x31a   : > { %962 = vst.msk [vmem:[%s1377_s11 + $0x4] sm:$0xf] %vm916_vm6, %v960_v63 }
 0x31b   : > { %928 = vst.msk [vmem:[%s1377_s11] sm:$0xf] %vm927_vm8, %v925_v0 }
 0x31d   : > { %v964_v1 = vpop.permute.xlu1 %963  ;;  %v930_v2 = vpop.permute.xlu0 %929 }
 0x31e   : > { %966 = vst.msk [vmem:[%s1377_s11 + $0x4] sm:$0xf] %vm922_vm7, %v964_v1 }
 0x31f   : > { %933 = vst.msk [vmem:[%s1377_s11] sm:$0xf] %vm932_vm9, %v930_v2 }
 0x320   : > { %938 = vst.msk [vmem:[%s1377_s11] sm:$0xf] %vm937_vm10, %v935_v61 }
 0x321   : > { %v968_v3 = vpop.permute.xlu1 %967  ;;  %v940_v4 = vpop.permute.xlu0 %939 }
 0x322   : > { %970 = vst.msk [vmem:[%s1377_s11 + $0x4] sm:$0xf] %vm927_vm8, %v968_v3 }
 0x323   : > { %943 = vst.msk [vmem:[%s1377_s11] sm:$0xf] %vm942_vm12, %v940_v4 }
 0x325   : > { %v972_v5 = vpop.permute.xlu1 %971  ;;  %v986_v6 = vpop.permute.xlu0 %985 }
 0x326   : > { %974 = vst.msk [vmem:[%s1377_s11 + $0x4] sm:$0xf] %vm932_vm9, %v972_v5  ;;  %v987_v10 = vrot.slane %v986_v6, 4 }
 0x328   : > { %v989_v14 = vsel %vm988_vm13, %v986_v6, %v987_v10 }
 0x329   : > { %v976_v7 = vpop.permute.xlu1 %975  ;;  %v952_v9 = vpop.permute.xlu0 %951 }
 0x32a   : > { %978 = vst.msk [vmem:[%s1377_s11 + $0x4] sm:$0xf] %vm937_vm10, %v976_v7  ;;  %v953_v11 = vrot.slane %v952_v9, 4 }
 0x32c   : > { %v955_v15 = vsel %vm954_vm14, %v952_v9, %v953_v11 }
 0x32d   : > { %v980_v12 = vpop.permute.xlu1 %979  ;;  %v945_v13 = vpop.permute.xlu0 %944 }
 0x32e   : > { %982 = vst.msk [vmem:[%s1377_s11 + $0x4] sm:$0xf] %vm942_vm12, %v980_v12 }
 0x32f   : > { %948 = vst.msk [vmem:[%s1377_s11] sm:$0xf] %vm947_vm15, %v945_v13  ;;  %991 = vst.msk [vmem:[%s1377_s11 + $0x4] sm:$0xf] %vm947_vm15, %v989_v14 }
 0x330   : > { %958 = vst.msk [vmem:[%s1377_s11] sm:$0xf] %vm957_vm0, %v955_v15 }
 0x331   : > { %v993_v16 = vpop.permute.xlu1 %992 }
 0x332   : > { %995 = vst.msk [vmem:[%s1377_s11 + $0x4] sm:$0xf] %vm957_vm0, %v993_v16 }
 0x333 PF: > { %s14_s15 = sadd.s32 1, %s1158_s15  }
 0x334   : > { %p11_p4 = scmp.ge.s32.totalorder %s14_s15, 4  }
 0x336   :  { %13 = sbr.rel (!%p11_p4) target bundleno = 1 (0x1), region = 66 }

// kernel: up_forward.2
= control target key start
LH: loop header
LB: loop body
LE: loop exit
PB: predicated region body
PF: predicated region fallthrough
CT: control target
= control target key end

     0   :  { %s2284_s27 = smov 0   ;;  %s2648_s0 = inlined_call_operand.vmem [shape: bf16[2,2,256], index: 0, kind: input, shape index: {}]   ;;  %s2649_s1 = inlined_call_operand.vmem [shape: bf16[2,4,64], index: 1, kind: input, shape index: {}]   ;;  %s2650_s2 = inlined_call_operand.vmem [shape: bf16[2,4], index: 2, kind: input, shape index: {}]   ;;  %s2651_s3 = inlined_call_operand.vmem [shape: f32[2,1], index: 3, kind: input, shape index: {}]   ;;  %s2652_s4 = inlined_call_operand.vmem [shape: bf16[8,16], index: 4, kind: input, shape index: {}]   ;;  %s2653_s5 = inlined_call_operand.vmem [shape: bf16[4,36], index: 5, kind: input, shape index: {}]   ;;  %s2654_s6 = inlined_call_operand.vmem [shape: f32[4,1], index: 6, kind: input, shape index: {}]   ;;  %s2655_s7 = inlined_call_operand.vmem [shape: f32[4,1], index: 7, kind: input, shape index: {}]   ;;  %s2656_s8 = inlined_call_operand.vmem [shape: bf16[2,4,256], index: 8, kind: output, shape index: {}]  }
   0x1 LB: > { %s1999_s28 = sadd.s32 4294967295, %s2191_s27   ;;  %p2003_p0 = scmp.ge.s32.totalorder %s2191_s27, 1  ;;  %s2191_s27 = sphi %s2284_s27, %s18_s27  }
   0x2   : > { %p270_p1 = scmp.lt.s32.totalorder %s2191_s27, 3 }
   0x4   : > { %p271_p2 = pnand %p2003_p0, %p270_p1 }
   0x5   : > { %p307_p3 = scmp.lt.s32.totalorder (!%p271_p2), %s1999_s28, 1  ;;  %v2193_v0 = vmov (!%p271_p2), 0.0   ;;  %vm2194_vm0 = vmmov (!%p271_p2), 0   ;;  %v884_v1 = vld [vmem:[%s2651_s3] sm:$0x3] (!%p271_p2)  ;;  %v2195_v2 = vmov (!%p271_p2), 0   ;;  %v337_v19 = vlaneseq (!%p271_p2) }
   0x6   : > { %274 = sbr.rel (%p271_p2) target bundleno = 1386 (0x56a), region = 52  ;;  %2063 = vmatprep.subr.bf16.mxu0 (!%p271_p2), %v2193_v0  ;;  %2065 = vmatprep.mubr.msk.bf16.mxu0 (!%p271_p2), %vm2194_vm0, %v2193_v0  ;;  %vm894_vm1 = vcmask (!%p271_p2), 1041408   ;;  %v882_v5 = vld [vmem:[%s2650_s2] sm:$0x1] (!%p271_p2)  ;;  %vm890_vm2 = vcmask (!%p271_p2), 31744   ;;  %vm944_vm3 = vcmask (!%p271_p2), 1043456  }
   0x7   : > { %2181 = vset.pattern.permute.xlu0 (!%p271_p2), %v2195_v2  ;;  %2069 = vmatprep.subr.bf16.mxu1 (!%p271_p2), %v2193_v0  ;;  %v939_v6 = vld [vmem:[%s2652_s4] sm:$0xf] (!%p271_p2)  ;;  %vm940_vm4 = vcmask (!%p271_p2), 64512   ;;  %s2196_s21 = smov (!%p271_p2), 112   ;;  %s2197_s22 = smov (!%p271_p2), 120   ;;  %v2346_v22 = vshrl.u32 (!%p271_p2), %v337_v19, 7 }
   0x8   : > { %887 = vperm.xlu0 (!%p271_p2), %2181, %v884_v1   ;;  %2071 = vmatprep.mubr.msk.bf16.mxu1 (!%p271_p2), %vm2194_vm0, %v2193_v0  ;;  %v946_v7 = vsel (!%p271_p2), %vm944_vm3, %v939_v6, 0  ;;  %v1014_v8 = vld [vmem:[%s2652_s4] sm:$0xf] (!%p271_p2)  ;;  %s2198_s23 = smov (!%p271_p2), 104   ;;  %s2199_s24 = smov (!%p271_p2), 96   ;;  %vm343_vm5 = vcmask (!%p271_p2), 7168  }
   0x9   : > { %2182 = vset.pattern.permute.xlu1 (!%p271_p2), %v2195_v2  ;;  %2070 = vmatpush3.bf16.msra.mxu1 (!%p271_p2), %v946_v7  ;;  %v1022_v9 = vsel (!%p271_p2), %vm944_vm3, %v1014_v8, 0  ;;  %v1090_v14 = vld [vmem:[%s2652_s4] sm:$0xf] (!%p271_p2)  ;;  %s2200_s25 = smov (!%p271_p2), 88   ;;  %s2201_s26 = smov (!%p271_p2), 80   ;;  %vm321_vm6 = vcmask (!%p271_p2), 140288  }
   0xa   : > { %2081 = vmatprep.subr.bf16.mxu1 (!%p271_p2), %v2193_v0  ;;  %v1097_v18 = vsel (!%p271_p2), %vm944_vm3, %v1090_v14, 0  ;;  %s2202_s11 = smov (!%p271_p2), 72   ;;  %v2203_v20 = vmov (!%p271_p2), 1966171168   ;;  %s2205_s13 = smov (!%p271_p2), 49   ;;  %vm347_vm7 = vcmask (!%p271_p2), 138240  }
   0xb   : > { %v335_v21 = vunpack.c.l.s4 (!%p271_p2), %v2203_v20  ;;  %s2206_s14 = smov (!%p271_p2), 17   ;;  %s2208_s15 = smov (!%p271_p2), 1   ;;  %v1165_v29 = vld [vmem:[%s2652_s4] sm:$0xf] (!%p271_p2)  ;;  %322 = vst.msk [vmem:[#allocation2] sm:$0x3] (!%p271_p2), %vm321_vm6, %v2195_v2 }
   0xc   : > { %s2209_s16 = smov (!%p271_p2), 97   ;;  %s2210_s17 = smov (!%p271_p2), 81   ;;  %v1244_v30 = vld [vmem:[%s2652_s4] sm:$0xf] (!%p271_p2)  ;;  %v1172_v31 = vsel (!%p271_p2), %vm944_vm3, %v1165_v29, 0  ;;  %vm323_vm8 = vcmask (!%p271_p2), 566672  }
   0xd   : > { %s2658_s28 = smov (!%p307_p3, %s1999_s28), 1  ;;  %v336_v23 = vunpack.c.0.s8 %v335_v21  ;;  %s2211_s18 = smov 65   ;;  %v1251_v32 = vsel %vm944_vm3, %v1244_v30, 0  ;;  %v1319_v35 = vld [vmem:[%s2652_s4] sm:$0xf]  ;;  %vm360_vm9 = vcmask 286864  }
   0xe   : > { %s2004_s9 = sshll.u32 %s2658_s28, 1  ;;  %v1394_v36 = vld [vmem:[%s2652_s4] sm:$0xf]  ;;  %v1326_v37 = vsel %vm944_vm3, %v1319_v35, 0  ;;  %s2218_s19 = smov 124   ;;  %vm1007_vm10 = vcmask 287889  }
   0xf   : > { %s314_s12 = scalar_lea.vmem %s2649_s1, %s2004_s9  ;;  %s310_s10 = scalar_lea.vmem %s2648_s0, %s2004_s9  ;;  %v339_v25 = vsub.s32 %v336_v23, %v2346_v22  ;;  %v1401_v38 = vsel %vm944_vm3, %v1394_v36, 0  ;;  %v1473_v41 = vld [vmem:[%s2652_s4] sm:$0xf]  ;;  %324 = vst.msk [vmem:[#allocation2 + $0x4] sm:$0x3] %vm323_vm8, %v2195_v2  ;;  %vm394_vm11 = vcmask 434464  }
  0x10   : > { %v883_v3 = vld [vmem:[%s314_s12] sm:$0x3]  ;;  %s2204_s12 = smov 33   ;;  %s2207_s9 = smov 113   ;;  %v1480_v42 = vsel %vm944_vm3, %v1473_v41, 0  ;;  %vm1012_vm12 = vcmask 435489  }
  0x11   : > { %v896_v4 = vsel %vm894_vm1, %v883_v3, 0  ;;  %v2014_v24 = vld.sshfl [vmem:[%s310_s10] sm:$0x1 pattern:$0x75316420]  ;;  %s2219_s20 = smov 108  }
  0x12   : > { %2064 = vmatpush3.bf16.msra.mxu0 %v896_v4  ;;  %v547_v26 = vrot.slane %v2014_v24, %v339_v25  ;;  %v2017_v27 = vld.sshfl [vmem:[%s310_s10 + $0x1] sm:$0x1 pattern:$0x75316420]  ;;  %s2222_s29 = smov 52   ;;  %s2223_s30 = smov 70  }
  0x13   : > { %2075 = vmatprep.subr.bf16.mxu0 %v2193_v0  ;;  %v2351_v28 = vrot.slane %v2017_v27, %v339_v25  ;;  %s2224_s10 = smov 106   ;;  %vm428_vm13 = vcmask 582064   ;;  %vm462_vm14 = vcmask 729664   ;;  %vm496_vm15 = vcmask 877264  }
  0x14   : > { %vm637_vm8 = vcmask 418064  }
  0x15   : > { %2066 = vmatmul.mubr.msk.bf16.vlgmr.msra.gmra.mrb[0].mxu0 %vm890_vm2, %v882_v5  ;;  %vm567_vm2 = vcmask 1041392  }
  0x16   : > { %2077 = vmatprep.mubr.msk.bf16.mxu0 %vm2194_vm0, %v2193_v0  ;;  %2076 = vmatpush3.bf16.msra.mxu0 %v1022_v9 }
  0x17   : > { %2087 = vmatprep.subr.bf16.mxu0 %v2193_v0 }
  0x87   : > { %v888_v10 = vpop.permute.xlu0 %887 }
  0xe8   : > { %v932_v11 = vpop.f32.mrb[0].mxu0 }
  0xe9   : > { %v933_v12 = vadd.f32 %v932_v11, %v888_v10  ;;  %v2067_v13 = vpop.f32.mrb[1].mxu0 }
  0xea   : > { %v935_v15 = vpop.f32.mrb[2].mxu0 }
  0xeb   : > { %v938_v16 = vpack.c.bf16 %v933_v12, %v933_v12  ;;  %v2068_v17 = vpop.f32.mrb[3].mxu0 }
  0xed   : > { %1091 = vrot.lane.b32.xlu1 %v938_v16, %s2196_s21  ;;  %1016 = vrot.lane.b32.xlu0 %v938_v16, %s2197_s22 }
  0xee   : > { %2072 = vmatmul.mubr.msk.bf16.vlgmr.msra.gmra.mrb[0].mxu1 %vm940_vm4, %v938_v16 }
  0xef   : > { %2082 = vmatpush3.bf16.msra.mxu1 %v1097_v18  ;;  %2083 = vmatprep.mubr.msk.bf16.mxu1 %vm2194_vm0, %v2193_v0  ;;  %v2212_v18 = vmov 1983009808  }
  0xf0   : > { %2093 = vmatprep.subr.bf16.mxu1 %v2193_v0  ;;  %v351_v19 = vunpack.c.l.s4 %v2212_v18 }
  0xf1   : > { %1166 = vrot.lane.b32.xlu1 %v938_v16, %s2198_s23  ;;  %1245 = vrot.lane.b32.xlu0 %v938_v16, %s2199_s24  ;;  %s2220_s24 = smov 16  }
  0xf5   : > { %1320 = vrot.lane.b32.xlu1 %v938_v16, %s2200_s25  ;;  %1395 = vrot.lane.b32.xlu0 %v938_v16, %s2201_s26  ;;  %s2221_s26 = smov 34  }
  0xf9   : > { %1474 = vrot.lane.b32.xlu1 %v938_v16, %s2202_s11  ;;  %548 = vrot.lane.b32.xlu0 %v547_v26, %s2204_s12 }
  0xfd   : > { %514 = vrot.lane.b32.xlu0 %v547_v26, %s2205_s13  ;;  %341 = vrot.lane.b32.xlu1 %v547_v26, %s2208_s15 }
 0x101   : > { %587 = vrot.lane.b32.xlu0 %v547_v26, %s2206_s14  ;;  %378 = vrot.lane.b32.xlu1 %v547_v26, %s2207_s9 }
 0x105   : > { %655 = vrot.lane.b32.xlu0 %v2351_v28, %s2207_s9  ;;  %412 = vrot.lane.b32.xlu1 %v547_v26, %s2209_s16  ;;  %s2228_s9 = smov 110  }
 0x109   : > { %791 = vrot.lane.b32.xlu0 %v2351_v28, %s2205_s13  ;;  %446 = vrot.lane.b32.xlu1 %v547_v26, %s2210_s17  ;;  %s2226_s13 = smov 32  }
 0x10d   : > { %480 = vrot.lane.b32.xlu1 %v547_v26, %s2211_s18 }
 0x111   : > { %621 = vrot.lane.b32.xlu1 %v2351_v28, %s2208_s15 }
 0x115   : > { %689 = vrot.lane.b32.xlu1 %v2351_v28, %s2209_s16  ;;  %s2229_s16 = smov 109  }
 0x119   : > { %723 = vrot.lane.b32.xlu1 %v2351_v28, %s2210_s17  ;;  %s2213_s17 = smov 18  }
 0x15f   : > { %v1092_v33 = vpop.permute.xlu1 %1091  ;;  %v1017_v34 = vpop.permute.xlu0 %1016 }
 0x160   : > { %2078 = vmatmul.mubr.msk.bf16.vlgmr.msra.gmra.mrb[4].mxu0 %vm940_vm4, %v1017_v34  ;;  %2084 = vmatmul.mubr.msk.bf16.vlgmr.msra.gmra.mrb[4].mxu1 %vm940_vm4, %v1092_v33 }
 0x161   : > { %2088 = vmatpush3.bf16.msra.mxu0 %v1172_v31  ;;  %2094 = vmatpush3.bf16.msra.mxu1 %v1251_v32  ;;  %v352_v31 = vunpack.c.0.s8 %v351_v19 }
 0x162   : > { %2089 = vmatprep.mubr.msk.bf16.mxu0 %vm2194_vm0, %v2193_v0  ;;  %2095 = vmatprep.mubr.msk.bf16.mxu1 %vm2194_vm0, %v2193_v0 }
 0x163   : > { %2099 = vmatprep.subr.bf16.mxu0 %v2193_v0  ;;  %2105 = vmatprep.subr.bf16.mxu1 %v2193_v0  ;;  %v1167_v39 = vpop.permute.xlu1 %1166  ;;  %v1246_v40 = vpop.permute.xlu0 %1245 }
 0x167   : > { %v1321_v43 = vpop.permute.xlu1 %1320  ;;  %v1396_v44 = vpop.permute.xlu0 %1395 }
 0x168   : > { %2090 = vmatmul.mubr.msk.bf16.vlgmr.msra.gmra.mrb[8].mxu0 %vm940_vm4, %v1167_v39  ;;  %2096 = vmatmul.mubr.msk.bf16.vlgmr.msra.gmra.mrb[8].mxu1 %vm940_vm4, %v1246_v40 }
 0x169   : > { %2100 = vmatpush3.bf16.msra.mxu0 %v1326_v37  ;;  %2106 = vmatpush3.bf16.msra.mxu1 %v1401_v38  ;;  %v2427_v37 = vsub.s32 %v352_v31, %v2346_v22 }
 0x16a   : > { %2101 = vmatprep.mubr.msk.bf16.mxu0 %vm2194_vm0, %v2193_v0  ;;  %2107 = vmatprep.mubr.msk.bf16.mxu1 %vm2194_vm0, %v2193_v0 }
 0x16b   : > { %2111 = vmatprep.subr.bf16.mxu0 %v2193_v0  ;;  %v1475_v45 = vpop.permute.xlu1 %1474  ;;  %v2406_v51 = vpop.permute.xlu0 %548 }
 0x16f   : > { %v2408_v52 = vpop.permute.xlu0 %514  ;;  %v342_v3 = vpop.permute.xlu1 %341 }
 0x170   : > { %2102 = vmatmul.mubr.msk.bf16.vlgmr.msra.gmra.mrb[12].mxu0 %vm940_vm4, %v1321_v43  ;;  %2108 = vmatmul.mubr.msk.bf16.vlgmr.msra.gmra.mrb[12].mxu1 %vm940_vm4, %v1396_v44  ;;  %v346_v32 = vsel %vm343_vm5, 0, %v342_v3  ;;  %v517_v3 = vsel %vm343_vm5, 0, %v2408_v52 }
 0x171   : > { %2112 = vmatpush3.bf16.msra.mxu0 %v1480_v42  ;;  %2113 = vmatprep.mubr.msk.bf16.mxu0 %vm2194_vm0, %v2193_v0  ;;  %v348_v36 = vsel %vm347_vm7, %v346_v32, 0 }
 0x172   : > { %2117 = vmatprep.subr.bf16.mxu0 %v2193_v0  ;;  %1746 = vmatprep.mubr.bf16.mxu1 %v2195_v2  ;;  %v356_v44 = vrot.slane %v348_v36, %v2427_v37 }
 0x173   : > { %v2410_v53 = vpop.permute.xlu0 %587  ;;  %v379_v15 = vpop.permute.xlu1 %378 }
 0x174   : > { %v381_v40 = vsel %vm343_vm5, 0, %v379_v15 }
 0x177   : > { %v2413_v1 = vpop.permute.xlu0 %655  ;;  %v413_v33 = vpop.permute.xlu1 %412 }
 0x178   : > { %2114 = vmatmul.mubr.msk.bf16.vlgmr.msra.gmra.mrb[16].mxu0 %vm940_vm4, %v1475_v45  ;;  %v382_v45 = vsel %vm347_vm7, %v381_v40, 0  ;;  %vm568_vm4 = vcmask 124930  }
 0x179   : > { %2123 = vmatprep.mubr.msk.bf16.mxu0 %vm2194_vm0, %v2193_v0  ;;  %vm564_vm0 = vcmask 1031168   ;;  %vm569_vm6 = vmor %vm568_vm4, %vm567_vm2  ;;  %vm773_vm2 = vcmask 1008464  }
 0x17b   : > { %v792_v14 = vpop.permute.xlu0 %791 }
 0x1c1   : > { %v982_v46 = vpop.f32.mrb[0].mxu1 }
 0x1c2   : > { %v988_v47 = vpack.c.bf16 %v982_v46, %v982_v46  ;;  %v2073_v48 = vpop.f32.mrb[1].mxu1  ;;  %v447_v46 = vpop.permute.xlu1 %446 }
 0x1c3   : > { %v985_v49 = vpop.f32.mrb[2].mxu1  ;;  %v390_v48 = vrot.slane %v382_v45, %v2427_v37 }
 0x1c4   : > { %v2074_v50 = vpop.f32.mrb[3].mxu1  ;;  %990 = vrot.lane.b32.xlu0 %v988_v47, %s2208_s15  ;;  %v415_v47 = vsel %vm343_vm5, 0, %v413_v33 }
 0x1c5   : > { %v416_v49 = vsel %vm347_vm7, %v415_v47, 0  ;;  %v551_v50 = vsel %vm343_vm5, 0, %v2406_v51 }
 0x233   : > { %v1058_v54 = vpop.f32.mrb[4].mxu0  ;;  %v1133_v55 = vpop.f32.mrb[4].mxu1 }
 0x234   : > { %v1064_v56 = vpack.c.bf16 %v1058_v54, %v1058_v54  ;;  %v2079_v57 = vpop.f32.mrb[5].mxu0  ;;  %v2085_v58 = vpop.f32.mrb[5].mxu1  ;;  %v1139_v63 = vpack.c.bf16 %v1133_v55, %v1133_v55  ;;  %v449_v55 = vsel %vm343_vm5, 0, %v447_v46 }
 0x235   : > { %v1061_v59 = vpop.f32.mrb[6].mxu0  ;;  %v1136_v60 = vpop.f32.mrb[6].mxu1  ;;  %v424_v57 = vrot.slane %v416_v49, %v2427_v37  ;;  %v450_v58 = vsel %vm347_vm7, %v449_v55, 0 }
 0x236   : > { %v2080_v61 = vpop.f32.mrb[7].mxu0  ;;  %1066 = vrot.lane.b32.xlu0 %v1064_v56, %s2208_s15  ;;  %v2086_v62 = vpop.f32.mrb[7].mxu1  ;;  %v794_v59 = vsel %vm343_vm5, 0, %v792_v14  ;;  %v458_v51 = vrot.slane %v450_v58, %v2427_v37 }
 0x237   : > { %v991_v30 = vpop.permute.xlu0 %990  ;;  %v481_v56 = vpop.permute.xlu1 %480  ;;  %v795_v62 = vsel %vm347_vm7, %v794_v59, 0 }
 0x238   : > { %v993_v34 = vsel %vm343_vm5, 0, %v991_v30  ;;  %v483_v60 = vsel %vm343_vm5, 0, %v481_v56 }
 0x239   : > { %v994_v41 = vsel %vm347_vm7, %v993_v34, 0 }
 0x23a   : > { %1141 = vrot.lane.b32.xlu0 %v1139_v63, %s2208_s15  ;;  %v1002_v22 = vrot.slane %v994_v41, %v2427_v37  ;;  %v484_v63 = vsel %vm347_vm7, %v483_v60, 0 }
 0x23b   : > { %v1208_v4 = vpop.f32.mrb[8].mxu0  ;;  %v1287_v5 = vpop.f32.mrb[8].mxu1 }
 0x23c   : > { %v1214_v6 = vpack.c.bf16 %v1208_v4, %v1208_v4  ;;  %v1293_v7 = vpack.c.bf16 %v1287_v5, %v1287_v5  ;;  %v2091_v8 = vpop.f32.mrb[9].mxu0  ;;  %v2097_v9 = vpop.f32.mrb[9].mxu1  ;;  %v1003_v54 = vrot.slane %v1002_v22, 7  ;;  %v803_v4 = vrot.slane %v795_v62, %v2427_v37 }
 0x23d   : > { %v1211_v10 = vpop.f32.mrb[10].mxu0  ;;  %v1290_v11 = vpop.f32.mrb[10].mxu1  ;;  %v492_v5 = vrot.slane %v484_v63, %v2427_v37 }
 0x23e   : > { %v2092_v12 = vpop.f32.mrb[11].mxu0  ;;  %v2098_v13 = vpop.f32.mrb[11].mxu1  ;;  %1216 = vrot.lane.b32.xlu0 %v1214_v6, %s2208_s15  ;;  %1295 = vrot.lane.b32.xlu1 %v1293_v7, %s2208_s15  ;;  %v518_v6 = vsel %vm347_vm7, %v517_v3, 0  ;;  %v590_v7 = vsel %vm343_vm5, 0, %v2410_v53 }
 0x23f   : > { %v622_v8 = vpop.permute.xlu1 %621  ;;  %v526_v9 = vrot.slane %v518_v6, %v2427_v37  ;;  %v591_v52 = vsel %vm347_vm7, %v590_v7, 0  ;;  %v658_v12 = vsel %vm343_vm5, 0, %v2413_v1 }
 0x240   : > { %v624_v10 = vsel %vm343_vm5, 0, %v622_v8  ;;  %v599_v11 = vrot.slane %v591_v52, %v2427_v37  ;;  %v659_v15 = vsel %vm347_vm7, %v658_v12, 0 }
 0x241   : > { %v625_v53 = vsel %vm347_vm7, %v624_v10, 0 }
 0x242   : > { %v633_v14 = vrot.slane %v625_v53, %v2427_v37 }
 0x243   : > { %v1362_v16 = vpop.f32.mrb[12].mxu0  ;;  %v1437_v17 = vpop.f32.mrb[12].mxu1 }
 0x244   : > { %v1368_v20 = vpack.c.bf16 %v1362_v16, %v1362_v16  ;;  %v1443_v21 = vpack.c.bf16 %v1437_v17, %v1437_v17  ;;  %v2103_v23 = vpop.f32.mrb[13].mxu0  ;;  %v2109_v24 = vpop.f32.mrb[13].mxu1  ;;  %v667_v17 = vrot.slane %v659_v15, %v2427_v37 }
 0x245   : > { %v1365_v25 = vpop.f32.mrb[14].mxu0  ;;  %v1440_v26 = vpop.f32.mrb[14].mxu1 }
 0x246   : > { %v2104_v27 = vpop.f32.mrb[15].mxu0  ;;  %v2110_v29 = vpop.f32.mrb[15].mxu1  ;;  %1370 = vrot.lane.b32.xlu0 %v1368_v20, %s2208_s15  ;;  %1445 = vrot.lane.b32.xlu1 %v1443_v21, %s2208_s15 }
 0x247   : > { %v690_v13 = vpop.permute.xlu1 %689 }
 0x248   : > { %v692_v16 = vsel %vm343_vm5, 0, %v690_v13 }
 0x249   : > { %v693_v18 = vsel %vm347_vm7, %v692_v16, 0 }
 0x24a   : > { %757 = vrot.lane.b32.xlu0 %v2351_v28, %s2211_s18  ;;  %s2217_s18 = smov 90   ;;  %v701_v20 = vrot.slane %v693_v18, %v2427_v37 }
 0x24b   : > { %v1516_v35 = vpop.f32.mrb[16].mxu0  ;;  %v724_v19 = vpop.permute.xlu1 %723 }
 0x24c   : > { %v1522_v38 = vpack.c.bf16 %v1516_v35, %v1516_v35  ;;  %v2115_v39 = vpop.f32.mrb[17].mxu0  ;;  %v726_v1 = vsel %vm343_vm5, 0, %v724_v19 }
 0x24d   : > { %v1519_v42 = vpop.f32.mrb[18].mxu0  ;;  %v727_v21 = vsel %vm347_vm7, %v726_v1, 0 }
 0x24e   : > { %v2116_v43 = vpop.f32.mrb[19].mxu0  ;;  %1524 = vrot.lane.b32.xlu1 %v1522_v38, %s2208_s15  ;;  %830 = vrot.lane.b32.xlu0 %v2351_v28, %s2204_s12  ;;  %s2214_s12 = smov 36   ;;  %s2216_s15 = smov 126   ;;  %v735_v23 = vrot.slane %v727_v21, %v2427_v37 }
 0x252   : > { %864 = vrot.lane.b32.xlu1 %v2351_v28, %s2206_s14  ;;  %357 = vrot.lane.b32.xlu0 %v356_v44, %s2213_s17  ;;  %v552_v28 = vsel %vm347_vm7, %v551_v50, 0  ;;  %s2215_s14 = smov 54  }
 0x253   : > { %v560_v61 = vrot.slane %v552_v28, %v2427_v37 }
 0x256   : > { %1004 = vrot.lane.b32.xlu1 %v1003_v54, %s2213_s17  ;;  %391 = vrot.lane.b32.xlu0 %v390_v48, %s2214_s12  ;;  %s2230_s17 = smov 92  }
 0x25a   : > { %1009 = vrot.lane.b32.xlu1 %v1003_v54, %s2214_s12  ;;  %425 = vrot.lane.b32.xlu0 %v424_v57, %s2215_s14  ;;  %s2231_s12 = smov 91  }
 0x25e   : > { %459 = vrot.lane.b32.xlu0 %v458_v51, %s2202_s11  ;;  %561 = vrot.lane.b32.xlu1 %v560_v61, %s2216_s15 }
 0x262   : > { %493 = vrot.lane.b32.xlu0 %v492_v5, %s2217_s18  ;;  %804 = vrot.lane.b32.xlu1 %v803_v4, %s2218_s19 }
 0x266   : > { %527 = vrot.lane.b32.xlu0 %v526_v9, %s2219_s20 }
 0x26a   : > { %600 = vrot.lane.b32.xlu0 %v599_v11, %s2220_s24 }
 0x26e   : > { %634 = vrot.lane.b32.xlu0 %v633_v14, %s2221_s26 }
 0x272   : > { %668 = vrot.lane.b32.xlu0 %v667_v17, %s2222_s29 }
 0x276   : > { %702 = vrot.lane.b32.xlu0 %v701_v20, %s2223_s30 }
 0x27a   : > { %736 = vrot.lane.b32.xlu0 %v735_v23, %s2200_s25 }
 0x2a8   : > { %v1067_v24 = vpop.permute.xlu0 %1066 }
 0x2a9   : > { %v1069_v25 = vsel %vm343_vm5, 0, %v1067_v24 }
 0x2aa   : > { %v1070_v26 = vsel %vm347_vm7, %v1069_v25, 0 }
 0x2ab   : > { %v1078_v27 = vrot.slane %v1070_v26, %v2427_v37 }
 0x2ac   : > { %v1142_v29 = vpop.permute.xlu0 %1141 }
 0x2ad   : > { %v1079_v30 = vrot.slane %v1078_v27, 7  ;;  %v1144_v31 = vsel %vm343_vm5, 0, %v1142_v29 }
 0x2ae   : > { %v1145_v32 = vsel %vm347_vm7, %v1144_v31, 0 }
 0x2af   : > { %v1153_v33 = vrot.slane %v1145_v32, %v2427_v37  ;;  %1080 = vrot.lane.b32.xlu1 %v1079_v30, %s2215_s14 }
 0x2b0   : > { %v1217_v34 = vpop.permute.xlu0 %1216  ;;  %v1296_v39 = vpop.permute.xlu1 %1295 }
 0x2b1   : > { %v1154_v35 = vrot.slane %v1153_v33, 7  ;;  %v1219_v36 = vsel %vm343_vm5, 0, %v1217_v34  ;;  %v1298_v41 = vsel %vm343_vm5, 0, %v1296_v39 }
 0x2b2   : > { %v1220_v38 = vsel %vm347_vm7, %v1219_v36, 0  ;;  %v1299_v44 = vsel %vm347_vm7, %v1298_v41, 0 }
 0x2b3   : > { %1155 = vrot.lane.b32.xlu1 %v1154_v35, %s2217_s18  ;;  %v1228_v40 = vrot.slane %v1220_v38, %v2427_v37  ;;  %v1307_v22 = vrot.slane %v1299_v44, %v2427_v37 }
 0x2b5   : > { %v1229_v43 = vrot.slane %v1228_v40, 7  ;;  %v1308_v57 = vrot.slane %v1307_v22, 7 }
 0x2b7   : > { %1160 = vrot.lane.b32.xlu1 %v1154_v35, %s2219_s20 }
 0x2b8   : > { %v1371_v42 = vpop.permute.xlu0 %1370  ;;  %v1446_v45 = vpop.permute.xlu1 %1445 }
 0x2b9   : > { %v1373_v47 = vsel %vm343_vm5, 0, %v1371_v42  ;;  %v1448_v49 = vsel %vm343_vm5, 0, %v1446_v45 }
 0x2ba   : > { %v1374_v54 = vsel %vm347_vm7, %v1373_v47, 0  ;;  %v1449_v28 = vsel %vm347_vm7, %v1448_v49, 0 }
 0x2bb   : > { %1230 = vrot.lane.b32.xlu1 %v1229_v43, %s2216_s15  ;;  %v1382_v58 = vrot.slane %v1374_v54, %v2427_v37  ;;  %v1457_v51 = vrot.slane %v1449_v28, %v2427_v37 }
 0x2bc   : > { %v758_v46 = vpop.permute.xlu0 %757 }
 0x2bd   : > { %v760_v48 = vsel %vm343_vm5, 0, %v758_v46  ;;  %v1383_v63 = vrot.slane %v1382_v58, 7  ;;  %v1458_v6 = vrot.slane %v1457_v51, 7  ;;  %v1548_v51 = vld [vmem:[%s2654_s6] sm:$0xf] }
 0x2be   : > { %v761_v2 = vsel %vm347_vm7, %v760_v48, 0 }
 0x2bf   : > { %v769_v50 = vrot.slane %v761_v2, %v2427_v37  ;;  %1239 = vrot.lane.b32.xlu1 %v1229_v43, %s2220_s24 }
 0x2c0   : > { %v1525_v55 = vpop.permute.xlu1 %1524  ;;  %v831_v56 = vpop.permute.xlu0 %830 }
 0x2c1   : > { %770 = vrot.lane.b32.xlu0 %v769_v50, %s2224_s10  ;;  %v833_v59 = vsel %vm343_vm5, 0, %v831_v56  ;;  %v1527_v9 = vsel %vm343_vm5, 0, %v1525_v55 }
 0x2c2   : > { %v834_v62 = vsel %vm347_vm7, %v833_v59, 0  ;;  %v1528_v53 = vsel %vm347_vm7, %v1527_v9, 0 }
 0x2c3   : > { %1309 = vrot.lane.b32.xlu1 %v1308_v57, %s2221_s26  ;;  %v842_v7 = vrot.slane %v834_v62, %v2427_v37  ;;  %v1536_v14 = vrot.slane %v1528_v53, %v2427_v37  ;;  %v1549_v62 = vld [vmem:[%s2655_s7] sm:$0xf] }
 0x2c4   : > { %v865_v60 = vpop.permute.xlu1 %864  ;;  %v358_v61 = vpop.permute.xlu0 %357 }
 0x2c5   : > { %1085 = vrot.lane.b32.xlu0 %v1079_v30, %s2202_s11  ;;  %361 = vst.msk [vmem:[#allocation2] sm:$0x1] %vm360_vm9, %v358_v61  ;;  %v867_v3 = vsel %vm343_vm5, 0, %v865_v60  ;;  %s2225_s11 = smov 14   ;;  %v1537_v17 = vrot.slane %v1536_v14, 7  ;;  %vm530_vm5 = vcmask 1024864  }
 0x2c6   : > { %v868_v8 = vsel %vm347_vm7, %v867_v3, 0  ;;  %vm603_vm7 = vcmask 270464   ;;  %vm671_vm9 = vcmask 565664  }
 0x2c7   : > { %1314 = vrot.lane.b32.xlu1 %v1308_v57, %s2222_s29  ;;  %v876_v11 = vrot.slane %v868_v8, %v2427_v37 }
 0x2c8   : > { %v1005_v4 = vpop.permute.xlu1 %1004  ;;  %v392_v5 = vpop.permute.xlu0 %391 }
 0x2c9   : > { %1008 = vst.msk [vmem:[#allocation2] sm:$0x2] %vm1007_vm10, %v1005_v4  ;;  %1384 = vrot.lane.b32.xlu0 %v1383_v63, %s2223_s30  ;;  %vm705_vm10 = vcmask 713264  }
 0x2ca   : > { %395 = vst.msk [vmem:[#allocation2] sm:$0x1] %vm394_vm11, %v392_v5  ;;  %vm739_vm11 = vcmask 860864  }
 0x2cb   : > { %1464 = vrot.lane.b32.xlu1 %v1458_v6, %s2218_s19 }
 0x2cc   : > { %v1010_v52 = vpop.permute.xlu1 %1009  ;;  %v426_v10 = vpop.permute.xlu0 %425 }
 0x2cd   : > { %1013 = vst.msk [vmem:[#allocation2] sm:$0x2] %vm1012_vm12, %v1010_v52  ;;  %843 = vrot.lane.b32.xlu0 %v842_v7, %s2225_s11  ;;  %vm1083_vm12 = vcmask 583089  }
 0x2ce   : > { %429 = vst.msk [vmem:[#allocation2] sm:$0x1] %vm428_vm13, %v426_v10  ;;  %vm810_vm13 = vcmask 1041376  }
 0x2cf   : > { %1389 = vrot.lane.b32.xlu1 %v1383_v63, %s2200_s25  ;;  %s2227_s25 = smov 127  }
 0x2d0   : > { %v460_v12 = vpop.permute.xlu0 %459  ;;  %v562_v13 = vpop.permute.xlu1 %561 }
 0x2d1   : > { %877 = vrot.lane.b32.xlu0 %v876_v11, %s2226_s13  ;;  %463 = vst.msk [vmem:[#allocation2] sm:$0x1] %vm462_vm14, %v460_v12  ;;  %v563_v15 = vrot.slane %v562_v13, 6  ;;  %vm811_vm14 = vcmask 108546  }
 0x2d2   : > { %vm812_vm4 = vmor %vm811_vm14, %vm810_vm13  ;;  %vm1317_vm13 = vcmask 566689   ;;  %vm1387_vm14 = vcmask 714289  }
 0x2d3   : > { %1459 = vrot.lane.b32.xlu1 %v1458_v6, %s2224_s10  ;;  %v565_v18 = vsel %vm564_vm0, %v563_v15, %v562_v13 }
 0x2d4   : > { %v494_v16 = vpop.permute.xlu0 %493  ;;  %v805_v25 = vpop.permute.xlu1 %804 }
 0x2d5   : > { %497 = vst.msk [vmem:[#allocation2] sm:$0x1] %vm496_vm15, %v494_v16  ;;  %v806_v31 = vrot.slane %v805_v25, 6  ;;  %vm807_vm15 = vcmask 1014784  }
 0x2d7   : > { %1538 = vrot.lane.b32.xlu1 %v1537_v17, %s2225_s11  ;;  %v808_v34 = vsel %vm807_vm15, %v806_v31, %v805_v25  ;;  %s2040_s11 = sshll.u32 %s2658_s28, 2  ;;  %s2232_s28 = smov 122  }
 0x2d8   : > { %v528_v19 = vpop.permute.xlu0 %527 }
 0x2d9   : > { %531 = vst.msk [vmem:[#allocation2] sm:$0x1] %vm530_vm5, %v528_v19  ;;  %vm1088_vm5 = vcmask 730689  }
 0x2da   : > { %570 = vst.msk [vmem:[#allocation2] sm:$0x5] %vm569_vm6, %v565_v18  ;;  %vm1235_vm6 = vcmask 1042417  }
 0x2db   : > { %1543 = vrot.lane.b32.xlu1 %v1537_v17, %s2226_s13 }
 0x2dc   : > { %v601_v1 = vpop.permute.xlu0 %600 }
 0x2dd   : > { %604 = vst.msk [vmem:[#allocation2 + $0x2] sm:$0x1] %vm603_vm7, %v601_v1  ;;  %vm1236_vm7 = vcmask 125955  }
 0x2e0   : > { %v635_v20 = vpop.permute.xlu0 %634 }
 0x2e1   : > { %638 = vst.msk [vmem:[#allocation2 + $0x2] sm:$0x1] %vm637_vm8, %v635_v20  ;;  %vm1158_vm8 = vcmask 878289  }
 0x2e4   : > { %v669_v21 = vpop.permute.xlu0 %668 }
 0x2e5   : > { %672 = vst.msk [vmem:[#allocation2 + $0x2] sm:$0x1] %vm671_vm9, %v669_v21  ;;  %vm1163_vm9 = vcmask 1025889  }
 0x2e8   : > { %v703_v23 = vpop.permute.xlu0 %702 }
 0x2e9   : > { %706 = vst.msk [vmem:[#allocation2 + $0x2] sm:$0x1] %vm705_vm10, %v703_v23  ;;  %vm1237_vm10 = vmor %vm1236_vm7, %vm1235_vm6  ;;  %vm1470_vm6 = vcmask 109571   ;;  %vm880_vm7 = vcmask 401664  }
 0x2ec   : > { %v737_v24 = vpop.permute.xlu0 %736 }
 0x2ed   : > { %740 = vst.msk [vmem:[#allocation2 + $0x2] sm:$0x1] %vm739_vm11, %v737_v24  ;;  %vm1242_vm11 = vcmask 271489  }
 0x321   : > { %v1081_v26 = vpop.permute.xlu1 %1080 }
 0x322   : > { %1084 = vst.msk [vmem:[#allocation2] sm:$0x2] %vm1083_vm12, %v1081_v26  ;;  %vm1312_vm12 = vcmask 419089  }
 0x325   : > { %v1156_v27 = vpop.permute.xlu1 %1155 }
 0x329   : > { %v1161_v29 = vpop.permute.xlu1 %1160 }
 0x32d   : > { %v1231_v30 = vpop.permute.xlu1 %1230 }
 0x32e   : > { %v1232_v36 = vrot.slane %v1231_v30, 6 }
 0x330   : > { %v1233_v40 = vsel %vm564_vm0, %v1232_v36, %v1231_v30 }
 0x331   : > { %v1240_v32 = vpop.permute.xlu1 %1239 }
 0x333   : > { %v771_v33 = vpop.permute.xlu0 %770 }
 0x334   : > { %774 = vst.msk [vmem:[#allocation2 + $0x2] sm:$0x1] %vm773_vm2, %v771_v33  ;;  %vm846_vm2 = vcmask 254064  }
 0x335   : > { %v1310_v35 = vpop.permute.xlu1 %1309  ;;  %813 = vst.msk [vmem:[#allocation2 + $0x2] sm:$0x5] %vm812_vm4, %v808_v34  ;;  %vm1392_vm4 = vcmask 861889  }
 0x337   : > { %v1086_v38 = vpop.permute.xlu0 %1085 }
 0x338   : > { %1089 = vst.msk [vmem:[#allocation2] sm:$0x2] %vm1088_vm5, %v1086_v38  ;;  %vm1469_vm5 = vcmask 1042401  }
 0x339   : > { %1159 = vst.msk [vmem:[#allocation2] sm:$0x2] %vm1158_vm8, %v1156_v27  ;;  %v1315_v39 = vpop.permute.xlu1 %1314  ;;  %vm1462_vm8 = vcmask 1009489  }
 0x33a   : > { %1164 = vst.msk [vmem:[#allocation2] sm:$0x2] %vm1163_vm9, %v1161_v29  ;;  %vm1471_vm9 = vmor %vm1470_vm6, %vm1469_vm5  ;;  %vm1649_vm5 = vcmask 736256   ;;  %vm1828_vm6 = vcmask 255104  }
 0x33b   : > { %1238 = vst.msk [vmem:[#allocation2] sm:$0xa] %vm1237_vm10, %v1233_v40  ;;  %v1385_v41 = vpop.permute.xlu0 %1384  ;;  %vm1541_vm10 = vcmask 255089  }
 0x33c   : > { %1243 = vst.msk [vmem:[#allocation2 + $0x2] sm:$0x2] %vm1242_vm11, %v1240_v32  ;;  %vm1546_vm11 = vcmask 402689  }
 0x33d   : > { %1313 = vst.msk [vmem:[#allocation2 + $0x2] sm:$0x2] %vm1312_vm12, %v1310_v35  ;;  %v1465_v42 = vpop.permute.xlu1 %1464  ;;  %vm1604_vm12 = vcmask 900096  }
 0x33e   : > { %1318 = vst.msk [vmem:[#allocation2 + $0x2] sm:$0x2] %vm1317_vm13, %v1315_v39  ;;  %v1466_v45 = vrot.slane %v1465_v42, 6  ;;  %vm1667_vm13 = vcmask 1045504  }
 0x33f   : > { %1388 = vst.msk [vmem:[#allocation2 + $0x2] sm:$0x2] %vm1387_vm14, %v1385_v41  ;;  %v844_v43 = vpop.permute.xlu0 %843  ;;  %vm1613_vm14 = vcmask 891904  }
 0x340   : > { %847 = vst.msk [vmem:[#allocation2 + $0x4] sm:$0x1] %vm846_vm2, %v844_v43  ;;  %v1467_v47 = vsel %vm807_vm15, %v1466_v45, %v1465_v42  ;;  %vm1584_vm15 = vcmask 1039360   ;;  %vm1622_vm2 = vcmask 883712  }
 0x341   : > { %v1390_v44 = vpop.permute.xlu1 %1389 }
 0x342   : > { %1393 = vst.msk [vmem:[#allocation2 + $0x2] sm:$0x2] %vm1392_vm4, %v1390_v44  ;;  %vm1631_vm4 = vcmask 752640  }
 0x343   : > { %v878_v46 = vpop.permute.xlu0 %877 }
 0x344   : > { %881 = vst.msk [vmem:[#allocation2 + $0x4] sm:$0x1] %vm880_vm7, %v878_v46  ;;  %vm1833_vm7 = vcmask 386304  }
 0x345   : > { %v1460_v22 = vpop.permute.xlu1 %1459 }
 0x346   : > { %1463 = vst.msk [vmem:[#allocation2 + $0x2] sm:$0x2] %vm1462_vm8, %v1460_v22  ;;  %vm1838_vm8 = vcmask 517504  }
 0x347   : > { %1472 = vst.msk [vmem:[#allocation2 + $0x2] sm:$0xa] %vm1471_vm9, %v1467_v47  ;;  %vm1843_vm9 = vcmask 648704  }
 0x349   : > { %v1539_v48 = vpop.permute.xlu1 %1538 }
 0x34a   : > { %1542 = vst.msk [vmem:[#allocation2 + $0x4] sm:$0x2] %vm1541_vm10, %v1539_v48  ;;  %vm1848_vm10 = vcmask 779904  }
 0x34d   : > { %v1544_v2 = vpop.permute.xlu1 %1543 }
 0x34e   : > { %1547 = vst.msk [vmem:[#allocation2 + $0x4] sm:$0x2] %vm1546_vm11, %v1544_v2  ;;  %vm1917_vm11 = vcmask 818176  }
 0x355   : > { %v1551_v49 = vld [vmem:[#allocation2] sm:$0x3f] }
 0x356   : > { %v2537_v50 = vrot.slane %v1551_v49, %v2427_v37  ;;  %v1569_v54 = vcombine.low %v1551_v49, %v1551_v49  ;;  %v1553_v56 = vcombine.high %v1551_v49, %v1551_v49 }
 0x358   : > { %1620 = vrot.lane.b32.xlu0 %v2537_v50, %s2219_s20  ;;  %1582 = vrot.lane.b32.xlu1 %v2537_v50, %s2227_s25  ;;  %v1576_v55 = vrot.slane %v1569_v54, %v2427_v37  ;;  %v1567_v57 = vrot.slane %v1553_v56, %v2427_v37  ;;  %v1587_v28 = vcombine.low %v2537_v50, %v2537_v50 }
 0x359   : > { %v1568_v58 = vcombine.high %v2537_v50, %v2537_v50 }
 0x35a   : > { %v1577_v59 = vcombine.high %v1576_v55, %v1576_v55  ;;  %v1588_v60 = vcombine.low %v1567_v57, %v1567_v57  ;;  %v1597_v61 = vcombine.low %v1576_v55, %v1576_v55 }
 0x35c   : > { %1578 = vrot.lane.b32.xlu0 %v1576_v55, %s2227_s25  ;;  %1591 = vrot.lane.b32.xlu1 %v2537_v50, %s2216_s15 }
 0x360   : > { %1600 = vrot.lane.b32.xlu0 %v1576_v55, %s2228_s9  ;;  %1607 = vrot.lane.b32.xlu1 %v2537_v50, %s2229_s16 }
 0x364   : > { %1627 = vrot.lane.b32.xlu1 %v2537_v50, %s2230_s17  ;;  %1611 = vrot.lane.b32.xlu0 %v1567_v57, %s2229_s16 }
 0x368   : > { %1589 = vrot.lane.b32.xlu1 %v1587_v28, %s2216_s15  ;;  %1616 = vrot.lane.b32.xlu0 %v1576_v55, %s2219_s20 }
 0x36c   : > { %1602 = vrot.lane.b32.xlu1 %v1587_v28, %s2228_s9  ;;  %1636 = vrot.lane.b32.xlu0 %v1576_v55, %s2231_s12 }
 0x370   : > { %1609 = vrot.lane.b32.xlu1 %v1568_v58, %s2229_s16  ;;  %1580 = vrot.lane.b32.xlu0 %v1577_v59, %s2227_s25  ;;  %s2608_s16 = scalar_lea.vmem %s2656_s8, %s2040_s11 }
 0x374   : > { %1625 = vrot.lane.b32.xlu1 %v1587_v28, %s2230_s17  ;;  %1593 = vrot.lane.b32.xlu0 %v1588_v60, %s2216_s15 }
 0x378   : > { %1638 = vrot.lane.b32.xlu1 %v1587_v28, %s2231_s12  ;;  %1598 = vrot.lane.b32.xlu0 %v1597_v61, %s2228_s9 }
 0x37c   : > { %1618 = vrot.lane.b32.xlu1 %v1577_v59, %s2219_s20  ;;  %1629 = vrot.lane.b32.xlu0 %v1588_v60, %s2230_s17  ;;  %s2233_s17 = smov 118  }
 0x380   : > { %1643 = vrot.lane.b32.xlu1 %v2537_v50, %s2217_s18  ;;  %1634 = vrot.lane.b32.xlu0 %v1597_v61, %s2231_s12 }
 0x384   : > { %1647 = vrot.lane.b32.xlu1 %v1567_v57, %s2217_s18  ;;  %1645 = vrot.lane.b32.xlu0 %v1568_v58, %s2217_s18 }
 0x388   : > { %1797 = vperm.xlu0 %2181, %v1548_v51   ;;  %1805 = vperm.xlu1 %2182, %v1549_v62  }
 0x3ca   : > { %v1621_v63 = vpop.permute.xlu0 %1620  ;;  %v1583_v3 = vpop.permute.xlu1 %1582 }
 0x3cb   : > { %v1660_v16 = vsel %vm894_vm1, %v1567_v57, %v1583_v3 }
 0x3ce   : > { %v1579_v4 = vpop.permute.xlu0 %1578  ;;  %v1592_v5 = vpop.permute.xlu1 %1591 }
 0x3d2   : > { %v1601_v6 = vpop.permute.xlu0 %1600  ;;  %v1608_v7 = vpop.permute.xlu1 %1607 }
 0x3d6   : > { %v1628_v8 = vpop.permute.xlu1 %1627  ;;  %v1612_v9 = vpop.permute.xlu0 %1611 }
 0x3d7   : > { %v1685_v34 = vsel %vm894_vm1, %v1612_v9, %v1621_v63 }
 0x3da   : > { %v1590_v52 = vpop.permute.xlu1 %1589  ;;  %v1617_v10 = vpop.permute.xlu0 %1616 }
 0x3db   : > { %v1595_v27 = vsel %vm564_vm0, %v1590_v52, %v1592_v5 }
 0x3de   : > { %v1603_v11 = vpop.permute.xlu1 %1602  ;;  %v1637_v53 = vpop.permute.xlu0 %1636 }
 0x3df   : > { %v1606_v21 = vsel %vm1604_vm12, %v1601_v6, %v1603_v11 }
 0x3e2   : > { %v1610_v12 = vpop.permute.xlu1 %1609  ;;  %v1581_v13 = vpop.permute.xlu0 %1580 }
 0x3e3   : > { %v1586_v14 = vsel %vm1584_vm15, %v1581_v13, %v1583_v3  ;;  %v1585_v15 = vsel %vm1584_vm15, %v1579_v4, %v1581_v13  ;;  %v1614_v35 = vsel %vm1613_vm14, %v1608_v7, %v1610_v12  ;;  %v1615_v36 = vsel %vm1613_vm14, %v1610_v12, %v1612_v9 }
 0x3e4   : > { %v1657_v19 = vsel %vm894_vm1, %v1568_v58, %v1586_v14  ;;  %v1654_v23 = vsel %vm894_vm1, %v2537_v50, %v1585_v15  ;;  %vm1868_vm15 = vcmask 932864  }
 0x3e5   : > { %v1662_v32 = vsel %vm944_vm3, %v1654_v23, %v1595_v27 }
 0x3e6   : > { %v1626_v17 = vpop.permute.xlu1 %1625  ;;  %v1594_v18 = vpop.permute.xlu0 %1593 }
 0x3e7   : > { %v1596_v1 = vsel %vm564_vm0, %v1592_v5, %v1594_v18  ;;  %v1666_v20 = vsel %vm944_vm3, %v1660_v16, %v1594_v18  ;;  %vm1640_vm0 = vcmask 744448   ;;  %v1632_v48 = vsel %vm1631_vm4, %v1626_v17, %v1628_v8 }
 0x3e8   : > { %v1675_v24 = vsel %vm1667_vm13, %v1666_v20, %v1603_v11  ;;  %v1664_v25 = vsel %vm944_vm3, %v1657_v19, %v1596_v1 }
 0x3e9   : > { %2118 = vmatpush3.bf16.msra.mxu0 %v1675_v24  ;;  %v1672_v26 = vsel %vm1667_vm13, %v1664_v25, %v1606_v21 }
 0x3ea   : > { %v1639_v29 = vpop.permute.xlu1 %1638  ;;  %1714 = vmatprep.subr.bf16.mxu1 %v1672_v26  ;;  %v1599_v30 = vpop.permute.xlu0 %1598  ;;  %2119 = vmatprep.subr.bf16.mxu0 %v2193_v0 }
 0x3eb   : > { %v1605_v31 = vsel %vm1604_vm12, %v1599_v30, %v1601_v6  ;;  %v1642_v22 = vsel %vm1640_vm0, %v1637_v53, %v1639_v29  ;;  %vm1853_vm12 = vcmask 911104  }
 0x3ec   : > { %v1669_v33 = vsel %vm1667_vm13, %v1662_v32, %v1605_v31 }
 0x3ed   : > { %1715 = vmatpush1.bf16.msra.mxu1 %v1669_v33 }
 0x3ee   : > { %v1619_v38 = vpop.permute.xlu1 %1618  ;;  %v1630_v39 = vpop.permute.xlu0 %1629 }
 0x3ef   : > { %v1623_v40 = vsel %vm1622_vm2, %v1617_v10, %v1619_v38  ;;  %v1624_v41 = vsel %vm1622_vm2, %v1619_v38, %v1621_v63  ;;  %v1633_v42 = vsel %vm1631_vm4, %v1628_v8, %v1630_v39  ;;  %v1691_v43 = vsel %vm944_vm3, %v1685_v34, %v1630_v39 }
 0x3f0   : > { %v1679_v44 = vsel %vm894_vm1, %v1614_v35, %v1623_v40  ;;  %v1682_v45 = vsel %vm894_vm1, %v1615_v36, %v1624_v41  ;;  %v1699_v46 = vsel %vm1667_vm13, %v1691_v43, %v1639_v29 }
 0x3f1   : > { %2120 = vmatpush3.bf16.msra.mxu0 %v1699_v46  ;;  %v1689_v47 = vsel %vm944_vm3, %v1682_v45, %v1633_v42  ;;  %v1687_v55 = vsel %vm944_vm3, %v1679_v44, %v1632_v48  ;;  %vm1701_vm3 = vcmask 293888  }
 0x3f2   : > { %v1644_v2 = vpop.permute.xlu1 %1643  ;;  %v1635_v49 = vpop.permute.xlu0 %1634  ;;  %v1696_v50 = vsel %vm1667_vm13, %v1689_v47, %v1642_v22  ;;  %2121 = vmatprep.subr.bf16.mxu0 %v2193_v0  ;;  %v1550_v0 = vld [vmem:[%s2653_s5] sm:$0x3] }
 0x3f3   : > { %v1641_v54 = vsel %vm1640_vm0, %v1635_v49, %v1637_v53  ;;  %1716 = vmatprep.subr.bf16.mxu1 %v1696_v50 }
 0x3f4   : > { %v1693_v56 = vsel %vm1667_vm13, %v1687_v55, %v1641_v54  ;;  %vm1871_vm13 = vcmask 1042304  }
 0x3f5   : > { %1717 = vmatpush1.bf16.msra.mxu1 %v1693_v56 }
 0x3f6   : > { %v1648_v57 = vpop.permute.xlu1 %1647  ;;  %v1646_v28 = vpop.permute.xlu0 %1645 }
 0x3f7   : > { %v1712_v58 = vsel %vm894_vm1, %v1648_v57, 0  ;;  %v1650_v59 = vsel %vm1649_vm5, %v1644_v2, %v1646_v28  ;;  %v1651_v60 = vsel %vm1649_vm5, %v1646_v28, %v1648_v57 }
 0x3f8   : > { %v1706_v61 = vsel %vm894_vm1, %v1650_v59, 0  ;;  %2033 = vmatprep.subr.msk.bf16.mxu1 %vm894_vm1, %v1651_v60  ;;  %2122 = vmatpush3.bf16.msra.mxu0 %v1712_v58  ;;  %vm1815_vm1 = vcmask 123904  }
 0x3f9   : > { %1719 = vmatpush1.bf16.msra.mxu1 %v1706_v61 }
 0x3fb   : > { %2124 = vmatmul.mubr.msk.bf16.vlgmr.msra.gmra.mrb[20].mxu0 %vm1701_vm3, %v1550_v0 }
 0x3fc   : > { %2034 = vmatmul.mubr.msk.bf16.vlgmr.msra.gmra.mrb[16].mxu1 %vm1701_vm3, %v1550_v0 }
 0x407   : > { %v1798_v51 = vpop.permute.xlu0 %1797  ;;  %v1806_v63 = vpop.permute.xlu1 %1805 }
 0x4ce   : > { %v1789_v62 = vpop.f32.mrb[20].mxu0 }
 0x4cf   : > { %v1802_v3 = vmul.f32 %v1798_v51, %v1789_v62  ;;  %v1748_v4 = vpop.f32.mrb[16].mxu1  ;;  %v2125_v5 = vpop.f32.mrb[21].mxu0 }
 0x4d0   : > { %v1800_v6 = vmul.f32 %v1798_v51, %v1748_v4  ;;  %v1750_v7 = vpop.f32.mrb[17].mxu1  ;;  %v1792_v8 = vpop.f32.mrb[22].mxu0 }
 0x4d1   : > { %v1810_v9 = vadd.f32 %v1806_v63, %v1802_v3  ;;  %v1801_v52 = vmul.f32 %v1798_v51, %v1750_v7  ;;  %v1752_v10 = vpop.f32.mrb[18].mxu1  ;;  %v2126_v11 = vpop.f32.mrb[23].mxu0 }
 0x4d2   : > { %v1808_v53 = vadd.f32 %v1806_v63, %v1800_v6  ;;  %v1753_v12 = vpop.f32.mrb[19].mxu1 }
 0x4d3   : > { %v1809_v13 = vadd.f32 %v1806_v63, %v1801_v52  ;;  %v1813_v15 = vmax.f32 %v1810_v9, 0.0 }
 0x4d4   : > { %v1811_v14 = vmax.f32 %v1808_v53, 0.0 }
 0x4d5   : > { %v1812_v16 = vmax.f32 %v1809_v13, 0.0  ;;  %v1904_v25 = vpack.c.bf16 %v1813_v15, %v1813_v15 }
 0x4d6   : > { %v1814_v17 = vpack.c.bf16 %v1811_v14, %v1811_v14 }
 0x4d7   : > { %v2036_v18 = vpack.c.bf16 %v1812_v16, %v1811_v14  ;;  %v2037_v19 = vpack.c.bf16 %v1813_v15, %v1812_v16  ;;  %v1855_v20 = vpack.c.bf16 %v1812_v16, %v1812_v16  ;;  %v1927_v26 = vrot.slane %v1904_v25, %v2427_v37 }
 0x4d8   : > { %v1824_v1 = vrot.slane %v1814_v17, %v2427_v37  ;;  %1816 = vst.msk [vmem:[%s2608_s16] sm:$0x3] %vm1815_vm1, %v1814_v17 }
 0x4d9   : > { %v1879_v21 = vrot.slane %v1855_v20, %v2427_v37  ;;  %v1913_v23 = vrot.slane %v2037_v19, %v2427_v37  ;;  %v1864_v24 = vrot.slane %v2036_v18, %v2427_v37 }
 0x4da   : > { %1840 = vrot.lane.b32.xlu0 %v1824_v1, %s2197_s22  ;;  %1825 = vrot.lane.b32.xlu1 %v1824_v1, %s2216_s15  ;;  %s2234_s22 = smov 100   ;;  %s2236_s15 = smov 102  }
 0x4de   : > { %1880 = vrot.lane.b32.xlu0 %v1879_v21, %s2196_s21  ;;  %1830 = vrot.lane.b32.xlu1 %v1824_v1, %s2218_s19  ;;  %s2235_s21 = smov 114   ;;  %s2237_s19 = smov 116  }
 0x4e2   : > { %1884 = vrot.lane.b32.xlu0 %v1879_v21, %s2228_s9  ;;  %1835 = vrot.lane.b32.xlu1 %v1824_v1, %s2232_s28 }
 0x4e6   : > { %1888 = vrot.lane.b32.xlu0 %v1879_v21, %s2219_s20  ;;  %1845 = vrot.lane.b32.xlu1 %v1824_v1, %s2233_s17  ;;  %s2238_s20 = smov 98  }
 0x4ea   : > { %1892 = vrot.lane.b32.xlu0 %v1879_v21, %s2224_s10  ;;  %1914 = vrot.lane.b32.xlu1 %v1913_v23, %s2234_s22 }
 0x4ee   : > { %1896 = vrot.lane.b32.xlu0 %v1879_v21, %s2198_s23  ;;  %1865 = vrot.lane.b32.xlu1 %v1864_v24, %s2235_s21 }
 0x4f2   : > { %1900 = vrot.lane.b32.xlu0 %v1879_v21, %s2236_s15  ;;  %1850 = vrot.lane.b32.xlu1 %v1824_v1, %s2237_s19 }
 0x4f6   : > { %1928 = vrot.lane.b32.xlu0 %v1927_v26, %s2238_s20 }
 0x54c   : > { %v1841_v27 = vpop.permute.xlu0 %1840  ;;  %v1826_v29 = vpop.permute.xlu1 %1825 }
 0x54d   : > { %1829 = vst.msk [vmem:[%s2608_s16] sm:$0x3] %vm1828_vm6, %v1826_v29 }
 0x550   : > { %v1881_v30 = vpop.permute.xlu0 %1880  ;;  %v1831_v31 = vpop.permute.xlu1 %1830 }
 0x551   : > { %1883 = vst.msk [vmem:[%s2608_s16 + $0x2] sm:$0x3] %vm1815_vm1, %v1881_v30 }
 0x552   : > { %1834 = vst.msk [vmem:[%s2608_s16] sm:$0x3] %vm1833_vm7, %v1831_v31 }
 0x554   : > { %v1885_v37 = vpop.permute.xlu0 %1884  ;;  %v1836_v32 = vpop.permute.xlu1 %1835 }
 0x555   : > { %1887 = vst.msk [vmem:[%s2608_s16 + $0x2] sm:$0x3] %vm1828_vm6, %v1885_v37 }
 0x556   : > { %1839 = vst.msk [vmem:[%s2608_s16] sm:$0x3] %vm1838_vm8, %v1836_v32 }
 0x557   : > { %1844 = vst.msk [vmem:[%s2608_s16] sm:$0x3] %vm1843_vm9, %v1841_v27 }
 0x558   : > { %v1889_v33 = vpop.permute.xlu0 %1888  ;;  %v1846_v34 = vpop.permute.xlu1 %1845 }
 0x559   : > { %1891 = vst.msk [vmem:[%s2608_s16 + $0x2] sm:$0x3] %vm1833_vm7, %v1889_v33 }
 0x55a   : > { %1849 = vst.msk [vmem:[%s2608_s16] sm:$0x3] %vm1848_vm10, %v1846_v34 }
 0x55c   : > { %v1893_v35 = vpop.permute.xlu0 %1892  ;;  %v1915_v36 = vpop.permute.xlu1 %1914 }
 0x55d   : > { %1895 = vst.msk [vmem:[%s2608_s16 + $0x2] sm:$0x3] %vm1838_vm8, %v1893_v35  ;;  %v1916_v40 = vrot.slane %v1915_v36, 2 }
 0x55f   : > { %v1918_v44 = vsel %vm1917_vm11, %v1915_v36, %v1916_v40 }
 0x560   : > { %v1897_v38 = vpop.permute.xlu0 %1896  ;;  %v1866_v39 = vpop.permute.xlu1 %1865 }
 0x561   : > { %1899 = vst.msk [vmem:[%s2608_s16 + $0x2] sm:$0x3] %vm1843_vm9, %v1897_v38  ;;  %v1867_v41 = vrot.slane %v1866_v39, 2 }
 0x563   : > { %v1869_v45 = vsel %vm1868_vm15, %v1866_v39, %v1867_v41 }
 0x564   : > { %v1901_v42 = vpop.permute.xlu0 %1900  ;;  %v1851_v43 = vpop.permute.xlu1 %1850 }
 0x565   : > { %1903 = vst.msk [vmem:[%s2608_s16 + $0x2] sm:$0x3] %vm1848_vm10, %v1901_v42 }
 0x566   : > { %1854 = vst.msk [vmem:[%s2608_s16] sm:$0x3] %vm1853_vm12, %v1851_v43  ;;  %1920 = vst.msk [vmem:[%s2608_s16 + $0x2] sm:$0x3] %vm1853_vm12, %v1918_v44 }
 0x567   : > { %1872 = vst.msk [vmem:[%s2608_s16] sm:$0x3] %vm1871_vm13, %v1869_v45 }
 0x568   : > { %v1929_v46 = vpop.permute.xlu0 %1928 }
 0x569   : > { %1931 = vst.msk [vmem:[%s2608_s16 + $0x2] sm:$0x3] %vm1871_vm13, %v1929_v46 }
 0x56a PF: > { %s18_s27 = sadd.s32 1, %s2191_s27  }
 0x56b   : > { %p15_p4 = scmp.ge.s32.totalorder %s18_s27, 4  }
 0x56d   :  { %17 = sbr.rel (!%p15_p4) target bundleno = 1 (0x1), region = 85 }

</bundles_post_ra>
